<compile_context>
chip_gen: v7x
topology: tpu7x:2x2x1
jax: 0.10.0
libtpu: 0.0.40
codegen_flags: <defaults>
</compile_context>

<pallas_src>
import functools

import jax
import jax.numpy as jnp
from jax import lax
from jax.experimental import pallas as pl
from jax.experimental.pallas import tpu as pltpu

# ---- small synthetic config (Data2VecAudioConfig analog) ----
BATCH = 2
SEQ = 16
HIDDEN = 32
NUM_HEADS = 4
HEAD_DIM = HIDDEN // NUM_HEADS
INTERMEDIATE = 64
NUM_LAYERS = 2
CONV_K = 4                 # num_conv_pos_embeddings (even -> PadLayer trims last col)
CONV_GROUPS = 4            # num_conv_pos_embedding_groups
CONV_PAD = CONV_K // 2
LN_EPS = 1e-5
SCALING = HEAD_DIM ** -0.5

# rows of the packed per-layer vector slab (all of width HIDDEN)
VEC_BQ, VEC_BK, VEC_BV, VEC_BO, VEC_LN1G, VEC_LN1B, VEC_BO2, VEC_LN2G, VEC_LN2B = range(9)
VEC_ROWS = 16              # padded to a sublane multiple


# ----------------------------- helpers (traced inside the kernel) -------------
def _gelu_exact(x):
    # erf-based GELU == torch.nn.functional.gelu == HF ACT2FN["gelu"]
    return 0.5 * x * (1.0 + lax.erf(x * 0.7071067811865476))


def _gelu_tanh(x):
    # fallback only (tanh approximation rides the EUP slot; also preferred on v5e
    # if VALU ever becomes the binding slot)
    return jax.nn.gelu(x, approximate=True)


def _layernorm(x, gamma, beta):
    mean = jnp.mean(x, axis=-1, keepdims=True)
    var = jnp.mean(jnp.square(x - mean), axis=-1, keepdims=True)
    return (x - mean) * lax.rsqrt(var + LN_EPS) * gamma + beta


def _softmax_rows(s):
    m = jnp.max(s, axis=-1, keepdims=True)
    e = jnp.exp(s - m)
    return e * pl.reciprocal(jnp.sum(e, axis=-1, keepdims=True), approx=True)


# ----------------------------- fused encoder kernel ---------------------------
def _encoder_kernel(gelu,
                    win_ref, x_ref, kbias_ref, wc_ref, encvec_ref,
                    wqkv_ref, wo_ref, wi_ref, wo2_ref, vec_ref, bi_ref,
                    o_ref, h_ref):
    """One grid step = (batch item b, encoder layer l).

      win_ref   : (T, K*H)  bf16 lane-dense im2col slab for the positional conv
      x_ref     : (T, H)    f32 attention-masked input (conv residual)
      kbias_ref : (1, T)    f32 additive key-padding bias ((1-mask)*-10000)
      wc_ref    : (K*H, H)  bf16 stacked block-diagonal grouped-conv weight
      encvec_ref: (8, H)    f32 rows: 0=conv_b, 1=enc_ln_gamma, 2=enc_ln_beta
      wqkv_ref  : (H, 3H)   bf16 fused QKV projection weight (this layer)
      wo_ref    : (NH, D, H) bf16 out-projection weight, head-major
      wi_ref    : (H, I)    bf16 FFN intermediate weight
      wo2_ref   : (I, H)    bf16 FFN output weight
      vec_ref   : (16, H)   f32 packed per-layer biases / LN gamma+beta
      bi_ref    : (1, I)    f32 FFN intermediate bias
      o_ref     : (T, H)    output (written on the last layer only)
      h_ref     : (T, H)    f32 VMEM scratch carrying the activation across layers
    """
    l = pl.program_id(1)

    # ---- prologue (layer 0 only): positional conv + residual + encoder LayerNorm ----
    @pl.when(l == 0)
    def _():
        # TODO(synk): at the real (K=128, H=768, groups=16) config use G per-group
        # [K*Cg, Cg] matmuls instead of the zero-padded block-diagonal weight.
        pos = gelu(jnp.dot(win_ref[...], wc_ref[...],
                           preferred_element_type=jnp.float32) + encvec_ref[0:1, :])
        h0 = x_ref[...] + pos
        h_ref[...] = _layernorm(h0, encvec_ref[1:2, :], encvec_ref[2:3, :])

    h = h_ref[...]                                    # (T, H) f32 carried activation
    bias = kbias_ref[...]                             # (1, T)
    vec = vec_ref[...]                                # (16, H) packed per-layer vectors

    # ---- self-attention (bf16 MXU operands, f32 accumulation) ----
    qkv = jnp.dot(h.astype(jnp.bfloat16), wqkv_ref[...],
                  preferred_element_type=jnp.float32)                      # (T, 3H)
    q = ((qkv[:, 0:HIDDEN] + vec[VEC_BQ:VEC_BQ + 1, :]) * SCALING).astype(jnp.bfloat16)
    k = (qkv[:, HIDDEN:2 * HIDDEN] + vec[VEC_BK:VEC_BK + 1, :]).astype(jnp.bfloat16)
    v = (qkv[:, 2 * HIDDEN:3 * HIDDEN] + vec[VEC_BV:VEC_BV + 1, :]).astype(jnp.bfloat16)

    # TODO(synk): at real H=768 / long SEQ use a head-major layout with flash-style
    # tiling over T instead of this static per-head loop on 8-lane slices.
    attn = jnp.zeros((SEQ, HIDDEN), jnp.float32)
    for hh in range(NUM_HEADS):
        sl = slice(hh * HEAD_DIM, (hh + 1) * HEAD_DIM)
        s = lax.dot_general(q[:, sl], k[:, sl], (((1,), (1,)), ((), ())),
                            preferred_element_type=jnp.float32) + bias    # (T, T)
        p = _softmax_rows(s)
        ctx = jnp.dot(p.astype(jnp.bfloat16), v[:, sl],
                      preferred_element_type=jnp.float32)                 # (T, D)
        # fold the output projection per head -> no lane-dim concat of head outputs
        attn = attn + jnp.dot(ctx.astype(jnp.bfloat16), wo_ref[hh],
                              preferred_element_type=jnp.float32)
    attn = attn + vec[VEC_BO:VEC_BO + 1, :]

    h1 = _layernorm(h + attn, vec[VEC_LN1G:VEC_LN1G + 1, :], vec[VEC_LN1B:VEC_LN1B + 1, :])

    # ---- feed-forward ----
    ff = gelu(jnp.dot(h1.astype(jnp.bfloat16), wi_ref[...],
                      preferred_element_type=jnp.float32) + bi_ref[...])
    ff = jnp.dot(ff.astype(jnp.bfloat16), wo2_ref[...],
                 preferred_element_type=jnp.float32) + vec[VEC_BO2:VEC_BO2 + 1, :]

    h_new = _layernorm(h1 + ff, vec[VEC_LN2G:VEC_LN2G + 1, :], vec[VEC_LN2B:VEC_LN2B + 1, :])
    h_ref[...] = h_new

    @pl.when(l == pl.num_programs(1) - 1)
    def _():
        # TODO(synk): at real H (multiple of 128) this store is naturally lane-dense;
        # at the toy H=32 it is a masked partial store.
        o_ref[...] = h_new.astype(o_ref.dtype)


# ----------------------------- wrapper -----------------------------------------
def run_encoder(hidden_states, attention_mask, params, gelu):
    """Data2VecAudioEncoder.forward (eval mode, dropout = identity)."""
    B, T, H = hidden_states.shape
    KH = CONV_K * H

    # --- plain-JAX glue matching the PyTorch forward ---
    x = hidden_states * attention_mask[..., None]                         # zero padded frames
    xpad = jnp.pad(x, ((0, 0), (CONV_PAD, CONV_PAD), (0, 0)))
    # lane-dense im2col slab for the conv-as-matmul: [B, T, K*H] (K*H = 128 lanes)
    # TODO(synk): at real K=128 keep the padded input resident in-kernel (roll over T)
    # instead of materializing a K-times-larger im2col slab in HBM.
    win = jnp.concatenate([xpad[:, kk:kk + T, :] for kk in range(CONV_K)],
                          axis=-1).astype(jnp.bfloat16)                   # (B, T, K*H)
    # key-padding bias, -10000 exactly as in the HF module
    kbias = ((1.0 - attention_mask.astype(jnp.float32)) * -10000.0)[:, None, :]  # (B,1,T)

    grid_spec = pltpu.PrefetchScalarGridSpec(
        num_scalar_prefetch=0,
        grid=(B, NUM_LAYERS),
        in_specs=[
            pl.BlockSpec((None, T, KH), lambda b, l: (b, 0, 0)),           # win (im2col)
            pl.BlockSpec((None, T, H), lambda b, l: (b, 0, 0)),            # x (residual)
            pl.BlockSpec((None, 1, T), lambda b, l: (b, 0, 0)),            # key-pad bias
            pl.BlockSpec((KH, H), lambda b, l: (0, 0)),                    # conv weight
            pl.BlockSpec((8, H), lambda b, l: (0, 0)),                     # conv_b + enc LN
            pl.BlockSpec((None, H, 3 * H), lambda b, l: (l, 0, 0)),        # w_qkv
            pl.BlockSpec((None, NUM_HEADS, HEAD_DIM, H),
                         lambda b, l: (l, 0, 0, 0)),                       # w_o (head-major)
            pl.BlockSpec((None, H, INTERMEDIATE), lambda b, l: (l, 0, 0)), # w_i
            pl.BlockSpec((None, INTERMEDIATE, H), lambda b, l: (l, 0, 0)), # w_o2
            pl.BlockSpec((None, VEC_ROWS, H), lambda b, l: (l, 0, 0)),     # packed vectors
            pl.BlockSpec((None, 1, INTERMEDIATE), lambda b, l: (l, 0, 0)), # FFN bias
        ],
        out_specs=pl.BlockSpec((None, T, H), lambda b, l: (b, 0, 0)),
        scratch_shapes=[pltpu.VMEM((T, H), jnp.float32)],                  # carried h
    )

    out = pl.pallas_call(
        functools.partial(_encoder_kernel, gelu),
        out_shape=jax.ShapeDtypeStruct((B, T, H), hidden_states.dtype),
        grid_spec=grid_spec,
        compiler_params=pltpu.CompilerParams(
            dimension_semantics=("parallel", "arbitrary"),
            # TODO(synk): at the real 768/3072 config budget ~2x bf16 layer weights
            # + activations and keep below v7x's 64 MiB physical VMEM.
            vmem_limit_bytes=32 * 1024 * 1024),
    )(win, x, kbias, params["conv_w_stack"], params["enc_vec"],
      params["w_qkv"], params["w_o"], params["w_i"], params["w_o2"],
      params["vec"], params["b_i"])

    return {"last_hidden_state": out, "hidden_states": None, "attentions": None}


# ----------------------------- parameter init ----------------------------------
def init_params(key):
    ks = iter(jax.random.split(key, 64))

    def nrm(shape, scale=0.05):
        return scale * jax.random.normal(next(ks), shape, dtype=jnp.float32)

    # grouped Conv1d: weight [C_out, C_in/G, K], bias [C_out]
    conv_w = nrm((HIDDEN, HIDDEN // CONV_GROUPS, CONV_K), 0.1)
    conv_b = nrm((HIDDEN,), 0.1)

    # expand grouped conv weights into a stacked block-diagonal [K*H, H] matmul weight
    cg = HIDDEN // CONV_GROUPS
    w_blk = jnp.zeros((CONV_K, HIDDEN, HIDDEN), jnp.float32)
    for g in range(CONV_GROUPS):
        blk = jnp.transpose(conv_w[g * cg:(g + 1) * cg], (2, 1, 0))   # [K, Cg_in, Cg_out]
        w_blk = w_blk.at[:, g * cg:(g + 1) * cg, g * cg:(g + 1) * cg].set(blk)
    conv_w_stack = w_blk.reshape(CONV_K * HIDDEN, HIDDEN).astype(jnp.bfloat16)

    enc_vec = jnp.zeros((8, HIDDEN), jnp.float32)
    enc_vec = enc_vec.at[0].set(conv_b)     # conv bias
    enc_vec = enc_vec.at[1].set(1.0)        # encoder LayerNorm gamma (beta row stays 0)

    wqkv_l, wo_l, wi_l, wo2_l, vec_l, bi_l = [], [], [], [], [], []
    for _ in range(NUM_LAYERS):
        wq, wk, wv = nrm((HIDDEN, HIDDEN)), nrm((HIDDEN, HIDDEN)), nrm((HIDDEN, HIDDEN))
        bq, bk, bv = nrm((HIDDEN,)), nrm((HIDDEN,)), nrm((HIDDEN,))
        wo, bo = nrm((HIDDEN, HIDDEN)), nrm((HIDDEN,))
        wi, bi = nrm((HIDDEN, INTERMEDIATE)), nrm((INTERMEDIATE,))
        wo2, bo2 = nrm((INTERMEDIATE, HIDDEN)), nrm((HIDDEN,))

        wqkv_l.append(jnp.concatenate([wq, wk, wv], axis=1))              # (H, 3H)
        wo_l.append(wo.reshape(NUM_HEADS, HEAD_DIM, HIDDEN))              # (NH, D, H)
        wi_l.append(wi)
        wo2_l.append(wo2)

        vec = jnp.zeros((VEC_ROWS, HIDDEN), jnp.float32)
        vec = vec.at[VEC_BQ].set(bq).at[VEC_BK].set(bk).at[VEC_BV].set(bv)
        vec = vec.at[VEC_BO].set(bo).at[VEC_LN1G].set(1.0)
        vec = vec.at[VEC_BO2].set(bo2).at[VEC_LN2G].set(1.0)
        vec_l.append(vec)                                                 # LN betas stay 0
        bi_l.append(bi.reshape(1, INTERMEDIATE))

    return dict(
        conv_w_stack=conv_w_stack,                         # (K*H, H)   bf16
        enc_vec=enc_vec,                                   # (8, H)     f32
        w_qkv=jnp.stack(wqkv_l).astype(jnp.bfloat16),      # (L, H, 3H) bf16
        w_o=jnp.stack(wo_l).astype(jnp.bfloat16),          # (L, NH, D, H) bf16
        w_i=jnp.stack(wi_l).astype(jnp.bfloat16),          # (L, H, I)  bf16
        w_o2=jnp.stack(wo2_l).astype(jnp.bfloat16),        # (L, I, H)  bf16
        vec=jnp.stack(vec_l),                              # (L, 16, H) f32
        b_i=jnp.stack(bi_l),                               # (L, 1, I)  f32
    )


# ----------------------------- main ---------------------------------------------
if __name__ == "__main__":
    key = jax.random.PRNGKey(0)
    kparam, kx = jax.random.split(key)

    params = init_params(kparam)
    hidden_states = jax.random.normal(kx, (BATCH, SEQ, HIDDEN), jnp.float32)

    # attention_mask: 1 = keep, 0 = pad (second sequence has 4 padded frames)
    attention_mask = jnp.ones((BATCH, SEQ), jnp.float32)
    attention_mask = attention_mask.at[1, SEQ - 4:].set(0.0)

    try:
        out = run_encoder(hidden_states, attention_mask, params, _gelu_exact)
        out = jax.block_until_ready(out["last_hidden_state"])
    except Exception:
        # TODO(synk): erf not lowerable on this Mosaic build -> tanh-approx GELU fallback
        # (small deviation from exact GELU; matmuls are already bf16 so strict parity
        # is not the goal of this perf-oriented version).
        out = run_encoder(hidden_states, attention_mask, params, _gelu_tanh)
        out = jax.block_until_ready(out["last_hidden_state"])

    assert out.shape == (BATCH, SEQ, HIDDEN)
    print("KERNEL_OK")
</pallas_src>

<mosaic_0001>
module attributes {stable_mosaic.version = 11 : i64} {
  func.func @_encoder_kernel(%arg0: i32, %arg1: i32, %arg2: memref<1x16x128xbf16, #tpu.memory_space<vmem>>, %arg3: memref<1x16x32xf32, #tpu.memory_space<vmem>>, %arg4: memref<1x1x16xf32, #tpu.memory_space<vmem>>, %arg5: memref<128x32xbf16, #tpu.memory_space<vmem>>, %arg6: memref<8x32xf32, #tpu.memory_space<vmem>>, %arg7: memref<1x32x96xbf16, #tpu.memory_space<vmem>>, %arg8: memref<1x4x8x32xbf16, #tpu.memory_space<vmem>>, %arg9: memref<1x32x64xbf16, #tpu.memory_space<vmem>>, %arg10: memref<1x64x32xbf16, #tpu.memory_space<vmem>>, %arg11: memref<1x16x32xf32, #tpu.memory_space<vmem>>, %arg12: memref<1x1x64xf32, #tpu.memory_space<vmem>>, %arg13: memref<1x16x32xf32, #tpu.memory_space<vmem>>, %arg14: memref<16x32xf32, #tpu.memory_space<vmem>>) attributes {dimension_semantics = [#tpu.dimension_semantics<parallel>, #tpu.dimension_semantics<arbitrary>], iteration_bounds = array<i64: 2, 2>, scalar_prefetch = 0 : i64, scratch_operands = 1 : i64, tpu.core_type = #tpu.core_type<tc>, window_params = [{transform_indices = @transform_0, window_bounds = array<i64: 1, 16, 128>}, {transform_indices = @transform_1, window_bounds = array<i64: 1, 16, 32>}, {transform_indices = @transform_2, window_bounds = array<i64: 1, 1, 16>}, {pipeline_mode = #tpu.pipeline_mode<synchronous>, transform_indices = @transform_3, window_bounds = array<i64: 128, 32>}, {pipeline_mode = #tpu.pipeline_mode<synchronous>, transform_indices = @transform_4, window_bounds = array<i64: 8, 32>}, {transform_indices = @transform_5, window_bounds = array<i64: 1, 32, 96>}, {transform_indices = @transform_6, window_bounds = array<i64: 1, 4, 8, 32>}, {transform_indices = @transform_7, window_bounds = array<i64: 1, 32, 64>}, {transform_indices = @transform_8, window_bounds = array<i64: 1, 64, 32>}, {transform_indices = @transform_9, window_bounds = array<i64: 1, 16, 32>}, {transform_indices = @transform_10, window_bounds = array<i64: 1, 1, 64>}, {transform_indices = @transform_11, window_bounds = array<i64: 1, 16, 32>}]} {
    %c0_i32 = arith.constant 0 : i32
    %0 = arith.cmpi eq, %arg1, %c0_i32 : i32
    %1 = arith.extui %0 : i1 to i32
    %c0_i32_0 = arith.constant 0 : i32
    %2 = arith.cmpi ne, %1, %c0_i32_0 : i32
    scf.if %2 {
      %c0_73 = arith.constant 0 : index
      %c0_74 = arith.constant 0 : index
      %c0_75 = arith.constant 0 : index
      %202 = vector.load %arg2[%c0_73, %c0_74, %c0_75] : memref<1x16x128xbf16, #tpu.memory_space<vmem>>, vector<1x16x128xbf16>
      %203 = vector.shape_cast %202 : vector<1x16x128xbf16> to vector<16x128xbf16>
      %c0_76 = arith.constant 0 : index
      %c0_77 = arith.constant 0 : index
      %204 = vector.load %arg5[%c0_76, %c0_77] : memref<128x32xbf16, #tpu.memory_space<vmem>>, vector<128x32xbf16>
      %cst_78 = arith.constant dense<0.000000e+00> : vector<16x32xf32>
      %205 = tpu.matmul %203, %204, %cst_78 {dimension_numbers = #tpu.dot_dimension_numbers<[1], [0], [0], [1], [0, 0, 1, 1], [], []>} : vector<16x128xbf16>, vector<128x32xbf16>, vector<16x32xf32> -> vector<16x32xf32>
      %c0_79 = arith.constant 0 : index
      %c0_80 = arith.constant 0 : index
      %206 = vector.load %arg6[%c0_79, %c0_80] : memref<8x32xf32, #tpu.memory_space<vmem>>, vector<1x32xf32>
      %207 = vector.broadcast %206 : vector<1x32xf32> to vector<16x32xf32>
      %208 = arith.addf %205, %207 : vector<16x32xf32>
      %cst_81 = arith.constant 5.000000e-01 : f32
      %209 = vector.broadcast %cst_81 : f32 to vector<16x32xf32>
      %210 = arith.mulf %209, %208 : vector<16x32xf32>
      %cst_82 = arith.constant 0.707106769 : f32
      %211 = vector.broadcast %cst_82 : f32 to vector<16x32xf32>
      %212 = arith.mulf %208, %211 : vector<16x32xf32>
      %213 = math.erf %212 : vector<16x32xf32>
      %cst_83 = arith.constant 1.000000e+00 : f32
      %214 = vector.broadcast %cst_83 : f32 to vector<16x32xf32>
      %215 = arith.addf %214, %213 : vector<16x32xf32>
      %216 = arith.mulf %210, %215 : vector<16x32xf32>
      %c0_84 = arith.constant 0 : index
      %c0_85 = arith.constant 0 : index
      %c0_86 = arith.constant 0 : index
      %217 = vector.load %arg3[%c0_84, %c0_85, %c0_86] : memref<1x16x32xf32, #tpu.memory_space<vmem>>, vector<1x16x32xf32>
      %218 = vector.shape_cast %217 : vector<1x16x32xf32> to vector<16x32xf32>
      %219 = arith.addf %218, %216 : vector<16x32xf32>
      %c1_87 = arith.constant 1 : index
      %c0_88 = arith.constant 0 : index
      %220 = vector.load %arg6[%c1_87, %c0_88] : memref<8x32xf32, #tpu.memory_space<vmem>>, vector<1x32xf32>
      %c2_89 = arith.constant 2 : index
      %c0_90 = arith.constant 0 : index
      %221 = vector.load %arg6[%c2_89, %c0_90] : memref<8x32xf32, #tpu.memory_space<vmem>>, vector<1x32xf32>
      %cst_91 = arith.constant dense<0.000000e+00> : vector<16xf32>
      %222 = vector.multi_reduction <add>, %219, %cst_91 [1] : vector<16x32xf32> to vector<16xf32>
      %223 = vector.shape_cast %222 : vector<16xf32> to vector<16x1xf32>
      %cst_92 = arith.constant 3.200000e+01 : f32
      %224 = vector.broadcast %cst_92 : f32 to vector<16x1xf32>
      %225 = arith.divf %223, %224 : vector<16x1xf32>
      %226 = vector.broadcast %225 : vector<16x1xf32> to vector<16x32xf32>
      %227 = arith.subf %219, %226 : vector<16x32xf32>
      %228 = arith.mulf %227, %227 : vector<16x32xf32>
      %cst_93 = arith.constant dense<0.000000e+00> : vector<16xf32>
      %229 = vector.multi_reduction <add>, %228, %cst_93 [1] : vector<16x32xf32> to vector<16xf32>
      %230 = vector.shape_cast %229 : vector<16xf32> to vector<16x1xf32>
      %cst_94 = arith.constant 3.200000e+01 : f32
      %231 = vector.broadcast %cst_94 : f32 to vector<16x1xf32>
      %232 = arith.divf %230, %231 : vector<16x1xf32>
      %233 = vector.broadcast %225 : vector<16x1xf32> to vector<16x32xf32>
      %234 = arith.subf %219, %233 : vector<16x32xf32>
      %cst_95 = arith.constant 9.99999974E-6 : f32
      %235 = vector.broadcast %cst_95 : f32 to vector<16x1xf32>
      %236 = arith.addf %232, %235 : vector<16x1xf32>
      %237 = math.rsqrt %236 : vector<16x1xf32>
      %238 = vector.broadcast %237 : vector<16x1xf32> to vector<16x32xf32>
      %239 = arith.mulf %234, %238 : vector<16x32xf32>
      %240 = vector.broadcast %220 : vector<1x32xf32> to vector<16x32xf32>
      %241 = arith.mulf %239, %240 : vector<16x32xf32>
      %242 = vector.broadcast %221 : vector<1x32xf32> to vector<16x32xf32>
      %243 = arith.addf %241, %242 : vector<16x32xf32>
      %c0_96 = arith.constant 0 : index
      %c0_97 = arith.constant 0 : index
      %244 = vector.load %arg14[%c0_96, %c0_97] : memref<16x32xf32, #tpu.memory_space<vmem>>, vector<16x32xf32>
      tpu.vector_store %arg14[%c0_96, %c0_97], %243 {strides = array<i32>} : memref<16x32xf32, #tpu.memory_space<vmem>>, vector<16x32xf32>,
    } else {
    }
    %c0 = arith.constant 0 : index
    %c0_1 = arith.constant 0 : index
    %3 = vector.load %arg14[%c0, %c0_1] : memref<16x32xf32, #tpu.memory_space<vmem>>, vector<16x32xf32>
    %c0_2 = arith.constant 0 : index
    %c0_3 = arith.constant 0 : index
    %c0_4 = arith.constant 0 : index
    %4 = vector.load %arg4[%c0_2, %c0_3, %c0_4] : memref<1x1x16xf32, #tpu.memory_space<vmem>>, vector<1x1x16xf32>
    %5 = vector.shape_cast %4 : vector<1x1x16xf32> to vector<1x16xf32>
    %c0_5 = arith.constant 0 : index
    %c0_6 = arith.constant 0 : index
    %c0_7 = arith.constant 0 : index
    %6 = vector.load %arg11[%c0_5, %c0_6, %c0_7] : memref<1x16x32xf32, #tpu.memory_space<vmem>>, vector<1x16x32xf32>
    %7 = vector.shape_cast %6 : vector<1x16x32xf32> to vector<16x32xf32>
    %8 = arith.truncf %3 : vector<16x32xf32> to vector<16x32xbf16>
    %c0_8 = arith.constant 0 : index
    %c0_9 = arith.constant 0 : index
    %c0_10 = arith.constant 0 : index
    %9 = vector.load %arg7[%c0_8, %c0_9, %c0_10] : memref<1x32x96xbf16, #tpu.memory_space<vmem>>, vector<1x32x96xbf16>
    %10 = vector.shape_cast %9 : vector<1x32x96xbf16> to vector<32x96xbf16>
    %cst = arith.constant dense<0.000000e+00> : vector<16x96xf32>
    %11 = tpu.matmul %8, %10, %cst {dimension_numbers = #tpu.dot_dimension_numbers<[1], [0], [0], [1], [0, 0, 1, 1], [], []>} : vector<16x32xbf16>, vector<32x96xbf16>, vector<16x96xf32> -> vector<16x96xf32>
    %12 = vector.extract_strided_slice %11 {offsets = [0, 0], sizes = [16, 32], strides = [1, 1]} : vector<16x96xf32> to vector<16x32xf32>
    %13 = vector.extract_strided_slice %7 {offsets = [0, 0], sizes = [1, 32], strides = [1, 1]} : vector<16x32xf32> to vector<1x32xf32>
    %14 = vector.broadcast %13 : vector<1x32xf32> to vector<16x32xf32>
    %15 = arith.addf %12, %14 : vector<16x32xf32>
    %cst_11 = arith.constant 0.353553385 : f32
    %16 = vector.broadcast %cst_11 : f32 to vector<16x32xf32>
    %17 = arith.mulf %15, %16 : vector<16x32xf32>
    %18 = arith.truncf %17 : vector<16x32xf32> to vector<16x32xbf16>
    %19 = vector.extract_strided_slice %11 {offsets = [0, 32], sizes = [16, 32], strides = [1, 1]} : vector<16x96xf32> to vector<16x32xf32>
    %20 = vector.extract_strided_slice %7 {offsets = [1, 0], sizes = [1, 32], strides = [1, 1]} : vector<16x32xf32> to vector<1x32xf32>
    %21 = vector.broadcast %20 : vector<1x32xf32> to vector<16x32xf32>
    %22 = arith.addf %19, %21 : vector<16x32xf32>
    %23 = arith.truncf %22 : vector<16x32xf32> to vector<16x32xbf16>
    %24 = vector.extract_strided_slice %11 {offsets = [0, 64], sizes = [16, 32], strides = [1, 1]} : vector<16x96xf32> to vector<16x32xf32>
    %25 = vector.extract_strided_slice %7 {offsets = [2, 0], sizes = [1, 32], strides = [1, 1]} : vector<16x32xf32> to vector<1x32xf32>
    %26 = vector.broadcast %25 : vector<1x32xf32> to vector<16x32xf32>
    %27 = arith.addf %24, %26 : vector<16x32xf32>
    %28 = arith.truncf %27 : vector<16x32xf32> to vector<16x32xbf16>
    %cst_12 = arith.constant 0.000000e+00 : f32
    %29 = vector.broadcast %cst_12 : f32 to vector<16x32xf32>
    %30 = vector.extract_strided_slice %18 {offsets = [0, 0], sizes = [16, 8], strides = [1, 1]} : vector<16x32xbf16> to vector<16x8xbf16>
    %31 = vector.extract_strided_slice %23 {offsets = [0, 0], sizes = [16, 8], strides = [1, 1]} : vector<16x32xbf16> to vector<16x8xbf16>
    %cst_13 = arith.constant dense<0.000000e+00> : vector<16x16xf32>
    %32 = tpu.matmul %30, %31, %cst_13 {dimension_numbers = #tpu.dot_dimension_numbers<[1], [1], [0], [0], [0, 0, 1, 0], [], []>} : vector<16x8xbf16>, vector<16x8xbf16>, vector<16x16xf32> -> vector<16x16xf32>
    %33 = vector.broadcast %5 : vector<1x16xf32> to vector<16x16xf32>
    %34 = arith.addf %32, %33 : vector<16x16xf32>
    %cst_14 = arith.constant dense<0xFF800000> : vector<16xf32>
    %35 = vector.multi_reduction <maximumf>, %34, %cst_14 [1] : vector<16x16xf32> to vector<16xf32>
    %36 = vector.shape_cast %35 : vector<16xf32> to vector<16x1xf32>
    %37 = vector.broadcast %36 : vector<16x1xf32> to vector<16x16xf32>
    %38 = arith.subf %34, %37 : vector<16x16xf32>
    %39 = math.exp %38 : vector<16x16xf32>
    %cst_15 = arith.constant dense<0.000000e+00> : vector<16xf32>
    %40 = vector.multi_reduction <add>, %39, %cst_15 [1] : vector<16x16xf32> to vector<16xf32>
    %41 = vector.shape_cast %40 : vector<16xf32> to vector<16x1xf32>
    %42 = tpu.reciprocal %41 {approx = true} : vector<16x1xf32> -> vector<16x1xf32>
    %43 = vector.broadcast %42 : vector<16x1xf32> to vector<16x16xf32>
    %44 = arith.mulf %39, %43 : vector<16x16xf32>
    %45 = arith.truncf %44 : vector<16x16xf32> to vector<16x16xbf16>
    %46 = vector.extract_strided_slice %28 {offsets = [0, 0], sizes = [16, 8], strides = [1, 1]} : vector<16x32xbf16> to vector<16x8xbf16>
    %cst_16 = arith.constant dense<0.000000e+00> : vector<16x8xf32>
    %47 = tpu.matmul %45, %46, %cst_16 {dimension_numbers = #tpu.dot_dimension_numbers<[1], [0], [0], [1], [0, 0, 1, 1], [], []>} : vector<16x16xbf16>, vector<16x8xbf16>, vector<16x8xf32> -> vector<16x8xf32>
    %48 = arith.truncf %47 : vector<16x8xf32> to vector<16x8xbf16>
    %c0_17 = arith.constant 0 : index
    %c0_18 = arith.constant 0 : index
    %c0_19 = arith.constant 0 : index
    %c0_20 = arith.constant 0 : index
    %49 = vector.load %arg8[%c0_17, %c0_18, %c0_19, %c0_20] : memref<1x4x8x32xbf16, #tpu.memory_space<vmem>>, vector<1x1x8x32xbf16>
    %50 = vector.shape_cast %49 : vector<1x1x8x32xbf16> to vector<8x32xbf16>
    %cst_21 = arith.constant dense<0.000000e+00> : vector<16x32xf32>
    %51 = tpu.matmul %48, %50, %cst_21 {dimension_numbers = #tpu.dot_dimension_numbers<[1], [0], [0], [1], [0, 0, 1, 1], [], []>} : vector<16x8xbf16>, vector<8x32xbf16>, vector<16x32xf32> -> vector<16x32xf32>
    %52 = arith.addf %29, %51 : vector<16x32xf32>
    %53 = vector.extract_strided_slice %18 {offsets = [0, 8], sizes = [16, 8], strides = [1, 1]} : vector<16x32xbf16> to vector<16x8xbf16>
    %54 = vector.extract_strided_slice %23 {offsets = [0, 8], sizes = [16, 8], strides = [1, 1]} : vector<16x32xbf16> to vector<16x8xbf16>
    %cst_22 = arith.constant dense<0.000000e+00> : vector<16x16xf32>
    %55 = tpu.matmul %53, %54, %cst_22 {dimension_numbers = #tpu.dot_dimension_numbers<[1], [1], [0], [0], [0, 0, 1, 0], [], []>} : vector<16x8xbf16>, vector<16x8xbf16>, vector<16x16xf32> -> vector<16x16xf32>
    %56 = vector.broadcast %5 : vector<1x16xf32> to vector<16x16xf32>
    %57 = arith.addf %55, %56 : vector<16x16xf32>
    %cst_23 = arith.constant dense<0xFF800000> : vector<16xf32>
    %58 = vector.multi_reduction <maximumf>, %57, %cst_23 [1] : vector<16x16xf32> to vector<16xf32>
    %59 = vector.shape_cast %58 : vector<16xf32> to vector<16x1xf32>
    %60 = vector.broadcast %59 : vector<16x1xf32> to vector<16x16xf32>
    %61 = arith.subf %57, %60 : vector<16x16xf32>
    %62 = math.exp %61 : vector<16x16xf32>
    %cst_24 = arith.constant dense<0.000000e+00> : vector<16xf32>
    %63 = vector.multi_reduction <add>, %62, %cst_24 [1] : vector<16x16xf32> to vector<16xf32>
    %64 = vector.shape_cast %63 : vector<16xf32> to vector<16x1xf32>
    %65 = tpu.reciprocal %64 {approx = true} : vector<16x1xf32> -> vector<16x1xf32>
    %66 = vector.broadcast %65 : vector<16x1xf32> to vector<16x16xf32>
    %67 = arith.mulf %62, %66 : vector<16x16xf32>
    %68 = arith.truncf %67 : vector<16x16xf32> to vector<16x16xbf16>
    %69 = vector.extract_strided_slice %28 {offsets = [0, 8], sizes = [16, 8], strides = [1, 1]} : vector<16x32xbf16> to vector<16x8xbf16>
    %cst_25 = arith.constant dense<0.000000e+00> : vector<16x8xf32>
    %70 = tpu.matmul %68, %69, %cst_25 {dimension_numbers = #tpu.dot_dimension_numbers<[1], [0], [0], [1], [0, 0, 1, 1], [], []>} : vector<16x16xbf16>, vector<16x8xbf16>, vector<16x8xf32> -> vector<16x8xf32>
    %71 = arith.truncf %70 : vector<16x8xf32> to vector<16x8xbf16>
    %c0_26 = arith.constant 0 : index
    %c1 = arith.constant 1 : index
    %c0_27 = arith.constant 0 : index
    %c0_28 = arith.constant 0 : index
    %72 = vector.load %arg8[%c0_26, %c1, %c0_27, %c0_28] : memref<1x4x8x32xbf16, #tpu.memory_space<vmem>>, vector<1x1x8x32xbf16>
    %73 = vector.shape_cast %72 : vector<1x1x8x32xbf16> to vector<8x32xbf16>
    %cst_29 = arith.constant dense<0.000000e+00> : vector<16x32xf32>
    %74 = tpu.matmul %71, %73, %cst_29 {dimension_numbers = #tpu.dot_dimension_numbers<[1], [0], [0], [1], [0, 0, 1, 1], [], []>} : vector<16x8xbf16>, vector<8x32xbf16>, vector<16x32xf32> -> vector<16x32xf32>
    %75 = arith.addf %52, %74 : vector<16x32xf32>
    %76 = vector.extract_strided_slice %18 {offsets = [0, 16], sizes = [16, 8], strides = [1, 1]} : vector<16x32xbf16> to vector<16x8xbf16>
    %77 = vector.extract_strided_slice %23 {offsets = [0, 16], sizes = [16, 8], strides = [1, 1]} : vector<16x32xbf16> to vector<16x8xbf16>
    %cst_30 = arith.constant dense<0.000000e+00> : vector<16x16xf32>
    %78 = tpu.matmul %76, %77, %cst_30 {dimension_numbers = #tpu.dot_dimension_numbers<[1], [1], [0], [0], [0, 0, 1, 0], [], []>} : vector<16x8xbf16>, vector<16x8xbf16>, vector<16x16xf32> -> vector<16x16xf32>
    %79 = vector.broadcast %5 : vector<1x16xf32> to vector<16x16xf32>
    %80 = arith.addf %78, %79 : vector<16x16xf32>
    %cst_31 = arith.constant dense<0xFF800000> : vector<16xf32>
    %81 = vector.multi_reduction <maximumf>, %80, %cst_31 [1] : vector<16x16xf32> to vector<16xf32>
    %82 = vector.shape_cast %81 : vector<16xf32> to vector<16x1xf32>
    %83 = vector.broadcast %82 : vector<16x1xf32> to vector<16x16xf32>
    %84 = arith.subf %80, %83 : vector<16x16xf32>
    %85 = math.exp %84 : vector<16x16xf32>
    %cst_32 = arith.constant dense<0.000000e+00> : vector<16xf32>
    %86 = vector.multi_reduction <add>, %85, %cst_32 [1] : vector<16x16xf32> to vector<16xf32>
    %87 = vector.shape_cast %86 : vector<16xf32> to vector<16x1xf32>
    %88 = tpu.reciprocal %87 {approx = true} : vector<16x1xf32> -> vector<16x1xf32>
    %89 = vector.broadcast %88 : vector<16x1xf32> to vector<16x16xf32>
    %90 = arith.mulf %85, %89 : vector<16x16xf32>
    %91 = arith.truncf %90 : vector<16x16xf32> to vector<16x16xbf16>
    %92 = vector.extract_strided_slice %28 {offsets = [0, 16], sizes = [16, 8], strides = [1, 1]} : vector<16x32xbf16> to vector<16x8xbf16>
    %cst_33 = arith.constant dense<0.000000e+00> : vector<16x8xf32>
    %93 = tpu.matmul %91, %92, %cst_33 {dimension_numbers = #tpu.dot_dimension_numbers<[1], [0], [0], [1], [0, 0, 1, 1], [], []>} : vector<16x16xbf16>, vector<16x8xbf16>, vector<16x8xf32> -> vector<16x8xf32>
    %94 = arith.truncf %93 : vector<16x8xf32> to vector<16x8xbf16>
    %c0_34 = arith.constant 0 : index
    %c2 = arith.constant 2 : index
    %c0_35 = arith.constant 0 : index
    %c0_36 = arith.constant 0 : index
    %95 = vector.load %arg8[%c0_34, %c2, %c0_35, %c0_36] : memref<1x4x8x32xbf16, #tpu.memory_space<vmem>>, vector<1x1x8x32xbf16>
    %96 = vector.shape_cast %95 : vector<1x1x8x32xbf16> to vector<8x32xbf16>
    %cst_37 = arith.constant dense<0.000000e+00> : vector<16x32xf32>
    %97 = tpu.matmul %94, %96, %cst_37 {dimension_numbers = #tpu.dot_dimension_numbers<[1], [0], [0], [1], [0, 0, 1, 1], [], []>} : vector<16x8xbf16>, vector<8x32xbf16>, vector<16x32xf32> -> vector<16x32xf32>
    %98 = arith.addf %75, %97 : vector<16x32xf32>
    %99 = vector.extract_strided_slice %18 {offsets = [0, 24], sizes = [16, 8], strides = [1, 1]} : vector<16x32xbf16> to vector<16x8xbf16>
    %100 = vector.extract_strided_slice %23 {offsets = [0, 24], sizes = [16, 8], strides = [1, 1]} : vector<16x32xbf16> to vector<16x8xbf16>
    %cst_38 = arith.constant dense<0.000000e+00> : vector<16x16xf32>
    %101 = tpu.matmul %99, %100, %cst_38 {dimension_numbers = #tpu.dot_dimension_numbers<[1], [1], [0], [0], [0, 0, 1, 0], [], []>} : vector<16x8xbf16>, vector<16x8xbf16>, vector<16x16xf32> -> vector<16x16xf32>
    %102 = vector.broadcast %5 : vector<1x16xf32> to vector<16x16xf32>
    %103 = arith.addf %101, %102 : vector<16x16xf32>
    %cst_39 = arith.constant dense<0xFF800000> : vector<16xf32>
    %104 = vector.multi_reduction <maximumf>, %103, %cst_39 [1] : vector<16x16xf32> to vector<16xf32>
    %105 = vector.shape_cast %104 : vector<16xf32> to vector<16x1xf32>
    %106 = vector.broadcast %105 : vector<16x1xf32> to vector<16x16xf32>
    %107 = arith.subf %103, %106 : vector<16x16xf32>
    %108 = math.exp %107 : vector<16x16xf32>
    %cst_40 = arith.constant dense<0.000000e+00> : vector<16xf32>
    %109 = vector.multi_reduction <add>, %108, %cst_40 [1] : vector<16x16xf32> to vector<16xf32>
    %110 = vector.shape_cast %109 : vector<16xf32> to vector<16x1xf32>
    %111 = tpu.reciprocal %110 {approx = true} : vector<16x1xf32> -> vector<16x1xf32>
    %112 = vector.broadcast %111 : vector<16x1xf32> to vector<16x16xf32>
    %113 = arith.mulf %108, %112 : vector<16x16xf32>
    %114 = arith.truncf %113 : vector<16x16xf32> to vector<16x16xbf16>
    %115 = vector.extract_strided_slice %28 {offsets = [0, 24], sizes = [16, 8], strides = [1, 1]} : vector<16x32xbf16> to vector<16x8xbf16>
    %cst_41 = arith.constant dense<0.000000e+00> : vector<16x8xf32>
    %116 = tpu.matmul %114, %115, %cst_41 {dimension_numbers = #tpu.dot_dimension_numbers<[1], [0], [0], [1], [0, 0, 1, 1], [], []>} : vector<16x16xbf16>, vector<16x8xbf16>, vector<16x8xf32> -> vector<16x8xf32>
    %117 = arith.truncf %116 : vector<16x8xf32> to vector<16x8xbf16>
    %c0_42 = arith.constant 0 : index
    %c3 = arith.constant 3 : index
    %c0_43 = arith.constant 0 : index
    %c0_44 = arith.constant 0 : index
    %118 = vector.load %arg8[%c0_42, %c3, %c0_43, %c0_44] : memref<1x4x8x32xbf16, #tpu.memory_space<vmem>>, vector<1x1x8x32xbf16>
    %119 = vector.shape_cast %118 : vector<1x1x8x32xbf16> to vector<8x32xbf16>
    %cst_45 = arith.constant dense<0.000000e+00> : vector<16x32xf32>
    %120 = tpu.matmul %117, %119, %cst_45 {dimension_numbers = #tpu.dot_dimension_numbers<[1], [0], [0], [1], [0, 0, 1, 1], [], []>} : vector<16x8xbf16>, vector<8x32xbf16>, vector<16x32xf32> -> vector<16x32xf32>
    %121 = arith.addf %98, %120 : vector<16x32xf32>
    %122 = vector.extract_strided_slice %7 {offsets = [3, 0], sizes = [1, 32], strides = [1, 1]} : vector<16x32xf32> to vector<1x32xf32>
    %123 = vector.broadcast %122 : vector<1x32xf32> to vector<16x32xf32>
    %124 = arith.addf %121, %123 : vector<16x32xf32>
    %125 = arith.addf %3, %124 : vector<16x32xf32>
    %126 = vector.extract_strided_slice %7 {offsets = [4, 0], sizes = [1, 32], strides = [1, 1]} : vector<16x32xf32> to vector<1x32xf32>
    %127 = vector.extract_strided_slice %7 {offsets = [5, 0], sizes = [1, 32], strides = [1, 1]} : vector<16x32xf32> to vector<1x32xf32>
    %cst_46 = arith.constant dense<0.000000e+00> : vector<16xf32>
    %128 = vector.multi_reduction <add>, %125, %cst_46 [1] : vector<16x32xf32> to vector<16xf32>
    %129 = vector.shape_cast %128 : vector<16xf32> to vector<16x1xf32>
    %cst_47 = arith.constant 3.200000e+01 : f32
    %130 = vector.broadcast %cst_47 : f32 to vector<16x1xf32>
    %131 = arith.divf %129, %130 : vector<16x1xf32>
    %132 = vector.broadcast %131 : vector<16x1xf32> to vector<16x32xf32>
    %133 = arith.subf %125, %132 : vector<16x32xf32>
    %134 = arith.mulf %133, %133 : vector<16x32xf32>
    %cst_48 = arith.constant dense<0.000000e+00> : vector<16xf32>
    %135 = vector.multi_reduction <add>, %134, %cst_48 [1] : vector<16x32xf32> to vector<16xf32>
    %136 = vector.shape_cast %135 : vector<16xf32> to vector<16x1xf32>
    %cst_49 = arith.constant 3.200000e+01 : f32
    %137 = vector.broadcast %cst_49 : f32 to vector<16x1xf32>
    %138 = arith.divf %136, %137 : vector<16x1xf32>
    %139 = vector.broadcast %131 : vector<16x1xf32> to vector<16x32xf32>
    %140 = arith.subf %125, %139 : vector<16x32xf32>
    %cst_50 = arith.constant 9.99999974E-6 : f32
    %141 = vector.broadcast %cst_50 : f32 to vector<16x1xf32>
    %142 = arith.addf %138, %141 : vector<16x1xf32>
    %143 = math.rsqrt %142 : vector<16x1xf32>
    %144 = vector.broadcast %143 : vector<16x1xf32> to vector<16x32xf32>
    %145 = arith.mulf %140, %144 : vector<16x32xf32>
    %146 = vector.broadcast %126 : vector<1x32xf32> to vector<16x32xf32>
    %147 = arith.mulf %145, %146 : vector<16x32xf32>
    %148 = vector.broadcast %127 : vector<1x32xf32> to vector<16x32xf32>
    %149 = arith.addf %147, %148 : vector<16x32xf32>
    %150 = arith.truncf %149 : vector<16x32xf32> to vector<16x32xbf16>
    %c0_51 = arith.constant 0 : index
    %c0_52 = arith.constant 0 : index
    %c0_53 = arith.constant 0 : index
    %151 = vector.load %arg9[%c0_51, %c0_52, %c0_53] : memref<1x32x64xbf16, #tpu.memory_space<vmem>>, vector<1x32x64xbf16>
    %152 = vector.shape_cast %151 : vector<1x32x64xbf16> to vector<32x64xbf16>
    %cst_54 = arith.constant dense<0.000000e+00> : vector<16x64xf32>
    %153 = tpu.matmul %150, %152, %cst_54 {dimension_numbers = #tpu.dot_dimension_numbers<[1], [0], [0], [1], [0, 0, 1, 1], [], []>} : vector<16x32xbf16>, vector<32x64xbf16>, vector<16x64xf32> -> vector<16x64xf32>
    %c0_55 = arith.constant 0 : index
    %c0_56 = arith.constant 0 : index
    %c0_57 = arith.constant 0 : index
    %154 = vector.load %arg12[%c0_55, %c0_56, %c0_57] : memref<1x1x64xf32, #tpu.memory_space<vmem>>, vector<1x1x64xf32>
    %155 = vector.shape_cast %154 : vector<1x1x64xf32> to vector<1x64xf32>
    %156 = vector.broadcast %155 : vector<1x64xf32> to vector<16x64xf32>
    %157 = arith.addf %153, %156 : vector<16x64xf32>
    %cst_58 = arith.constant 5.000000e-01 : f32
    %158 = vector.broadcast %cst_58 : f32 to vector<16x64xf32>
    %159 = arith.mulf %158, %157 : vector<16x64xf32>
    %cst_59 = arith.constant 0.707106769 : f32
    %160 = vector.broadcast %cst_59 : f32 to vector<16x64xf32>
    %161 = arith.mulf %157, %160 : vector<16x64xf32>
    %162 = math.erf %161 : vector<16x64xf32>
    %cst_60 = arith.constant 1.000000e+00 : f32
    %163 = vector.broadcast %cst_60 : f32 to vector<16x64xf32>
    %164 = arith.addf %163, %162 : vector<16x64xf32>
    %165 = arith.mulf %159, %164 : vector<16x64xf32>
    %166 = arith.truncf %165 : vector<16x64xf32> to vector<16x64xbf16>
    %c0_61 = arith.constant 0 : index
    %c0_62 = arith.constant 0 : index
    %c0_63 = arith.constant 0 : index
    %167 = vector.load %arg10[%c0_61, %c0_62, %c0_63] : memref<1x64x32xbf16, #tpu.memory_space<vmem>>, vector<1x64x32xbf16>
    %168 = vector.shape_cast %167 : vector<1x64x32xbf16> to vector<64x32xbf16>
    %cst_64 = arith.constant dense<0.000000e+00> : vector<16x32xf32>
    %169 = tpu.matmul %166, %168, %cst_64 {dimension_numbers = #tpu.dot_dimension_numbers<[1], [0], [0], [1], [0, 0, 1, 1], [], []>} : vector<16x64xbf16>, vector<64x32xbf16>, vector<16x32xf32> -> vector<16x32xf32>
    %170 = vector.extract_strided_slice %7 {offsets = [6, 0], sizes = [1, 32], strides = [1, 1]} : vector<16x32xf32> to vector<1x32xf32>
    %171 = vector.broadcast %170 : vector<1x32xf32> to vector<16x32xf32>
    %172 = arith.addf %169, %171 : vector<16x32xf32>
    %173 = arith.addf %149, %172 : vector<16x32xf32>
    %174 = vector.extract_strided_slice %7 {offsets = [7, 0], sizes = [1, 32], strides = [1, 1]} : vector<16x32xf32> to vector<1x32xf32>
    %175 = vector.extract_strided_slice %7 {offsets = [8, 0], sizes = [1, 32], strides = [1, 1]} : vector<16x32xf32> to vector<1x32xf32>
    %cst_65 = arith.constant dense<0.000000e+00> : vector<16xf32>
    %176 = vector.multi_reduction <add>, %173, %cst_65 [1] : vector<16x32xf32> to vector<16xf32>
    %177 = vector.shape_cast %176 : vector<16xf32> to vector<16x1xf32>
    %cst_66 = arith.constant 3.200000e+01 : f32
    %178 = vector.broadcast %cst_66 : f32 to vector<16x1xf32>
    %179 = arith.divf %177, %178 : vector<16x1xf32>
    %180 = vector.broadcast %179 : vector<16x1xf32> to vector<16x32xf32>
    %181 = arith.subf %173, %180 : vector<16x32xf32>
    %182 = arith.mulf %181, %181 : vector<16x32xf32>
    %cst_67 = arith.constant dense<0.000000e+00> : vector<16xf32>
    %183 = vector.multi_reduction <add>, %182, %cst_67 [1] : vector<16x32xf32> to vector<16xf32>
    %184 = vector.shape_cast %183 : vector<16xf32> to vector<16x1xf32>
    %cst_68 = arith.constant 3.200000e+01 : f32
    %185 = vector.broadcast %cst_68 : f32 to vector<16x1xf32>
    %186 = arith.divf %184, %185 : vector<16x1xf32>
    %187 = vector.broadcast %179 : vector<16x1xf32> to vector<16x32xf32>
    %188 = arith.subf %173, %187 : vector<16x32xf32>
    %cst_69 = arith.constant 9.99999974E-6 : f32
    %189 = vector.broadcast %cst_69 : f32 to vector<16x1xf32>
    %190 = arith.addf %186, %189 : vector<16x1xf32>
    %191 = math.rsqrt %190 : vector<16x1xf32>
    %192 = vector.broadcast %191 : vector<16x1xf32> to vector<16x32xf32>
    %193 = arith.mulf %188, %192 : vector<16x32xf32>
    %194 = vector.broadcast %174 : vector<1x32xf32> to vector<16x32xf32>
    %195 = arith.mulf %193, %194 : vector<16x32xf32>
    %196 = vector.broadcast %175 : vector<1x32xf32> to vector<16x32xf32>
    %197 = arith.addf %195, %196 : vector<16x32xf32>
    %c0_70 = arith.constant 0 : index
    %c0_71 = arith.constant 0 : index
    %198 = vector.load %arg14[%c0_70, %c0_71] : memref<16x32xf32, #tpu.memory_space<vmem>>, vector<16x32xf32>
    tpu.vector_store %arg14[%c0_70, %c0_71], %197 {strides = array<i32>} : memref<16x32xf32, #tpu.memory_space<vmem>>, vector<16x32xf32>,
    %c1_i32 = arith.constant 1 : i32
    %199 = arith.cmpi eq, %arg1, %c1_i32 : i32
    %200 = arith.extui %199 : i1 to i32
    %c0_i32_72 = arith.constant 0 : i32
    %201 = arith.cmpi ne, %200, %c0_i32_72 : i32
    scf.if %201 {
      %c0_73 = arith.constant 0 : index
      %c0_74 = arith.constant 0 : index
      %c0_75 = arith.constant 0 : index
      %202 = vector.load %arg13[%c0_73, %c0_74, %c0_75] : memref<1x16x32xf32, #tpu.memory_space<vmem>>, vector<1x16x32xf32>
      %203 = vector.shape_cast %202 : vector<1x16x32xf32> to vector<16x32xf32>
      %204 = vector.shape_cast %197 : vector<16x32xf32> to vector<1x16x32xf32>
      tpu.vector_store %arg13[%c0_73, %c0_74, %c0_75], %204 {strides = array<i32>} : memref<1x16x32xf32, #tpu.memory_space<vmem>>, vector<1x16x32xf32>,
    } else {
    }
    return
  }
  func.func @transform_0(%arg0: i32, %arg1: i32) -> (i32, i32, i32) {
    %c0_i32 = arith.constant 0 : i32
    %c0_i32_0 = arith.constant 0 : i32
    %c0_i32_1 = arith.constant 0 : i32
    return %arg0, %c0_i32, %c0_i32_0 : i32, i32, i32
  }
  func.func @transform_1(%arg0: i32, %arg1: i32) -> (i32, i32, i32) {
    %c0_i32 = arith.constant 0 : i32
    %c0_i32_0 = arith.constant 0 : i32
    %c0_i32_1 = arith.constant 0 : i32
    return %arg0, %c0_i32, %c0_i32_0 : i32, i32, i32
  }
  func.func @transform_2(%arg0: i32, %arg1: i32) -> (i32, i32, i32) {
    %c0_i32 = arith.constant 0 : i32
    %c0_i32_0 = arith.constant 0 : i32
    %c0_i32_1 = arith.constant 0 : i32
    return %arg0, %c0_i32, %c0_i32_0 : i32, i32, i32
  }
  func.func @transform_3(%arg0: i32, %arg1: i32) -> (i32, i32) {
    %c0_i32 = arith.constant 0 : i32
    %c0_i32_0 = arith.constant 0 : i32
    %c0_i32_1 = arith.constant 0 : i32
    return %c0_i32, %c0_i32_0 : i32, i32
  }
  func.func @transform_4(%arg0: i32, %arg1: i32) -> (i32, i32) {
    %c0_i32 = arith.constant 0 : i32
    %c0_i32_0 = arith.constant 0 : i32
    %c0_i32_1 = arith.constant 0 : i32
    return %c0_i32, %c0_i32_0 : i32, i32
  }
  func.func @transform_5(%arg0: i32, %arg1: i32) -> (i32, i32, i32) {
    %c0_i32 = arith.constant 0 : i32
    %c0_i32_0 = arith.constant 0 : i32
    %c0_i32_1 = arith.constant 0 : i32
    return %arg1, %c0_i32, %c0_i32_0 : i32, i32, i32
  }
  func.func @transform_6(%arg0: i32, %arg1: i32) -> (i32, i32, i32, i32) {
    %c0_i32 = arith.constant 0 : i32
    %c0_i32_0 = arith.constant 0 : i32
    %c0_i32_1 = arith.constant 0 : i32
    %c0_i32_2 = arith.constant 0 : i32
    return %arg1, %c0_i32, %c0_i32_0, %c0_i32_1 : i32, i32, i32, i32
  }
  func.func @transform_7(%arg0: i32, %arg1: i32) -> (i32, i32, i32) {
    %c0_i32 = arith.constant 0 : i32
    %c0_i32_0 = arith.constant 0 : i32
    %c0_i32_1 = arith.constant 0 : i32
    return %arg1, %c0_i32, %c0_i32_0 : i32, i32, i32
  }
  func.func @transform_8(%arg0: i32, %arg1: i32) -> (i32, i32, i32) {
    %c0_i32 = arith.constant 0 : i32
    %c0_i32_0 = arith.constant 0 : i32
    %c0_i32_1 = arith.constant 0 : i32
    return %arg1, %c0_i32, %c0_i32_0 : i32, i32, i32
  }
  func.func @transform_9(%arg0: i32, %arg1: i32) -> (i32, i32, i32) {
    %c0_i32 = arith.constant 0 : i32
    %c0_i32_0 = arith.constant 0 : i32
    %c0_i32_1 = arith.constant 0 : i32
    return %arg1, %c0_i32, %c0_i32_0 : i32, i32, i32
  }
  func.func @transform_10(%arg0: i32, %arg1: i32) -> (i32, i32, i32) {
    %c0_i32 = arith.constant 0 : i32
    %c0_i32_0 = arith.constant 0 : i32
    %c0_i32_1 = arith.constant 0 : i32
    return %arg1, %c0_i32, %c0_i32_0 : i32, i32, i32
  }
  func.func @transform_11(%arg0: i32, %arg1: i32) -> (i32, i32, i32) {
    %c0_i32 = arith.constant 0 : i32
    %c0_i32_0 = arith.constant 0 : i32
    %c0_i32_1 = arith.constant 0 : i32
    return %arg0, %c0_i32, %c0_i32_0 : i32, i32, i32
  }
}

module attributes {stable_mosaic.version = 11 : i64} {
  func.func @_encoder_kernel(%arg0: i32, %arg1: i32, %arg2: memref<1x16x128xbf16, #tpu.memory_space<vmem>>, %arg3: memref<1x16x32xf32, #tpu.memory_space<vmem>>, %arg4: memref<1x1x16xf32, #tpu.memory_space<vmem>>, %arg5: memref<128x32xbf16, #tpu.memory_space<vmem>>, %arg6: memref<8x32xf32, #tpu.memory_space<vmem>>, %arg7: memref<1x32x96xbf16, #tpu.memory_space<vmem>>, %arg8: memref<1x4x8x32xbf16, #tpu.memory_space<vmem>>, %arg9: memref<1x32x64xbf16, #tpu.memory_space<vmem>>, %arg10: memref<1x64x32xbf16, #tpu.memory_space<vmem>>, %arg11: memref<1x16x32xf32, #tpu.memory_space<vmem>>, %arg12: memref<1x1x64xf32, #tpu.memory_space<vmem>>, %arg13: memref<1x16x32xf32, #tpu.memory_space<vmem>>, %arg14: memref<16x32xf32, #tpu.memory_space<vmem>>) attributes {dimension_semantics = [#tpu.dimension_semantics<parallel>, #tpu.dimension_semantics<arbitrary>], iteration_bounds = array<i64: 2, 2>, scalar_prefetch = 0 : i64, scratch_operands = 1 : i64, tpu.core_type = #tpu.core_type<tc>, window_params = [{transform_indices = @transform_0, window_bounds = array<i64: 1, 16, 128>}, {transform_indices = @transform_1, window_bounds = array<i64: 1, 16, 32>}, {transform_indices = @transform_2, window_bounds = array<i64: 1, 1, 16>}, {pipeline_mode = #tpu.pipeline_mode<synchronous>, transform_indices = @transform_3, window_bounds = array<i64: 128, 32>}, {pipeline_mode = #tpu.pipeline_mode<synchronous>, transform_indices = @transform_4, window_bounds = array<i64: 8, 32>}, {transform_indices = @transform_5, window_bounds = array<i64: 1, 32, 96>}, {transform_indices = @transform_6, window_bounds = array<i64: 1, 4, 8, 32>}, {transform_indices = @transform_7, window_bounds = array<i64: 1, 32, 64>}, {transform_indices = @transform_8, window_bounds = array<i64: 1, 64, 32>}, {transform_indices = @transform_9, window_bounds = array<i64: 1, 16, 32>}, {transform_indices = @transform_10, window_bounds = array<i64: 1, 1, 64>}, {transform_indices = @transform_11, window_bounds = array<i64: 1, 16, 32>}]} {
    %c0_i32 = arith.constant 0 : i32
    %0 = arith.cmpi eq, %arg1, %c0_i32 : i32
    %1 = arith.extui %0 : i1 to i32
    %c0_i32_0 = arith.constant 0 : i32
    %2 = arith.cmpi ne, %1, %c0_i32_0 : i32
    scf.if %2 {
      %c0_74 = arith.constant 0 : index
      %c0_75 = arith.constant 0 : index
      %c0_76 = arith.constant 0 : index
      %207 = vector.load %arg2[%c0_74, %c0_75, %c0_76] : memref<1x16x128xbf16, #tpu.memory_space<vmem>>, vector<1x16x128xbf16>
      %208 = vector.shape_cast %207 : vector<1x16x128xbf16> to vector<16x128xbf16>
      %c0_77 = arith.constant 0 : index
      %c0_78 = arith.constant 0 : index
      %209 = vector.load %arg5[%c0_77, %c0_78] : memref<128x32xbf16, #tpu.memory_space<vmem>>, vector<128x32xbf16>
      %cst_79 = arith.constant dense<0.000000e+00> : vector<16x32xf32>
      %210 = tpu.matmul %208, %209, %cst_79 {dimension_numbers = #tpu.dot_dimension_numbers<[1], [0], [0], [1], [0, 0, 1, 1], [], []>} : vector<16x128xbf16>, vector<128x32xbf16>, vector<16x32xf32> -> vector<16x32xf32>
      %c0_80 = arith.constant 0 : index
      %c0_81 = arith.constant 0 : index
      %211 = vector.load %arg6[%c0_80, %c0_81] : memref<8x32xf32, #tpu.memory_space<vmem>>, vector<1x32xf32>
      %212 = vector.broadcast %211 : vector<1x32xf32> to vector<16x32xf32>
      %213 = arith.addf %210, %212 : vector<16x32xf32>
      %214 = arith.mulf %213, %213 : vector<16x32xf32>
      %215 = arith.mulf %213, %214 : vector<16x32xf32>
      %cst_82 = arith.constant 4.471500e-02 : f32
      %216 = vector.broadcast %cst_82 : f32 to vector<16x32xf32>
      %217 = arith.mulf %216, %215 : vector<16x32xf32>
      %218 = arith.addf %213, %217 : vector<16x32xf32>
      %cst_83 = arith.constant 0.797884583 : f32
      %219 = vector.broadcast %cst_83 : f32 to vector<16x32xf32>
      %220 = arith.mulf %219, %218 : vector<16x32xf32>
      %221 = math.tanh %220 : vector<16x32xf32>
      %cst_84 = arith.constant 1.000000e+00 : f32
      %222 = vector.broadcast %cst_84 : f32 to vector<16x32xf32>
      %223 = arith.addf %222, %221 : vector<16x32xf32>
      %cst_85 = arith.constant 5.000000e-01 : f32
      %224 = vector.broadcast %cst_85 : f32 to vector<16x32xf32>
      %225 = arith.mulf %224, %223 : vector<16x32xf32>
      %226 = arith.mulf %213, %225 : vector<16x32xf32>
      %c0_86 = arith.constant 0 : index
      %c0_87 = arith.constant 0 : index
      %c0_88 = arith.constant 0 : index
      %227 = vector.load %arg3[%c0_86, %c0_87, %c0_88] : memref<1x16x32xf32, #tpu.memory_space<vmem>>, vector<1x16x32xf32>
      %228 = vector.shape_cast %227 : vector<1x16x32xf32> to vector<16x32xf32>
      %229 = arith.addf %228, %226 : vector<16x32xf32>
      %c1_89 = arith.constant 1 : index
      %c0_90 = arith.constant 0 : index
      %230 = vector.load %arg6[%c1_89, %c0_90] : memref<8x32xf32, #tpu.memory_space<vmem>>, vector<1x32xf32>
      %c2_91 = arith.constant 2 : index
      %c0_92 = arith.constant 0 : index
      %231 = vector.load %arg6[%c2_91, %c0_92] : memref<8x32xf32, #tpu.memory_space<vmem>>, vector<1x32xf32>
      %cst_93 = arith.constant dense<0.000000e+00> : vector<16xf32>
      %232 = vector.multi_reduction <add>, %229, %cst_93 [1] : vector<16x32xf32> to vector<16xf32>
      %233 = vector.shape_cast %232 : vector<16xf32> to vector<16x1xf32>
      %cst_94 = arith.constant 3.200000e+01 : f32
      %234 = vector.broadcast %cst_94 : f32 to vector<16x1xf32>
      %235 = arith.divf %233, %234 : vector<16x1xf32>
      %236 = vector.broadcast %235 : vector<16x1xf32> to vector<16x32xf32>
      %237 = arith.subf %229, %236 : vector<16x32xf32>
      %238 = arith.mulf %237, %237 : vector<16x32xf32>
      %cst_95 = arith.constant dense<0.000000e+00> : vector<16xf32>
      %239 = vector.multi_reduction <add>, %238, %cst_95 [1] : vector<16x32xf32> to vector<16xf32>
      %240 = vector.shape_cast %239 : vector<16xf32> to vector<16x1xf32>
      %cst_96 = arith.constant 3.200000e+01 : f32
      %241 = vector.broadcast %cst_96 : f32 to vector<16x1xf32>
      %242 = arith.divf %240, %241 : vector<16x1xf32>
      %243 = vector.broadcast %235 : vector<16x1xf32> to vector<16x32xf32>
      %244 = arith.subf %229, %243 : vector<16x32xf32>
      %cst_97 = arith.constant 9.99999974E-6 : f32
      %245 = vector.broadcast %cst_97 : f32 to vector<16x1xf32>
      %246 = arith.addf %242, %245 : vector<16x1xf32>
      %247 = math.rsqrt %246 : vector<16x1xf32>
      %248 = vector.broadcast %247 : vector<16x1xf32> to vector<16x32xf32>
      %249 = arith.mulf %244, %248 : vector<16x32xf32>
      %250 = vector.broadcast %230 : vector<1x32xf32> to vector<16x32xf32>
      %251 = arith.mulf %249, %250 : vector<16x32xf32>
      %252 = vector.broadcast %231 : vector<1x32xf32> to vector<16x32xf32>
      %253 = arith.addf %251, %252 : vector<16x32xf32>
      %c0_98 = arith.constant 0 : index
      %c0_99 = arith.constant 0 : index
      %254 = vector.load %arg14[%c0_98, %c0_99] : memref<16x32xf32, #tpu.memory_space<vmem>>, vector<16x32xf32>
      tpu.vector_store %arg14[%c0_98, %c0_99], %253 {strides = array<i32>} : memref<16x32xf32, #tpu.memory_space<vmem>>, vector<16x32xf32>,
    } else {
    }
    %c0 = arith.constant 0 : index
    %c0_1 = arith.constant 0 : index
    %3 = vector.load %arg14[%c0, %c0_1] : memref<16x32xf32, #tpu.memory_space<vmem>>, vector<16x32xf32>
    %c0_2 = arith.constant 0 : index
    %c0_3 = arith.constant 0 : index
    %c0_4 = arith.constant 0 : index
    %4 = vector.load %arg4[%c0_2, %c0_3, %c0_4] : memref<1x1x16xf32, #tpu.memory_space<vmem>>, vector<1x1x16xf32>
    %5 = vector.shape_cast %4 : vector<1x1x16xf32> to vector<1x16xf32>
    %c0_5 = arith.constant 0 : index
    %c0_6 = arith.constant 0 : index
    %c0_7 = arith.constant 0 : index
    %6 = vector.load %arg11[%c0_5, %c0_6, %c0_7] : memref<1x16x32xf32, #tpu.memory_space<vmem>>, vector<1x16x32xf32>
    %7 = vector.shape_cast %6 : vector<1x16x32xf32> to vector<16x32xf32>
    %8 = arith.truncf %3 : vector<16x32xf32> to vector<16x32xbf16>
    %c0_8 = arith.constant 0 : index
    %c0_9 = arith.constant 0 : index
    %c0_10 = arith.constant 0 : index
    %9 = vector.load %arg7[%c0_8, %c0_9, %c0_10] : memref<1x32x96xbf16, #tpu.memory_space<vmem>>, vector<1x32x96xbf16>
    %10 = vector.shape_cast %9 : vector<1x32x96xbf16> to vector<32x96xbf16>
    %cst = arith.constant dense<0.000000e+00> : vector<16x96xf32>
    %11 = tpu.matmul %8, %10, %cst {dimension_numbers = #tpu.dot_dimension_numbers<[1], [0], [0], [1], [0, 0, 1, 1], [], []>} : vector<16x32xbf16>, vector<32x96xbf16>, vector<16x96xf32> -> vector<16x96xf32>
    %12 = vector.extract_strided_slice %11 {offsets = [0, 0], sizes = [16, 32], strides = [1, 1]} : vector<16x96xf32> to vector<16x32xf32>
    %13 = vector.extract_strided_slice %7 {offsets = [0, 0], sizes = [1, 32], strides = [1, 1]} : vector<16x32xf32> to vector<1x32xf32>
    %14 = vector.broadcast %13 : vector<1x32xf32> to vector<16x32xf32>
    %15 = arith.addf %12, %14 : vector<16x32xf32>
    %cst_11 = arith.constant 0.353553385 : f32
    %16 = vector.broadcast %cst_11 : f32 to vector<16x32xf32>
    %17 = arith.mulf %15, %16 : vector<16x32xf32>
    %18 = arith.truncf %17 : vector<16x32xf32> to vector<16x32xbf16>
    %19 = vector.extract_strided_slice %11 {offsets = [0, 32], sizes = [16, 32], strides = [1, 1]} : vector<16x96xf32> to vector<16x32xf32>
    %20 = vector.extract_strided_slice %7 {offsets = [1, 0], sizes = [1, 32], strides = [1, 1]} : vector<16x32xf32> to vector<1x32xf32>
    %21 = vector.broadcast %20 : vector<1x32xf32> to vector<16x32xf32>
    %22 = arith.addf %19, %21 : vector<16x32xf32>
    %23 = arith.truncf %22 : vector<16x32xf32> to vector<16x32xbf16>
    %24 = vector.extract_strided_slice %11 {offsets = [0, 64], sizes = [16, 32], strides = [1, 1]} : vector<16x96xf32> to vector<16x32xf32>
    %25 = vector.extract_strided_slice %7 {offsets = [2, 0], sizes = [1, 32], strides = [1, 1]} : vector<16x32xf32> to vector<1x32xf32>
    %26 = vector.broadcast %25 : vector<1x32xf32> to vector<16x32xf32>
    %27 = arith.addf %24, %26 : vector<16x32xf32>
    %28 = arith.truncf %27 : vector<16x32xf32> to vector<16x32xbf16>
    %cst_12 = arith.constant 0.000000e+00 : f32
    %29 = vector.broadcast %cst_12 : f32 to vector<16x32xf32>
    %30 = vector.extract_strided_slice %18 {offsets = [0, 0], sizes = [16, 8], strides = [1, 1]} : vector<16x32xbf16> to vector<16x8xbf16>
    %31 = vector.extract_strided_slice %23 {offsets = [0, 0], sizes = [16, 8], strides = [1, 1]} : vector<16x32xbf16> to vector<16x8xbf16>
    %cst_13 = arith.constant dense<0.000000e+00> : vector<16x16xf32>
    %32 = tpu.matmul %30, %31, %cst_13 {dimension_numbers = #tpu.dot_dimension_numbers<[1], [1], [0], [0], [0, 0, 1, 0], [], []>} : vector<16x8xbf16>, vector<16x8xbf16>, vector<16x16xf32> -> vector<16x16xf32>
    %33 = vector.broadcast %5 : vector<1x16xf32> to vector<16x16xf32>
    %34 = arith.addf %32, %33 : vector<16x16xf32>
    %cst_14 = arith.constant dense<0xFF800000> : vector<16xf32>
    %35 = vector.multi_reduction <maximumf>, %34, %cst_14 [1] : vector<16x16xf32> to vector<16xf32>
    %36 = vector.shape_cast %35 : vector<16xf32> to vector<16x1xf32>
    %37 = vector.broadcast %36 : vector<16x1xf32> to vector<16x16xf32>
    %38 = arith.subf %34, %37 : vector<16x16xf32>
    %39 = math.exp %38 : vector<16x16xf32>
    %cst_15 = arith.constant dense<0.000000e+00> : vector<16xf32>
    %40 = vector.multi_reduction <add>, %39, %cst_15 [1] : vector<16x16xf32> to vector<16xf32>
    %41 = vector.shape_cast %40 : vector<16xf32> to vector<16x1xf32>
    %42 = tpu.reciprocal %41 {approx = true} : vector<16x1xf32> -> vector<16x1xf32>
    %43 = vector.broadcast %42 : vector<16x1xf32> to vector<16x16xf32>
    %44 = arith.mulf %39, %43 : vector<16x16xf32>
    %45 = arith.truncf %44 : vector<16x16xf32> to vector<16x16xbf16>
    %46 = vector.extract_strided_slice %28 {offsets = [0, 0], sizes = [16, 8], strides = [1, 1]} : vector<16x32xbf16> to vector<16x8xbf16>
    %cst_16 = arith.constant dense<0.000000e+00> : vector<16x8xf32>
    %47 = tpu.matmul %45, %46, %cst_16 {dimension_numbers = #tpu.dot_dimension_numbers<[1], [0], [0], [1], [0, 0, 1, 1], [], []>} : vector<16x16xbf16>, vector<16x8xbf16>, vector<16x8xf32> -> vector<16x8xf32>
    %48 = arith.truncf %47 : vector<16x8xf32> to vector<16x8xbf16>
    %c0_17 = arith.constant 0 : index
    %c0_18 = arith.constant 0 : index
    %c0_19 = arith.constant 0 : index
    %c0_20 = arith.constant 0 : index
    %49 = vector.load %arg8[%c0_17, %c0_18, %c0_19, %c0_20] : memref<1x4x8x32xbf16, #tpu.memory_space<vmem>>, vector<1x1x8x32xbf16>
    %50 = vector.shape_cast %49 : vector<1x1x8x32xbf16> to vector<8x32xbf16>
    %cst_21 = arith.constant dense<0.000000e+00> : vector<16x32xf32>
    %51 = tpu.matmul %48, %50, %cst_21 {dimension_numbers = #tpu.dot_dimension_numbers<[1], [0], [0], [1], [0, 0, 1, 1], [], []>} : vector<16x8xbf16>, vector<8x32xbf16>, vector<16x32xf32> -> vector<16x32xf32>
    %52 = arith.addf %29, %51 : vector<16x32xf32>
    %53 = vector.extract_strided_slice %18 {offsets = [0, 8], sizes = [16, 8], strides = [1, 1]} : vector<16x32xbf16> to vector<16x8xbf16>
    %54 = vector.extract_strided_slice %23 {offsets = [0, 8], sizes = [16, 8], strides = [1, 1]} : vector<16x32xbf16> to vector<16x8xbf16>
    %cst_22 = arith.constant dense<0.000000e+00> : vector<16x16xf32>
    %55 = tpu.matmul %53, %54, %cst_22 {dimension_numbers = #tpu.dot_dimension_numbers<[1], [1], [0], [0], [0, 0, 1, 0], [], []>} : vector<16x8xbf16>, vector<16x8xbf16>, vector<16x16xf32> -> vector<16x16xf32>
    %56 = vector.broadcast %5 : vector<1x16xf32> to vector<16x16xf32>
    %57 = arith.addf %55, %56 : vector<16x16xf32>
    %cst_23 = arith.constant dense<0xFF800000> : vector<16xf32>
    %58 = vector.multi_reduction <maximumf>, %57, %cst_23 [1] : vector<16x16xf32> to vector<16xf32>
    %59 = vector.shape_cast %58 : vector<16xf32> to vector<16x1xf32>
    %60 = vector.broadcast %59 : vector<16x1xf32> to vector<16x16xf32>
    %61 = arith.subf %57, %60 : vector<16x16xf32>
    %62 = math.exp %61 : vector<16x16xf32>
    %cst_24 = arith.constant dense<0.000000e+00> : vector<16xf32>
    %63 = vector.multi_reduction <add>, %62, %cst_24 [1] : vector<16x16xf32> to vector<16xf32>
    %64 = vector.shape_cast %63 : vector<16xf32> to vector<16x1xf32>
    %65 = tpu.reciprocal %64 {approx = true} : vector<16x1xf32> -> vector<16x1xf32>
    %66 = vector.broadcast %65 : vector<16x1xf32> to vector<16x16xf32>
    %67 = arith.mulf %62, %66 : vector<16x16xf32>
    %68 = arith.truncf %67 : vector<16x16xf32> to vector<16x16xbf16>
    %69 = vector.extract_strided_slice %28 {offsets = [0, 8], sizes = [16, 8], strides = [1, 1]} : vector<16x32xbf16> to vector<16x8xbf16>
    %cst_25 = arith.constant dense<0.000000e+00> : vector<16x8xf32>
    %70 = tpu.matmul %68, %69, %cst_25 {dimension_numbers = #tpu.dot_dimension_numbers<[1], [0], [0], [1], [0, 0, 1, 1], [], []>} : vector<16x16xbf16>, vector<16x8xbf16>, vector<16x8xf32> -> vector<16x8xf32>
    %71 = arith.truncf %70 : vector<16x8xf32> to vector<16x8xbf16>
    %c0_26 = arith.constant 0 : index
    %c1 = arith.constant 1 : index
    %c0_27 = arith.constant 0 : index
    %c0_28 = arith.constant 0 : index
    %72 = vector.load %arg8[%c0_26, %c1, %c0_27, %c0_28] : memref<1x4x8x32xbf16, #tpu.memory_space<vmem>>, vector<1x1x8x32xbf16>
    %73 = vector.shape_cast %72 : vector<1x1x8x32xbf16> to vector<8x32xbf16>
    %cst_29 = arith.constant dense<0.000000e+00> : vector<16x32xf32>
    %74 = tpu.matmul %71, %73, %cst_29 {dimension_numbers = #tpu.dot_dimension_numbers<[1], [0], [0], [1], [0, 0, 1, 1], [], []>} : vector<16x8xbf16>, vector<8x32xbf16>, vector<16x32xf32> -> vector<16x32xf32>
    %75 = arith.addf %52, %74 : vector<16x32xf32>
    %76 = vector.extract_strided_slice %18 {offsets = [0, 16], sizes = [16, 8], strides = [1, 1]} : vector<16x32xbf16> to vector<16x8xbf16>
    %77 = vector.extract_strided_slice %23 {offsets = [0, 16], sizes = [16, 8], strides = [1, 1]} : vector<16x32xbf16> to vector<16x8xbf16>
    %cst_30 = arith.constant dense<0.000000e+00> : vector<16x16xf32>
    %78 = tpu.matmul %76, %77, %cst_30 {dimension_numbers = #tpu.dot_dimension_numbers<[1], [1], [0], [0], [0, 0, 1, 0], [], []>} : vector<16x8xbf16>, vector<16x8xbf16>, vector<16x16xf32> -> vector<16x16xf32>
    %79 = vector.broadcast %5 : vector<1x16xf32> to vector<16x16xf32>
    %80 = arith.addf %78, %79 : vector<16x16xf32>
    %cst_31 = arith.constant dense<0xFF800000> : vector<16xf32>
    %81 = vector.multi_reduction <maximumf>, %80, %cst_31 [1] : vector<16x16xf32> to vector<16xf32>
    %82 = vector.shape_cast %81 : vector<16xf32> to vector<16x1xf32>
    %83 = vector.broadcast %82 : vector<16x1xf32> to vector<16x16xf32>
    %84 = arith.subf %80, %83 : vector<16x16xf32>
    %85 = math.exp %84 : vector<16x16xf32>
    %cst_32 = arith.constant dense<0.000000e+00> : vector<16xf32>
    %86 = vector.multi_reduction <add>, %85, %cst_32 [1] : vector<16x16xf32> to vector<16xf32>
    %87 = vector.shape_cast %86 : vector<16xf32> to vector<16x1xf32>
    %88 = tpu.reciprocal %87 {approx = true} : vector<16x1xf32> -> vector<16x1xf32>
    %89 = vector.broadcast %88 : vector<16x1xf32> to vector<16x16xf32>
    %90 = arith.mulf %85, %89 : vector<16x16xf32>
    %91 = arith.truncf %90 : vector<16x16xf32> to vector<16x16xbf16>
    %92 = vector.extract_strided_slice %28 {offsets = [0, 16], sizes = [16, 8], strides = [1, 1]} : vector<16x32xbf16> to vector<16x8xbf16>
    %cst_33 = arith.constant dense<0.000000e+00> : vector<16x8xf32>
    %93 = tpu.matmul %91, %92, %cst_33 {dimension_numbers = #tpu.dot_dimension_numbers<[1], [0], [0], [1], [0, 0, 1, 1], [], []>} : vector<16x16xbf16>, vector<16x8xbf16>, vector<16x8xf32> -> vector<16x8xf32>
    %94 = arith.truncf %93 : vector<16x8xf32> to vector<16x8xbf16>
    %c0_34 = arith.constant 0 : index
    %c2 = arith.constant 2 : index
    %c0_35 = arith.constant 0 : index
    %c0_36 = arith.constant 0 : index
    %95 = vector.load %arg8[%c0_34, %c2, %c0_35, %c0_36] : memref<1x4x8x32xbf16, #tpu.memory_space<vmem>>, vector<1x1x8x32xbf16>
    %96 = vector.shape_cast %95 : vector<1x1x8x32xbf16> to vector<8x32xbf16>
    %cst_37 = arith.constant dense<0.000000e+00> : vector<16x32xf32>
    %97 = tpu.matmul %94, %96, %cst_37 {dimension_numbers = #tpu.dot_dimension_numbers<[1], [0], [0], [1], [0, 0, 1, 1], [], []>} : vector<16x8xbf16>, vector<8x32xbf16>, vector<16x32xf32> -> vector<16x32xf32>
    %98 = arith.addf %75, %97 : vector<16x32xf32>
    %99 = vector.extract_strided_slice %18 {offsets = [0, 24], sizes = [16, 8], strides = [1, 1]} : vector<16x32xbf16> to vector<16x8xbf16>
    %100 = vector.extract_strided_slice %23 {offsets = [0, 24], sizes = [16, 8], strides = [1, 1]} : vector<16x32xbf16> to vector<16x8xbf16>
    %cst_38 = arith.constant dense<0.000000e+00> : vector<16x16xf32>
    %101 = tpu.matmul %99, %100, %cst_38 {dimension_numbers = #tpu.dot_dimension_numbers<[1], [1], [0], [0], [0, 0, 1, 0], [], []>} : vector<16x8xbf16>, vector<16x8xbf16>, vector<16x16xf32> -> vector<16x16xf32>
    %102 = vector.broadcast %5 : vector<1x16xf32> to vector<16x16xf32>
    %103 = arith.addf %101, %102 : vector<16x16xf32>
    %cst_39 = arith.constant dense<0xFF800000> : vector<16xf32>
    %104 = vector.multi_reduction <maximumf>, %103, %cst_39 [1] : vector<16x16xf32> to vector<16xf32>
    %105 = vector.shape_cast %104 : vector<16xf32> to vector<16x1xf32>
    %106 = vector.broadcast %105 : vector<16x1xf32> to vector<16x16xf32>
    %107 = arith.subf %103, %106 : vector<16x16xf32>
    %108 = math.exp %107 : vector<16x16xf32>
    %cst_40 = arith.constant dense<0.000000e+00> : vector<16xf32>
    %109 = vector.multi_reduction <add>, %108, %cst_40 [1] : vector<16x16xf32> to vector<16xf32>
    %110 = vector.shape_cast %109 : vector<16xf32> to vector<16x1xf32>
    %111 = tpu.reciprocal %110 {approx = true} : vector<16x1xf32> -> vector<16x1xf32>
    %112 = vector.broadcast %111 : vector<16x1xf32> to vector<16x16xf32>
    %113 = arith.mulf %108, %112 : vector<16x16xf32>
    %114 = arith.truncf %113 : vector<16x16xf32> to vector<16x16xbf16>
    %115 = vector.extract_strided_slice %28 {offsets = [0, 24], sizes = [16, 8], strides = [1, 1]} : vector<16x32xbf16> to vector<16x8xbf16>
    %cst_41 = arith.constant dense<0.000000e+00> : vector<16x8xf32>
    %116 = tpu.matmul %114, %115, %cst_41 {dimension_numbers = #tpu.dot_dimension_numbers<[1], [0], [0], [1], [0, 0, 1, 1], [], []>} : vector<16x16xbf16>, vector<16x8xbf16>, vector<16x8xf32> -> vector<16x8xf32>
    %117 = arith.truncf %116 : vector<16x8xf32> to vector<16x8xbf16>
    %c0_42 = arith.constant 0 : index
    %c3 = arith.constant 3 : index
    %c0_43 = arith.constant 0 : index
    %c0_44 = arith.constant 0 : index
    %118 = vector.load %arg8[%c0_42, %c3, %c0_43, %c0_44] : memref<1x4x8x32xbf16, #tpu.memory_space<vmem>>, vector<1x1x8x32xbf16>
    %119 = vector.shape_cast %118 : vector<1x1x8x32xbf16> to vector<8x32xbf16>
    %cst_45 = arith.constant dense<0.000000e+00> : vector<16x32xf32>
    %120 = tpu.matmul %117, %119, %cst_45 {dimension_numbers = #tpu.dot_dimension_numbers<[1], [0], [0], [1], [0, 0, 1, 1], [], []>} : vector<16x8xbf16>, vector<8x32xbf16>, vector<16x32xf32> -> vector<16x32xf32>
    %121 = arith.addf %98, %120 : vector<16x32xf32>
    %122 = vector.extract_strided_slice %7 {offsets = [3, 0], sizes = [1, 32], strides = [1, 1]} : vector<16x32xf32> to vector<1x32xf32>
    %123 = vector.broadcast %122 : vector<1x32xf32> to vector<16x32xf32>
    %124 = arith.addf %121, %123 : vector<16x32xf32>
    %125 = arith.addf %3, %124 : vector<16x32xf32>
    %126 = vector.extract_strided_slice %7 {offsets = [4, 0], sizes = [1, 32], strides = [1, 1]} : vector<16x32xf32> to vector<1x32xf32>
    %127 = vector.extract_strided_slice %7 {offsets = [5, 0], sizes = [1, 32], strides = [1, 1]} : vector<16x32xf32> to vector<1x32xf32>
    %cst_46 = arith.constant dense<0.000000e+00> : vector<16xf32>
    %128 = vector.multi_reduction <add>, %125, %cst_46 [1] : vector<16x32xf32> to vector<16xf32>
    %129 = vector.shape_cast %128 : vector<16xf32> to vector<16x1xf32>
    %cst_47 = arith.constant 3.200000e+01 : f32
    %130 = vector.broadcast %cst_47 : f32 to vector<16x1xf32>
    %131 = arith.divf %129, %130 : vector<16x1xf32>
    %132 = vector.broadcast %131 : vector<16x1xf32> to vector<16x32xf32>
    %133 = arith.subf %125, %132 : vector<16x32xf32>
    %134 = arith.mulf %133, %133 : vector<16x32xf32>
    %cst_48 = arith.constant dense<0.000000e+00> : vector<16xf32>
    %135 = vector.multi_reduction <add>, %134, %cst_48 [1] : vector<16x32xf32> to vector<16xf32>
    %136 = vector.shape_cast %135 : vector<16xf32> to vector<16x1xf32>
    %cst_49 = arith.constant 3.200000e+01 : f32
    %137 = vector.broadcast %cst_49 : f32 to vector<16x1xf32>
    %138 = arith.divf %136, %137 : vector<16x1xf32>
    %139 = vector.broadcast %131 : vector<16x1xf32> to vector<16x32xf32>
    %140 = arith.subf %125, %139 : vector<16x32xf32>
    %cst_50 = arith.constant 9.99999974E-6 : f32
    %141 = vector.broadcast %cst_50 : f32 to vector<16x1xf32>
    %142 = arith.addf %138, %141 : vector<16x1xf32>
    %143 = math.rsqrt %142 : vector<16x1xf32>
    %144 = vector.broadcast %143 : vector<16x1xf32> to vector<16x32xf32>
    %145 = arith.mulf %140, %144 : vector<16x32xf32>
    %146 = vector.broadcast %126 : vector<1x32xf32> to vector<16x32xf32>
    %147 = arith.mulf %145, %146 : vector<16x32xf32>
    %148 = vector.broadcast %127 : vector<1x32xf32> to vector<16x32xf32>
    %149 = arith.addf %147, %148 : vector<16x32xf32>
    %150 = arith.truncf %149 : vector<16x32xf32> to vector<16x32xbf16>
    %c0_51 = arith.constant 0 : index
    %c0_52 = arith.constant 0 : index
    %c0_53 = arith.constant 0 : index
    %151 = vector.load %arg9[%c0_51, %c0_52, %c0_53] : memref<1x32x64xbf16, #tpu.memory_space<vmem>>, vector<1x32x64xbf16>
    %152 = vector.shape_cast %151 : vector<1x32x64xbf16> to vector<32x64xbf16>
    %cst_54 = arith.constant dense<0.000000e+00> : vector<16x64xf32>
    %153 = tpu.matmul %150, %152, %cst_54 {dimension_numbers = #tpu.dot_dimension_numbers<[1], [0], [0], [1], [0, 0, 1, 1], [], []>} : vector<16x32xbf16>, vector<32x64xbf16>, vector<16x64xf32> -> vector<16x64xf32>
    %c0_55 = arith.constant 0 : index
    %c0_56 = arith.constant 0 : index
    %c0_57 = arith.constant 0 : index
    %154 = vector.load %arg12[%c0_55, %c0_56, %c0_57] : memref<1x1x64xf32, #tpu.memory_space<vmem>>, vector<1x1x64xf32>
    %155 = vector.shape_cast %154 : vector<1x1x64xf32> to vector<1x64xf32>
    %156 = vector.broadcast %155 : vector<1x64xf32> to vector<16x64xf32>
    %157 = arith.addf %153, %156 : vector<16x64xf32>
    %158 = arith.mulf %157, %157 : vector<16x64xf32>
    %159 = arith.mulf %157, %158 : vector<16x64xf32>
    %cst_58 = arith.constant 4.471500e-02 : f32
    %160 = vector.broadcast %cst_58 : f32 to vector<16x64xf32>
    %161 = arith.mulf %160, %159 : vector<16x64xf32>
    %162 = arith.addf %157, %161 : vector<16x64xf32>
    %cst_59 = arith.constant 0.797884583 : f32
    %163 = vector.broadcast %cst_59 : f32 to vector<16x64xf32>
    %164 = arith.mulf %163, %162 : vector<16x64xf32>
    %165 = math.tanh %164 : vector<16x64xf32>
    %cst_60 = arith.constant 1.000000e+00 : f32
    %166 = vector.broadcast %cst_60 : f32 to vector<16x64xf32>
    %167 = arith.addf %166, %165 : vector<16x64xf32>
    %cst_61 = arith.constant 5.000000e-01 : f32
    %168 = vector.broadcast %cst_61 : f32 to vector<16x64xf32>
    %169 = arith.mulf %168, %167 : vector<16x64xf32>
    %170 = arith.mulf %157, %169 : vector<16x64xf32>
    %171 = arith.truncf %170 : vector<16x64xf32> to vector<16x64xbf16>
    %c0_62 = arith.constant 0 : index
    %c0_63 = arith.constant 0 : index
    %c0_64 = arith.constant 0 : index
    %172 = vector.load %arg10[%c0_62, %c0_63, %c0_64] : memref<1x64x32xbf16, #tpu.memory_space<vmem>>, vector<1x64x32xbf16>
    %173 = vector.shape_cast %172 : vector<1x64x32xbf16> to vector<64x32xbf16>
    %cst_65 = arith.constant dense<0.000000e+00> : vector<16x32xf32>
    %174 = tpu.matmul %171, %173, %cst_65 {dimension_numbers = #tpu.dot_dimension_numbers<[1], [0], [0], [1], [0, 0, 1, 1], [], []>} : vector<16x64xbf16>, vector<64x32xbf16>, vector<16x32xf32> -> vector<16x32xf32>
    %175 = vector.extract_strided_slice %7 {offsets = [6, 0], sizes = [1, 32], strides = [1, 1]} : vector<16x32xf32> to vector<1x32xf32>
    %176 = vector.broadcast %175 : vector<1x32xf32> to vector<16x32xf32>
    %177 = arith.addf %174, %176 : vector<16x32xf32>
    %178 = arith.addf %149, %177 : vector<16x32xf32>
    %179 = vector.extract_strided_slice %7 {offsets = [7, 0], sizes = [1, 32], strides = [1, 1]} : vector<16x32xf32> to vector<1x32xf32>
    %180 = vector.extract_strided_slice %7 {offsets = [8, 0], sizes = [1, 32], strides = [1, 1]} : vector<16x32xf32> to vector<1x32xf32>
    %cst_66 = arith.constant dense<0.000000e+00> : vector<16xf32>
    %181 = vector.multi_reduction <add>, %178, %cst_66 [1] : vector<16x32xf32> to vector<16xf32>
    %182 = vector.shape_cast %181 : vector<16xf32> to vector<16x1xf32>
    %cst_67 = arith.constant 3.200000e+01 : f32
    %183 = vector.broadcast %cst_67 : f32 to vector<16x1xf32>
    %184 = arith.divf %182, %183 : vector<16x1xf32>
    %185 = vector.broadcast %184 : vector<16x1xf32> to vector<16x32xf32>
    %186 = arith.subf %178, %185 : vector<16x32xf32>
    %187 = arith.mulf %186, %186 : vector<16x32xf32>
    %cst_68 = arith.constant dense<0.000000e+00> : vector<16xf32>
    %188 = vector.multi_reduction <add>, %187, %cst_68 [1] : vector<16x32xf32> to vector<16xf32>
    %189 = vector.shape_cast %188 : vector<16xf32> to vector<16x1xf32>
    %cst_69 = arith.constant 3.200000e+01 : f32
    %190 = vector.broadcast %cst_69 : f32 to vector<16x1xf32>
    %191 = arith.divf %189, %190 : vector<16x1xf32>
    %192 = vector.broadcast %184 : vector<16x1xf32> to vector<16x32xf32>
    %193 = arith.subf %178, %192 : vector<16x32xf32>
    %cst_70 = arith.constant 9.99999974E-6 : f32
    %194 = vector.broadcast %cst_70 : f32 to vector<16x1xf32>
    %195 = arith.addf %191, %194 : vector<16x1xf32>
    %196 = math.rsqrt %195 : vector<16x1xf32>
    %197 = vector.broadcast %196 : vector<16x1xf32> to vector<16x32xf32>
    %198 = arith.mulf %193, %197 : vector<16x32xf32>
    %199 = vector.broadcast %179 : vector<1x32xf32> to vector<16x32xf32>
    %200 = arith.mulf %198, %199 : vector<16x32xf32>
    %201 = vector.broadcast %180 : vector<1x32xf32> to vector<16x32xf32>
    %202 = arith.addf %200, %201 : vector<16x32xf32>
    %c0_71 = arith.constant 0 : index
    %c0_72 = arith.constant 0 : index
    %203 = vector.load %arg14[%c0_71, %c0_72] : memref<16x32xf32, #tpu.memory_space<vmem>>, vector<16x32xf32>
    tpu.vector_store %arg14[%c0_71, %c0_72], %202 {strides = array<i32>} : memref<16x32xf32, #tpu.memory_space<vmem>>, vector<16x32xf32>,
    %c1_i32 = arith.constant 1 : i32
    %204 = arith.cmpi eq, %arg1, %c1_i32 : i32
    %205 = arith.extui %204 : i1 to i32
    %c0_i32_73 = arith.constant 0 : i32
    %206 = arith.cmpi ne, %205, %c0_i32_73 : i32
    scf.if %206 {
      %c0_74 = arith.constant 0 : index
      %c0_75 = arith.constant 0 : index
      %c0_76 = arith.constant 0 : index
      %207 = vector.load %arg13[%c0_74, %c0_75, %c0_76] : memref<1x16x32xf32, #tpu.memory_space<vmem>>, vector<1x16x32xf32>
      %208 = vector.shape_cast %207 : vector<1x16x32xf32> to vector<16x32xf32>
      %209 = vector.shape_cast %202 : vector<16x32xf32> to vector<1x16x32xf32>
      tpu.vector_store %arg13[%c0_74, %c0_75, %c0_76], %209 {strides = array<i32>} : memref<1x16x32xf32, #tpu.memory_space<vmem>>, vector<1x16x32xf32>,
    } else {
    }
    return
  }
  func.func @transform_0(%arg0: i32, %arg1: i32) -> (i32, i32, i32) {
    %c0_i32 = arith.constant 0 : i32
    %c0_i32_0 = arith.constant 0 : i32
    %c0_i32_1 = arith.constant 0 : i32
    return %arg0, %c0_i32, %c0_i32_0 : i32, i32, i32
  }
  func.func @transform_1(%arg0: i32, %arg1: i32) -> (i32, i32, i32) {
    %c0_i32 = arith.constant 0 : i32
    %c0_i32_0 = arith.constant 0 : i32
    %c0_i32_1 = arith.constant 0 : i32
    return %arg0, %c0_i32, %c0_i32_0 : i32, i32, i32
  }
  func.func @transform_2(%arg0: i32, %arg1: i32) -> (i32, i32, i32) {
    %c0_i32 = arith.constant 0 : i32
    %c0_i32_0 = arith.constant 0 : i32
    %c0_i32_1 = arith.constant 0 : i32
    return %arg0, %c0_i32, %c0_i32_0 : i32, i32, i32
  }
  func.func @transform_3(%arg0: i32, %arg1: i32) -> (i32, i32) {
    %c0_i32 = arith.constant 0 : i32
    %c0_i32_0 = arith.constant 0 : i32
    %c0_i32_1 = arith.constant 0 : i32
    return %c0_i32, %c0_i32_0 : i32, i32
  }
  func.func @transform_4(%arg0: i32, %arg1: i32) -> (i32, i32) {
    %c0_i32 = arith.constant 0 : i32
    %c0_i32_0 = arith.constant 0 : i32
    %c0_i32_1 = arith.constant 0 : i32
    return %c0_i32, %c0_i32_0 : i32, i32
  }
  func.func @transform_5(%arg0: i32, %arg1: i32) -> (i32, i32, i32) {
    %c0_i32 = arith.constant 0 : i32
    %c0_i32_0 = arith.constant 0 : i32
    %c0_i32_1 = arith.constant 0 : i32
    return %arg1, %c0_i32, %c0_i32_0 : i32, i32, i32
  }
  func.func @transform_6(%arg0: i32, %arg1: i32) -> (i32, i32, i32, i32) {
    %c0_i32 = arith.constant 0 : i32
    %c0_i32_0 = arith.constant 0 : i32
    %c0_i32_1 = arith.constant 0 : i32
    %c0_i32_2 = arith.constant 0 : i32
    return %arg1, %c0_i32, %c0_i32_0, %c0_i32_1 : i32, i32, i32, i32
  }
  func.func @transform_7(%arg0: i32, %arg1: i32) -> (i32, i32, i32) {
    %c0_i32 = arith.constant 0 : i32
    %c0_i32_0 = arith.constant 0 : i32
    %c0_i32_1 = arith.constant 0 : i32
    return %arg1, %c0_i32, %c0_i32_0 : i32, i32, i32
  }
  func.func @transform_8(%arg0: i32, %arg1: i32) -> (i32, i32, i32) {
    %c0_i32 = arith.constant 0 : i32
    %c0_i32_0 = arith.constant 0 : i32
    %c0_i32_1 = arith.constant 0 : i32
    return %arg1, %c0_i32, %c0_i32_0 : i32, i32, i32
  }
  func.func @transform_9(%arg0: i32, %arg1: i32) -> (i32, i32, i32) {
    %c0_i32 = arith.constant 0 : i32
    %c0_i32_0 = arith.constant 0 : i32
    %c0_i32_1 = arith.constant 0 : i32
    return %arg1, %c0_i32, %c0_i32_0 : i32, i32, i32
  }
  func.func @transform_10(%arg0: i32, %arg1: i32) -> (i32, i32, i32) {
    %c0_i32 = arith.constant 0 : i32
    %c0_i32_0 = arith.constant 0 : i32
    %c0_i32_1 = arith.constant 0 : i32
    return %arg1, %c0_i32, %c0_i32_0 : i32, i32, i32
  }
  func.func @transform_11(%arg0: i32, %arg1: i32) -> (i32, i32, i32) {
    %c0_i32 = arith.constant 0 : i32
    %c0_i32_0 = arith.constant 0 : i32
    %c0_i32_1 = arith.constant 0 : i32
    return %arg0, %c0_i32, %c0_i32_0 : i32, i32, i32
  }
}

</mosaic_0001>

<bundles_post_ra>
// kernel: tpu_custom_call.1
= control target key start
LH: loop header
LB: loop body
LE: loop exit
PB: predicated region body
PF: predicated region fallthrough
CT: control target
= control target key end

     0   :  { %s3204_s0 = inlined_call_operand.hbm [shape: bf16[2,16,128], index: 0, kind: input, shape index: {}]   ;;  %s3205_s1 = inlined_call_operand.vmem [shape: f32[2,16,32], index: 1, kind: input, shape index: {}]   ;;  %s3206_s2 = inlined_call_operand.vmem [shape: f32[2,1,16], index: 2, kind: input, shape index: {}]   ;;  %s3207_s3 = inlined_call_operand.vmem [shape: bf16[128,32], index: 3, kind: input, shape index: {}]   ;;  %s3208_s4 = inlined_call_operand.hbm [shape: f32[8,32], index: 4, kind: input, shape index: {}]   ;;  %s3209_s5 = inlined_call_operand.vmem [shape: bf16[2,32,96], index: 5, kind: input, shape index: {}]   ;;  %s3210_s6 = inlined_call_operand.vmem [shape: bf16[2,4,8,32], index: 6, kind: input, shape index: {}]   ;;  %s3211_s7 = inlined_call_operand.vmem [shape: bf16[2,32,64], index: 7, kind: input, shape index: {}]   ;;  %s3212_s8 = inlined_call_operand.vmem [shape: bf16[2,64,32], index: 8, kind: input, shape index: {}]   ;;  %s3213_s9 = inlined_call_operand.vmem [shape: f32[2,16,32], index: 9, kind: input, shape index: {}]   ;;  %s3214_s10 = inlined_call_operand.vmem [shape: f32[2,1,64], index: 10, kind: input, shape index: {}]   ;;  %s3215_s11 = inlined_call_operand.hbm [shape: f32[2,16,32], index: 11, kind: output, shape index: {}]  }
   0x1   :  { %3235 = sst [smem:[#allocation23_spill]] %s3204_s0 }
   0x2   :  { %3236 = sst [smem:[#allocation24_spill]] %s3205_s1 }
   0x3   :  { %3237 = sst [smem:[#allocation25_spill]] %s3207_s3 }
   0x4   :  { %3238 = sst [smem:[#allocation26_spill]] %s3208_s4 }
   0x5   :  { %3239 = sst [smem:[#allocation27_spill]] %s3209_s5 }
   0x6   :  { %3240 = sst [smem:[#allocation28_spill]] %s3210_s6 }
   0x7   :  { %3241 = sst [smem:[#allocation29_spill]] %s3215_s11 }
   0x8   :  { %16 = vsyncpa [#allocation4], 0 }
   0x9   :  { %18 = vsyncpa [#allocation4 + $0x1], 0 }
   0xa   :  { %19 = vsyncpa [#allocation7], 0 }
   0xb   :  { %20 = vsyncpa [#allocation5], 0 }
   0xc   :  { %22 = vsyncpa [#allocation5 + $0x1], 0  ;;  %s2673_s17 = smov 0   ;;  %s2675_s18 = smov 0  }
   0xd   :  { %s2677_s19 = smov 0   ;;  %s2679_s20 = smov 0  }
   0xe   :  { %s2681_s21 = smov 0   ;;  %s2683_s22 = smov 0  }
   0xf   :  { %s2685_s23 = smov 0   ;;  %s2687_s24 = smov 0  }
  0x10 LB: > { %3242 = sst [smem:[#allocation12_spill]] %s2560_s17  ;;  %s2007_s25 = sadd.s32 4294967295, %s2588_s24   ;;  %s2588_s24 = sphi %s2687_s24, %s28_s24   ;;  %s2584_s23 = sphi %s2685_s23, %s3287_s23   ;;  %s2580_s22 = sphi %s2683_s22, %s3286_s22   ;;  %s2576_s21 = sphi %s2681_s21, %s3285_s21   ;;  %s2572_s20 = sphi %s2679_s20, %s3284_s20   ;;  %s2568_s19 = sphi %s2677_s19, %s3283_s19   ;;  %s2564_s18 = sphi %s2675_s18, %s3282_s18   ;;  %s2560_s17 = sphi %s2673_s17, %s3281_s17  }
  0x11   : > { %3243 = sst [smem:[#allocation13_spill]] %s2564_s18  ;;  %s2008_s26 = sadd.s32 4294967294, %s2588_s24  }
  0x12   : > { %3244 = sst [smem:[#allocation14_spill]] %s2568_s19  ;;  %p54_p0 = scmp.ne.s32.totalorder %s2568_s19, %s2564_s18 }
  0x13   : > { %3245 = sst [smem:[#allocation15_spill]] %s2580_s22  ;;  %p55_p1 = scmp.eq.s32.totalorder %s2588_s24, 0 }
  0x14   : > { %3246 = sst [smem:[#allocation16_spill]] %s2584_s23  ;;  %p60_p2 = scmp.ne.s32.totalorder %s2564_s18, %s2560_s17 }
  0x15   : > { %3247 = sst [smem:[#allocation17_spill]] %s2588_s24  ;;  %p2721_p3 = scmp.eq.s32.totalorder %s2007_s25, 0 }
  0x16   : > { %p334_p4 = scmp.eq.s32.totalorder %s2007_s25, 3  ;;  %p2725_p5 = por %p55_p1, %p54_p0 }
  0x17   : > { %s3248_s28 = scalar_select %p2721_p3, 1, 0 }
  0x18   : > { %p340_p6 = scmp.eq.s32.totalorder %s2008_s26, 3  ;;  %p2731_p7 = por %p2721_p3, %p60_p2 }
  0x19   : > { %p2735_p8 = por %p334_p4, %p54_p0  ;;  %p2009_p10 = scmp.ge.s32.totalorder %s2588_s24, 1 }
  0x1a   : > { %s3250_s30 = scalar_select %p2731_p7, 1, 0 }
  0x1b   : > { %s3251_s12 = scalar_select %p2735_p8, 1, 0 }
  0x1c   : > { %p2739_p9 = por %p340_p6, %p60_p2  ;;  %p347_p11 = scmp.lt.s32.totalorder %s2588_s24, 5 }
  0x1d   : > { %3252 = sst [smem:[#allocation18_spill]] %s3251_s12  ;;  %s2590_s15 = smov [#allocation6]  }
  0x1e   : > { %s3253_s13 = scalar_select %p2739_p9, 1, 0 }
  0x1f   : > { %p2745_p12 = pnand %p2009_p10, %p347_p11  ;;  %s363_s16 = sshll.u32 %s2590_s15, 4  ;;  %s364_s16 = int_to_ptr.vmem [resolvable:$true] %s363_s16 }
  0x20   : > { %3254 = sst [smem:[#allocation19_spill]] %s3253_s13  ;;  %p2271_p13 = scmp.lt.s32.totalorder %s2588_s24, 4 }
  0x21   : > { %s3255_s14 = scalar_select %p2745_p12, 1, 0 }
  0x22   : > { %p2258_p0 = pneg %p2745_p12  ;;  %p2754_p1 = pnand %p2271_p13, %p2725_p5 }
  0x23   : > { %s37_s27 = sadd.s32 1, %s2580_s22  ;;  %s3258_s4 = sld [smem:[#allocation26_spill]] }
  0x24   : > { %s3256_s25 = scalar_select %p2754_p1, 1, 0 }
  0x25   : > { %p2760_p2 = pnand %p2258_p0, %p2721_p3 }
  0x27   : > { %p2430_p5 = pneg %p2760_p2 }
  0x29   : > { %s2428_s15 = scalar_lea.hbm %s3258_s4, 128 }
  0x2a   : > { %p2429_p4 = scmp.ne.s32.totalorder %s3258_s4, %s2428_s15  ;;  %p2435_p11 = scmp.lt.u32.totalorder %s2428_s15, %s3258_s4 }
  0x2c   : > { %p2431_p6 = pnand %p2430_p5, %p2429_p4 }
  0x2e   : > { %p2432_p10 = pneg %p2431_p6 }
  0x30   : > { %p2437_p13 = pnand %p2435_p11, %p2432_p10 }
  0x32   : > { %2440 = shalt.err (!%p2437_p13)
}
  0x33   : > { %s2441_s3 = scalar_lea.vmem %s364_s16, 128  ;;  %p2449_p3 = scmp.lt.s32.totalorder %s364_s16, %s364_s16 }
  0x34   : > { %p2442_p0 = scmp.ne.s32.totalorder %s364_s16, %s2441_s3  ;;  %p2450_p7 = scmp.lt.s32.totalorder %s2441_s3, %s2441_s3 }
  0x36   : > { %p2444_p9 = pnand %p2442_p0, %p2430_p5  ;;  %p2451_p12 = por %p2450_p7, %p2449_p3 }
  0x38   : > { %p2445_p8 = pneg %p2444_p9 }
  0x3a   : > { %p2452_p1 = pnand %p2451_p12, %p2445_p8 }
  0x3c   : > { %2455 = shalt.err (!%p2452_p1)
}
  0x3d   : > { %2261 = dma.hbm_to_vmem [thread:$0]  (!%p2760_p2), %s3258_s4, 128, %s364_s16, [#allocation7]  }
  0x3e   : > { %p38_p4 = scmp.ge.s32.totalorder %s37_s27, 2  ;;  %s40_s24 = sadd.s32 1, %s2584_s23 }
  0x3f   : > { %s374_s12 = sand.u32 1, %s2568_s19   ;;  %s2078_s13 = sshll.u32 %s2584_s23, 7 }
  0x40   : > { %s3289_s27 = smov (%p38_p4, %s37_s27), 0  ;;  %s3291_s24 = smov (!%p38_p4, %s40_s24), %s2584_s23 }
  0x41   : > { %3259 = sst [smem:[#allocation20_spill]] %s3289_s27  ;;  %s2012_s3 = sshll.u32 %s374_s12, 3 }
  0x42   : > { %p42_p3 = scmp.ge.s32.totalorder %s3291_s24, 2  ;;  %s3260_s0 = sld [smem:[#allocation23_spill]] }
  0x43   : > { %s378_s16 = scalar_lea.vmem [#allocation3], %s2012_s3  ;;  %s2802_s27 = scalar_lea.sflag [#allocation4], %s374_s12 }
  0x44   : > { %s385_s11 = sshll.u32 %s378_s16, 4  ;;  %s3293_s24 = smov (%p42_p3, %s3291_s24), 0  ;;  %s2794_s11 = int_to_ptr.vmem [resolvable:$true] %s385_s11 }
  0x45   : > { %3261 = sst [smem:[#allocation21_spill]] %s3293_s24  ;;  %s44_s17 = ssub.s32 %s2584_s23, %s3293_s24 }
  0x46   : > { %p2798_p7 = scmp.eq.s32.totalorder %s44_s17, 0  ;;  %p3263_p9 = scmp.ne.s32.totalorder %s3256_s25, 0 }
  0x48   : > { %s2790_s29 = scalar_lea.hbm %s3260_s0, %s2078_s13  ;;  %p2458_p12 = pneg %p3263_p9 }
  0x49   : > { %s2456_s13 = scalar_lea.hbm %s2790_s29, 128  ;;  %s2461_s15 = scalar_lea.hbm %s3260_s0, 256 }
  0x4a   : > { %p2457_p8 = scmp.ne.s32.totalorder %s2790_s29, %s2456_s13  ;;  %p2462_p5 = scmp.lt.u32.totalorder %s2790_s29, %s3260_s0 }
  0x4b   : > { %p2463_p6 = scmp.lt.u32.totalorder %s2461_s15, %s2456_s13  ;;  %p2465_p11 = scmp.lt.u32.totalorder %s2456_s13, %s2790_s29 }
  0x4c   : > { %p2459_p1 = pnand %p2458_p12, %p2457_p8 }
  0x4d   : > { %p2464_p10 = por %p2463_p6, %p2462_p5 }
  0x4e   : > { %p2460_p2 = pneg %p2459_p1 }
  0x4f   : > { %p2466_p13 = por %p2465_p11, %p2464_p10 }
  0x51   : > { %p2467_p0 = pnand %p2466_p13, %p2460_p2 }
  0x53   : > { %2470 = shalt.err (!%p2467_p0)
}
  0x54   : > { %s2471_s12 = scalar_lea.vmem %s2794_s11, 128  ;;  %s2591_s17 = smov [#allocation3]  }
  0x55   : > { %p2472_p4 = scmp.ne.s32.totalorder %s2794_s11, %s2471_s12  ;;  %s2476_s3 = sshll.u32 %s2591_s17, 4  ;;  %s2477_s3 = int_to_ptr.vmem [resolvable:$false] %s2476_s3 }
  0x56   : > { %s2478_s24 = scalar_lea.vmem %s2477_s3, 256  ;;  %p2479_p1 = scmp.lt.s32.totalorder %s2794_s11, %s2477_s3 }
  0x57   : > { %p2474_p3 = pnand %p2472_p4, %p2458_p12  ;;  %p2480_p5 = scmp.lt.s32.totalorder %s2478_s24, %s2471_s12 }
  0x59   : > { %p2475_p8 = pneg %p2474_p3  ;;  %p2481_p6 = por %p2480_p5, %p2479_p1 }
  0x5b   : > { %p2482_p10 = pnand %p2481_p6, %p2475_p8 }
  0x5d   : > { %2485 = shalt.err (!%p2482_p10)
}
  0x5e   : > { %s2592_s13 = smov 64   ;;  %s2593_s26 = smov 4  }
  0x5f   : > { %2265 = dma.hbm_to_vmem [thread:$0]  (!%p3263_p9), %s2790_s29, 128, %s2794_s11, %s2802_s27, %s2592_s13, %s2592_s13, %s2593_s26  }
  0x60   : > { %s3264_s15 = sadd.s32 1, %s2568_s19  ;;  %p3266_p12 = scmp.ne.s32.totalorder %s3255_s14, 0 }
  0x61   : > { %s2835_s16 = scalar_select %p2798_p7, %s2568_s19, %s3264_s15  }
  0x62   : > { %457 = sbr.rel (%p3266_p12) target bundleno = 4452 (0x1164), region = 64  ;;  %s2840_s12 = sand.u32 (!%p3266_p12), 1, %s2564_s18  }
  0x63   : > { %3265 = sst [smem:[#allocation22_spill]] %s2835_s16  ;;  %s2016_s17 = sshll.u32 (!%p3266_p12), %s2840_s12, 3 }
  0x64   : > { %s460_s3 = scalar_lea.sflag (!%p3266_p12), [#allocation4], %s2840_s12  ;;  %s2844_s24 = scalar_lea.vmem (!%p3266_p12), [#allocation3], %s2016_s17 }
  0x65   : > { %p3267_p2 = scmp.ne.s32.totalorder (!%p3266_p12), %s3250_s30, 0 }
  0x69   : > { %2547 = dma.done.wait (%p3267_p2), %s460_s3, 128  }
  0x6a   : > { %2549 = vsyncadd (%p3267_p2), %s460_s3, 4294967168  ;;  %p3268_p7 = scmp.ne.s32.totalorder %s3248_s28, 0 }
  0x6c   : > { %2551 = dma.done.wait (%p3268_p7), [#allocation7], 128  }
  0x6d   : > { %2553 = vsyncadd (%p3268_p7), [#allocation7], 4294967168  ;;  %s2018_s4 = sshll.u32 %s2840_s12, 4  ;;  %p542_p9 = scmp.lt.s32.totalorder %s2576_s21, 1 }
  0x6e   : > { %p550_p11 = scmp.lt.s32.totalorder %s2572_s20, 1  ;;  %s3269_s1 = sld [smem:[#allocation24_spill]] }
  0x6f   : > { %s2858_s27 = scalar_select %p542_p9, %s2576_s21, 1 }
  0x70   : > { %s2861_s30 = scalar_select %p550_p11, %s2572_s20, 1 }
  0x71   : > { %s2079_s14 = sshll.u32 %s2858_s27, 4  ;;  %s3270_s5 = sld [smem:[#allocation27_spill]] }
  0x72   : > { %s2080_s15 = sshll.u32 %s2861_s30, 4  ;;  %s3271_s6 = sld [smem:[#allocation28_spill]] }
  0x73   : > { %s2887_s28 = scalar_lea.vmem %s3211_s7, %s2080_s15  ;;  %s2083_s25 = sshll.u32 %s2861_s30, 5 }
  0x74   : > { %s2871_s26 = scalar_lea.vmem %s3269_s1, %s2079_s14  ;;  %s2893_s13 = scalar_lea.vmem %s3212_s8, %s2083_s25 }
  0x75   : > { %s2898_s3 = scalar_lea.vmem %s3213_s9, %s2080_s15  ;;  %s577_s23 = scalar_lea.vmem %s3214_s10, %s2861_s30 }
  0x76   : > { %p2031_p13 = scmp.ne.s32.totalorder %s2572_s20, 0 }
  0x77   : > { %s2877_s0 = scalar_lea.vmem %s3270_s5, %s2080_s15  ;;  %s2904_s5 = scalar_lea.vmem [#allocation8], %s2018_s4  ;;  %v2594_v1 = vmov (!%p2031_p13), 0.0   ;;  %vm2595_vm0 = vmmov (!%p2031_p13), 0   ;;  %v2367_v9 = vld [vmem:[%s2844_s24] sm:$0xff] (!%p2031_p13)   ;;  %v2032_v10 = vld [vmem:[#allocation6] ss:$0 sm:$0xff] (!%p2031_p13) }
  0x78   : > { %s2882_s16 = scalar_lea.vmem %s3271_s6, %s2080_s15  ;;  %582 = sbr.rel (%p2031_p13) target bundleno = 710 (0x2c6), region = 76  ;;  %2130 = vmatprep.subr.bf16.mxu0 (!%p2031_p13), %v2594_v1  ;;  %2146 = vmatprep.mubr.msk.bf16.mxu0 (!%p2031_p13), %vm2595_vm0, %v2594_v1  ;;  %v711_v23 = vld [vmem:[%s2871_s26] sm:$0xff] (!%p2031_p13)  ;;  %vm717_vm1 = vcmask (!%p2031_p13), 261120   ;;  %v712_v27 = vld [vmem:[%s2871_s26 + $0x8] sm:$0xff] (!%p2031_p13) }
  0x79   : > { %s3272_s6 = sld [smem:[#allocation25_spill]] (!%p2031_p13)  ;;  %v2042_v50 = vld [vmem:[#allocation6 + $0x1] ss:$0 sm:$0xff] (!%p2031_p13)  ;;  %v2043_v52 = vld [vmem:[#allocation6 + $0x2] ss:$0 sm:$0xff] (!%p2031_p13) }
  0x7f   : > { %v2359_v0 = vld [vmem:[%s3272_s6] sm:$0xff]   ;;  %v2360_v2 = vld [vmem:[%s3272_s6 + $0x8] sm:$0xff]   ;;  %v2361_v3 = vld [vmem:[%s3272_s6 + $0x10] sm:$0xff]  }
  0x80   : > { %2131 = vmatpush3.bf16.msra.mxu0 %v2359_v0  ;;  %v2362_v4 = vld [vmem:[%s3272_s6 + $0x18] sm:$0xff]   ;;  %v2363_v5 = vld [vmem:[%s3272_s6 + $0x20] sm:$0xff]   ;;  %v2364_v6 = vld [vmem:[%s3272_s6 + $0x28] sm:$0xff]  }
  0x81   : > { %2132 = vmatprep.subr.bf16.mxu0 %v2594_v1  ;;  %v2365_v7 = vld [vmem:[%s3272_s6 + $0x30] sm:$0xff]   ;;  %v2366_v8 = vld [vmem:[%s3272_s6 + $0x38] sm:$0xff]  }
  0x84   : > { %2133 = vmatpush3.bf16.msra.mxu0 %v2360_v2 }
  0x85   : > { %2134 = vmatprep.subr.bf16.mxu0 %v2594_v1 }
  0x88   : > { %2135 = vmatpush3.bf16.msra.mxu0 %v2361_v3 }
  0x89   : > { %2136 = vmatprep.subr.bf16.mxu0 %v2594_v1 }
  0x8c   : > { %2137 = vmatpush3.bf16.msra.mxu0 %v2362_v4 }
  0x8d   : > { %2138 = vmatprep.subr.bf16.mxu0 %v2594_v1 }
  0x90   : > { %2139 = vmatpush3.bf16.msra.mxu0 %v2363_v5 }
  0x91   : > { %2140 = vmatprep.subr.bf16.mxu0 %v2594_v1 }
  0x94   : > { %2141 = vmatpush3.bf16.msra.mxu0 %v2364_v6 }
  0x95   : > { %2142 = vmatprep.subr.bf16.mxu0 %v2594_v1 }
  0x98   : > { %2143 = vmatpush3.bf16.msra.mxu0 %v2365_v7 }
  0x99   : > { %2144 = vmatprep.subr.bf16.mxu0 %v2594_v1 }
  0x9c   : > { %2145 = vmatpush3.bf16.msra.mxu0 %v2366_v8 }
  0x9f   : > { %2147 = vmatmul.mubr.bf16.vlgmr.msra.gmra.mrb[0].mxu0 %v2367_v9 }
 0x172   : > { %v694_v11 = vpop.f32.mrb[0].mxu0 }
 0x173   : > { %v695_v12 = vadd.f32 %v2032_v10, %v694_v11  ;;  %v2148_v13 = vpop.f32.mrb[1].mxu0 }
 0x174   : > { %v697_v14 = vpop.f32.mrb[2].mxu0 }
 0x175   : > { %v703_v15 = vmul.f32 0.70710677, %v695_v12  ;;  %v698_v16 = vadd.f32 %v2032_v10, %v697_v14  ;;  %v2149_v17 = vpop.f32.mrb[3].mxu0  ;;  %v701_v20 = vmul.f32 0.5, %v695_v12 }
 0x177   : > { %2368 = verf.f32 %v703_v15  ;;  %v704_v18 = vmul.f32 0.70710677, %v698_v16  ;;  %v702_v24 = vmul.f32 0.5, %v698_v16 }
 0x179   : > { %2370 = verf.f32 %v704_v18 }
 0x181   : > { %v2369_v19 = vpop.eup %2368 }
 0x182   : > { %v707_v21 = vadd.f32 1.0, %v2369_v19 }
 0x183   : > { %v2371_v22 = vpop.eup %2370 }
 0x184   : > { %v708_v25 = vadd.f32 1.0, %v2371_v22  ;;  %v709_v26 = vmul.f32 %v707_v21, %v701_v20 }
 0x186   : > { %v713_v28 = vadd.f32 %v711_v23, %v709_v26  ;;  %v710_v29 = vmul.f32 %v708_v25, %v702_v24 }
 0x188   : > { %v718_v30 = vsel %vm717_vm1, %v713_v28, 0.0  ;;  %v714_v31 = vadd.f32 %v712_v27, %v710_v29 }
 0x189   : > { %719 = vadd.xlane.f32.xlu0 %v718_v30 }
 0x18a   : > { %v721_v32 = vsel %vm717_vm1, %v714_v31, 0.0 }
 0x18d   : > { %722 = vadd.xlane.f32.xlu0 %v721_v32 }
 0x216   : > { %v720_v33 = vpop.xlane.xlu0 %719 }
 0x217   : > { %v725_v34 = vmul.f32 0.03125, %v720_v33 }
 0x219   : > { %v727_v35 = vsub.f32 %v713_v28, %v725_v34 }
 0x21a   : > { %v723_v36 = vpop.xlane.xlu0 %722 }
 0x21b   : > { %v726_v37 = vmul.f32 0.03125, %v723_v36  ;;  %v729_v38 = vmul.f32 %v727_v35, %v727_v35 }
 0x21d   : > { %v728_v39 = vsub.f32 %v714_v31, %v726_v37  ;;  %v731_v40 = vsel %vm717_vm1, %v729_v38, 0.0 }
 0x21e   : > { %732 = vadd.xlane.f32.xlu1 %v731_v40 }
 0x21f   : > { %v730_v41 = vmul.f32 %v728_v39, %v728_v39 }
 0x221   : > { %v734_v42 = vsel %vm717_vm1, %v730_v41, 0.0 }
 0x222   : > { %735 = vadd.xlane.f32.xlu1 %v734_v42 }
 0x2ab   : > { %v733_v43 = vpop.xlane.xlu1 %732 }
 0x2ac   : > { %v737_v44 = vmul.f32 0.03125, %v733_v43 }
 0x2ae   : > { %v739_v45 = vadd.f32 1e-05, %v737_v44 }
 0x2af   : > { %v736_v46 = vpop.xlane.xlu1 %735 }
 0x2b0   : > { %2372 = vrsqrt.f32 %v739_v45  ;;  %v738_v47 = vmul.f32 0.03125, %v736_v46 }
 0x2b2   : > { %v740_v48 = vadd.f32 1e-05, %v738_v47 }
 0x2b4   : > { %2374 = vrsqrt.f32 %v740_v48 }
 0x2ba   : > { %v2373_v49 = vpop.eup %2372 }
 0x2bb   : > { %v743_v51 = vmul.f32 %v2373_v49, %v727_v35 }
 0x2bd   : > { %v749_v53 = vmul.f32 %v2042_v50, %v743_v51 }
 0x2be   : > { %v2375_v54 = vpop.eup %2374 }
 0x2bf   : > { %v755_v55 = vadd.f32 %v2043_v52, %v749_v53  ;;  %v744_v56 = vmul.f32 %v2375_v54, %v728_v39 }
 0x2c1   : > { %757 = vst.msk [vmem:[#allocation2] sm:$0xff] %vm717_vm1, %v755_v55  ;;  %v750_v57 = vmul.f32 %v2042_v50, %v744_v56 }
 0x2c3   : > { %v756_v58 = vadd.f32 %v2043_v52, %v750_v57 }
 0x2c5   : > { %758 = vst.msk [vmem:[#allocation2 + $0x8] sm:$0xff] %vm717_vm1, %v756_v58 }
 0x2c6 PF: > { %v2376_v59 = vld [vmem:[%s2877_s0] sm:$0xff]   ;;  %v826_v60 = vlaneseq  ;;  %v2596_v61 = vmov 0.0   ;;  %v2377_v62 = vld [vmem:[%s2877_s0 + $0x8] sm:$0xff]   ;;  %vm2597_vm2 = vmmov 0   ;;  %vm781_vm3 = vcmask 261120   ;;  %s2598_s0 = smov 32   ;;  %s3273_s14 = scalar_lea.vmem %s3206_s2, %s2858_s27 }
 0x2c7   : > { %2150 = vmatprep.subr.bf16.mxu1 %v2596_v61  ;;  %2164 = vmatprep.subr.bf16.mxu0 %v2596_v61  ;;  %v2954_v2 = vld [vmem:[%s2898_s3] sm:$0xff]  ;;  %s2599_s24 = smov 88   ;;  %s2600_s26 = smov 96   ;;  %vm866_vm4 = vcmask 64512   ;;  %vm914_vm5 = vcmask 130048   ;;  %vm1116_vm6 = vcmask 1043456  }
 0x2c8   : > { %2151 = vmatpush3.bf16.msra.mxu1 %v2376_v59  ;;  %2154 = vmatprep.mubr.msk.bf16.mxu1 %vm2597_vm2, %v2596_v61  ;;  %v2946_v63 = vld [vmem:[#allocation2] sm:$0xff]  ;;  %v2950_v1 = vshrl.u32 %v826_v60, 7  ;;  %s2601_s4 = smov 120   ;;  %s2602_s27 = smov 64   ;;  %vm1716_vm7 = vcmask 523264  }
 0x2c9   : > { %2152 = vmatprep.subr.bf16.mxu1 %v2596_v61  ;;  %2166 = vmatprep.mubr.msk.bf16.mxu0 %vm2597_vm2, %v2596_v61  ;;  %v3001_v26 = vld [vmem:[%s3273_s14] ss:$0 sm:$0xff]  ;;  %s2603_s17 = smov 80   ;;  %s2604_s22 = smov 112  }
 0x2ca   : > { %v837_v3 = vsub.s32 1, %v2950_v1  ;;  %v828_v6 = vsub.s32 0, %v2950_v1  ;;  %v848_v43 = vsub.s32 2, %v2950_v1  ;;  %s2605_s18 = smov 56   ;;  %s2606_s19 = smov 48  }
 0x2cb   : > { %s2607_s25 = smov 72   ;;  %s2608_s29 = smov 104  }
 0x2cc   : > { %v2948_v0 = vld [vmem:[#allocation2 + $0x8] sm:$0xff]  ;;  %2153 = vmatpush3.bf16.msra.mxu1 %v2377_v62  ;;  %v838_v5 = vrot.slane %v2954_v2, %v837_v3  ;;  %v829_v7 = vrot.slane %v2954_v2, %v828_v6  ;;  %v849_v44 = vrot.slane %v2954_v2, %v848_v43  ;;  %s2609_s1 = smov 40   ;;  %p2072_p0 = scmp.ne.s32.totalorder %s2572_s20, 1 }
 0x2cd   : > { %v764_v4 = vpack.c.bf16 %v2948_v0, %v2946_v63  ;;  %2158 = vmatprep.subr.bf16.mxu1 %v2596_v61 }
 0x2ce   : > { %840 = vrot.lane.b32.xlu0 %v838_v5, %s2598_s0 }
 0x2cf   : > { %2155 = vmatmul.mubr.msk.bf16.vlgmr.msra.gmra.mrb[0].mxu1 %vm781_vm3, %v764_v4 }
 0x2d0   : > { %2160 = vmatprep.mubr.msk.bf16.mxu1 %vm2597_vm2, %v2596_v61 }
 0x340   : > { %v841_v8 = vpop.permute.xlu0 %840 }
 0x3a2   : > { %v2970_v9 = vpop.f32.mrb[0].mxu1 }
 0x3a3   : > { %v830_v10 = vadd.f32 %v829_v7, %v2970_v9  ;;  %v2156_v11 = vpop.f32.mrb[1].mxu1  ;;  %v843_v13 = vadd.f32 %v841_v8, %v2970_v9 }
 0x3a4   : > { %v2973_v12 = vpop.f32.mrb[2].mxu1 }
 0x3a5   : > { %v831_v14 = vadd.f32 %v829_v7, %v2973_v12  ;;  %v844_v15 = vadd.f32 %v841_v8, %v2973_v12  ;;  %v2157_v16 = vpop.f32.mrb[3].mxu1  ;;  %v832_v17 = vmul.f32 0.35355338, %v830_v10 }
 0x3a7   : > { %v833_v18 = vmul.f32 0.35355338, %v831_v14  ;;  %v2978_v19 = vpack.c.bf16 %v844_v15, %v843_v13 }
 0x3a9   : > { %v2980_v20 = vpack.c.bf16 %v833_v18, %v832_v17  ;;  %991 = vrot.lane.b32.xlu1 %v2978_v19, %s2599_s24  ;;  %864 = vrot.lane.b32.xlu0 %v2978_v19, %s2600_s26 }
 0x3ad   : > { %989 = vrot.lane.b32.xlu1 %v2980_v20, %s2601_s4 }
 0x41b   : > { %v865_v21 = vpop.permute.xlu0 %864  ;;  %v992_v23 = vpop.permute.xlu1 %991 }
 0x41c   : > { %v871_v22 = vsel %vm866_vm4, %v865_v21, 0  ;;  %v997_v24 = vsel %vm866_vm4, %v992_v23, 0 }
 0x41d   : > { %2159 = vmatpush3.bf16.xpose.msra.mxu1 %v871_v22 }
 0x41e   : > { %2170 = vmatprep.subr.bf16.mxu1 %v2596_v61 }
 0x41f   : > { %v990_v25 = vpop.permute.xlu1 %989 }
 0x424   : > { %2161 = vmatmul.mubr.msk.bf16.vlgmr.msra.gmra.mrb[4].mxu1 %vm866_vm4, %v2980_v20 }
 0x425   : > { %2171 = vmatpush3.bf16.xpose.msra.mxu1 %v997_v24  ;;  %2172 = vmatprep.mubr.msk.bf16.mxu1 %vm2597_vm2, %v2596_v61 }
 0x426   : > { %2182 = vmatprep.subr.bf16.mxu1 %v2596_v61 }
 0x42c   : > { %2173 = vmatmul.mubr.msk.bf16.vlgmr.msra.gmra.mrb[8].mxu1 %vm866_vm4, %v990_v25 }
 0x42d   : > { %2184 = vmatprep.mubr.msk.bf16.mxu1 %vm2597_vm2, %v2596_v61 }
 0x4f7   : > { %v907_v27 = vpop.f32.mrb[4].mxu1 }
 0x4f8   : > { %v908_v28 = vadd.f32 %v3001_v26, %v907_v27  ;;  %v2162_v29 = vpop.f32.mrb[5].mxu1 }
 0x4f9   : > { %v910_v30 = vpop.f32.mrb[6].mxu1 }
 0x4fa   : > { %v911_v31 = vadd.f32 %v3001_v26, %v910_v30  ;;  %v2163_v32 = vpop.f32.mrb[7].mxu1  ;;  %v915_v33 = vsel %vm914_vm5, %v908_v28, -inf  ;;  %v987_v30 = vld [vmem:[%s2882_s16] sm:$0xf] }
 0x4fb   : > { %916 = vmax.xlane.f32.xlu0 %v915_v33  ;;  %v2052_v32 = vld [vmem:[%s2882_s16 + $0x4] sm:$0xf] }
 0x4fc   : > { %v918_v34 = vsel %vm914_vm5, %v911_v31, -inf  ;;  %v1118_v33 = vsel %vm1116_vm6, %v2052_v32, 0 }
 0x4fd   : > { %919 = vmax.xlane.f32.xlu1 %v918_v34  ;;  %2183 = vmatpush3.bf16.msra.mxu1 %v1118_v33 }
 0x4fe   : > { %2194 = vmatprep.subr.bf16.mxu1 %v2596_v61 }
 0x4ff   : > { %v1033_v35 = vpop.f32.mrb[8].mxu1 }
 0x500   : > { %v1034_v36 = vadd.f32 %v3001_v26, %v1033_v35  ;;  %v2174_v37 = vpop.f32.mrb[9].mxu1 }
 0x501   : > { %v1036_v38 = vpop.f32.mrb[10].mxu1 }
 0x502   : > { %v1037_v39 = vadd.f32 %v3001_v26, %v1036_v38  ;;  %v2175_v40 = vpop.f32.mrb[11].mxu1  ;;  %v1040_v41 = vsel %vm914_vm5, %v1034_v36, -inf }
 0x503   : > { %1041 = vmax.xlane.f32.xlu0 %v1040_v41 }
 0x504   : > { %v1043_v42 = vsel %vm914_vm5, %v1037_v39, -inf }
 0x507   : > { %1044 = vmax.xlane.f32.xlu0 %v1043_v42 }
 0x50e   : > { %851 = vrot.lane.b32.xlu1 %v849_v44, %s2602_s27 }
 0x588   : > { %v917_v45 = vpop.xlane.xlu0 %916 }
 0x589   : > { %v921_v46 = vsub.f32 %v908_v28, %v917_v45 }
 0x58a   : > { %v920_v47 = vpop.xlane.xlu1 %919 }
 0x58b   : > { %v923_v48 = vmul.f32 1.442695, %v921_v46  ;;  %v922_v49 = vsub.f32 %v911_v31, %v920_v47  ;;  %v1165_v31 = vsel %vm1116_vm6, %v987_v30, 0 }
 0x58d   : > { %2384 = vpow2.f32 %v923_v48  ;;  %v925_v50 = vmul.f32 1.442695, %v922_v49 }
 0x58e   : > { %v852_v51 = vpop.permute.xlu1 %851 }
 0x58f   : > { %2386 = vpow2.f32 %v925_v50  ;;  %v854_v52 = vadd.f32 %v852_v51, %v2970_v9  ;;  %v855_v53 = vadd.f32 %v852_v51, %v2973_v12 }
 0x590   : > { %v1042_v54 = vpop.xlane.xlu0 %1041 }
 0x591   : > { %v3015_v55 = vpack.c.bf16 %v855_v53, %v854_v52  ;;  %v1046_v56 = vsub.f32 %v1034_v36, %v1042_v54 }
 0x593   : > { %v1048_v57 = vmul.f32 1.442695, %v1046_v56  ;;  %939 = vrot.lane.b32.xlu1 %v3015_v55, %s2602_s27 }
 0x594   : > { %v1045_v58 = vpop.xlane.xlu0 %1044 }
 0x595   : > { %2388 = vpow2.f32 %v1048_v57  ;;  %v1047_v59 = vsub.f32 %v1037_v39, %v1045_v58 }
 0x597   : > { %v2385_v60 = vpop.eup %2384  ;;  %v1050_v62 = vmul.f32 1.442695, %v1047_v59  ;;  %1210 = vrot.lane.b32.xlu1 %v2978_v19, %s2603_s17 }
 0x598   : > { %v927_v3 = vsel %vm914_vm5, %v2385_v60, 0.0 }
 0x599   : > { %v2387_v4 = vpop.eup %2386  ;;  %2390 = vpow2.f32 %v1050_v62  ;;  %928 = vadd.xlane.f32.xlu0 %v927_v3 }
 0x59a   : > { %v930_v5 = vsel %vm914_vm5, %v2387_v4, 0.0 }
 0x59b   : > { %1208 = vrot.lane.b32.xlu1 %v2980_v20, %s2604_s22 }
 0x59d   : > { %931 = vadd.xlane.f32.xlu0 %v930_v5 }
 0x59f   : > { %v2389_v7 = vpop.eup %2388 }
 0x5a0   : > { %v1052_v8 = vsel %vm914_vm5, %v2389_v7, 0.0 }
 0x5a1   : > { %1053 = vadd.xlane.f32.xlu0 %v1052_v8 }
 0x5a3   : > { %v2391_v9 = vpop.eup %2390 }
 0x5a4   : > { %v1055_v10 = vsel %vm914_vm5, %v2391_v9, 0.0 }
 0x5a5   : > { %1056 = vadd.xlane.f32.xlu0 %v1055_v10 }
 0x5bb   : > { %1063 = vrot.lane.b32.xlu0 %v3015_v55, %s2605_s18 }
 0x605   : > { %v940_v11 = vpop.permute.xlu1 %939 }
 0x606   : > { %2165 = vmatpush3.bf16.msra.mxu0 %v940_v11 }
 0x607   : > { %2176 = vmatprep.subr.bf16.mxu0 %v2596_v61 }
 0x609   : > { %v1211_v41 = vpop.permute.xlu1 %1210 }
 0x60a   : > { %v1216_v45 = vsel %vm866_vm4, %v1211_v41, 0 }
 0x60d   : > { %v1209_v46 = vpop.permute.xlu1 %1208 }
 0x626   : > { %v929_v12 = vpop.xlane.xlu0 %928 }
 0x627   : > { %2392 = vrcp.f32 %v929_v12 }
 0x62a   : > { %v932_v13 = vpop.xlane.xlu0 %931 }
 0x62b   : > { %2394 = vrcp.f32 %v932_v13 }
 0x62e   : > { %v1054_v14 = vpop.xlane.xlu0 %1053 }
 0x62f   : > { %2396 = vrcp.f32 %v1054_v14 }
 0x631   : > { %v2393_v16 = vpop.eup %2392 }
 0x632   : > { %v1057_v15 = vpop.xlane.xlu0 %1056  ;;  %v935_v18 = vmul.f32 %v2393_v16, %v2385_v60 }
 0x633   : > { %2398 = vrcp.f32 %v1057_v15 }
 0x635   : > { %v2395_v17 = vpop.eup %2394 }
 0x636   : > { %v936_v21 = vmul.f32 %v2395_v17, %v2387_v4  ;;  %v1064_v23 = vpop.permute.xlu0 %1063 }
 0x638   : > { %v937_v22 = vpack.c.bf16 %v936_v21, %v935_v18 }
 0x639   : > { %v2397_v24 = vpop.eup %2396 }
 0x63a   : > { %2167 = vmatmul.mubr.msk.bf16.vlgmr.msra.gmra.mrb[0].mxu0 %vm914_vm5, %v937_v22  ;;  %v1060_v27 = vmul.f32 %v2397_v24, %v2389_v7 }
 0x63b   : > { %2177 = vmatpush3.bf16.msra.mxu0 %v1064_v23  ;;  %2178 = vmatprep.mubr.msk.bf16.mxu0 %vm2597_vm2, %v2596_v61 }
 0x63c   : > { %2188 = vmatprep.subr.bf16.mxu0 %v2596_v61 }
 0x63d   : > { %v2399_v25 = vpop.eup %2398 }
 0x63e   : > { %v1061_v28 = vmul.f32 %v2399_v25, %v2391_v9 }
 0x640   : > { %v1062_v29 = vpack.c.bf16 %v1061_v28, %v1060_v27 }
 0x642   : > { %2179 = vmatmul.mubr.msk.bf16.vlgmr.msra.gmra.mrb[4].mxu0 %vm914_vm5, %v1062_v29 }
 0x643   : > { %2190 = vmatprep.mubr.msk.bf16.mxu0 %vm2597_vm2, %v2596_v61  ;;  %2189 = vmatpush3.bf16.msra.mxu0 %v1165_v31 }
 0x644   : > { %2200 = vmatprep.subr.bf16.mxu0 %v2596_v61 }
 0x70d   : > { %v979_v34 = vpop.f32.mrb[0].mxu0 }
 0x70e   : > { %v2168_v35 = vpop.f32.mrb[1].mxu0 }
 0x70f   : > { %v982_v36 = vpop.f32.mrb[2].mxu0 }
 0x710   : > { %v986_v37 = vpack.c.bf16 %v982_v36, %v979_v34  ;;  %v2169_v38 = vpop.f32.mrb[3].mxu0 }
 0x712   : > { %2191 = vmatmul.mubr.msk.bf16.vlgmr.msra.gmra.mrb[8].mxu0 %vm866_vm4, %v986_v37 }
 0x713   : > { %2202 = vmatprep.mubr.msk.bf16.mxu0 %vm2597_vm2, %v2596_v61 }
 0x715   : > { %v1103_v39 = vpop.f32.mrb[4].mxu0 }
 0x716   : > { %v2180_v40 = vpop.f32.mrb[5].mxu0 }
 0x717   : > { %v1106_v42 = vpop.f32.mrb[6].mxu0 }
 0x718   : > { %v1110_v43 = vpack.c.bf16 %v1106_v42, %v1103_v39  ;;  %v2181_v44 = vpop.f32.mrb[7].mxu0 }
 0x71a   : > { %2185 = vmatmul.mubr.msk.bf16.vlgmr.msra.gmra.mrb[12].mxu1 %vm866_vm4, %v1110_v43 }
 0x71b   : > { %2195 = vmatpush3.bf16.xpose.msra.mxu1 %v1216_v45  ;;  %2196 = vmatprep.mubr.msk.bf16.mxu1 %vm2597_vm2, %v2596_v61 }
 0x71c   : > { %2206 = vmatprep.subr.bf16.mxu1 %v2596_v61 }
 0x722   : > { %2197 = vmatmul.mubr.msk.bf16.vlgmr.msra.gmra.mrb[16].mxu1 %vm866_vm4, %v1209_v46 }
 0x723   : > { %2208 = vmatprep.mubr.msk.bf16.mxu1 %vm2597_vm2, %v2596_v61 }
 0x7e5   : > { %v1201_v47 = vpop.f32.mrb[8].mxu0 }
 0x7e6   : > { %v2192_v48 = vpop.f32.mrb[9].mxu0 }
 0x7e7   : > { %v1204_v49 = vpop.f32.mrb[10].mxu0 }
 0x7e8   : > { %v2193_v50 = vpop.f32.mrb[11].mxu0 }
 0x7ed   : > { %v1154_v51 = vpop.f32.mrb[12].mxu1 }
 0x7ee   : > { %v3050_v52 = vadd.f32 %v1201_v47, %v1154_v51  ;;  %v2186_v53 = vpop.f32.mrb[13].mxu1 }
 0x7ef   : > { %v1157_v54 = vpop.f32.mrb[14].mxu1 }
 0x7f0   : > { %v3052_v56 = vadd.f32 %v1204_v49, %v1157_v54  ;;  %v2187_v57 = vpop.f32.mrb[15].mxu1 }
 0x7f1   : > { %v2061_v57 = vld [vmem:[%s2882_s16 + $0xc] sm:$0xf] }
 0x7f5   : > { %v1252_v58 = vpop.f32.mrb[16].mxu1 }
 0x7f6   : > { %v1253_v59 = vadd.f32 %v3001_v26, %v1252_v58  ;;  %v2198_v60 = vpop.f32.mrb[17].mxu1  ;;  %v1509_v58 = vsel %vm1116_vm6, %v2061_v57, 0 }
 0x7f7   : > { %v1255_v62 = vpop.f32.mrb[18].mxu1 }
 0x7f8   : > { %v1256_v3 = vadd.f32 %v3001_v26, %v1255_v62  ;;  %v2199_v4 = vpop.f32.mrb[19].mxu1  ;;  %v1259_v5 = vsel %vm914_vm5, %v1253_v59, -inf }
 0x7f9   : > { %1260 = vmax.xlane.f32.xlu1 %v1259_v5 }
 0x7fa   : > { %v1262_v7 = vsel %vm914_vm5, %v1256_v3, -inf }
 0x7fb   : > { %1263 = vmax.xlane.f32.xlu0 %v1262_v7 }
 0x811   : > { %1282 = vrot.lane.b32.xlu0 %v3015_v55, %s2606_s19 }
 0x886   : > { %v1261_v8 = vpop.xlane.xlu1 %1260 }
 0x887   : > { %v1265_v9 = vsub.f32 %v1253_v59, %v1261_v8 }
 0x888   : > { %v1264_v10 = vpop.xlane.xlu0 %1263 }
 0x889   : > { %v1267_v11 = vmul.f32 1.442695, %v1265_v9  ;;  %v1266_v12 = vsub.f32 %v1256_v3, %v1264_v10 }
 0x88b   : > { %2400 = vpow2.f32 %v1267_v11  ;;  %v1269_v13 = vmul.f32 1.442695, %v1266_v12 }
 0x88c   : > { %v1283_v14 = vpop.permute.xlu0 %1282 }
 0x88d   : > { %2402 = vpow2.f32 %v1269_v13  ;;  %2201 = vmatpush3.bf16.msra.mxu0 %v1283_v14 }
 0x88e   : > { %2212 = vmatprep.subr.bf16.mxu0 %v2596_v61 }
 0x895   : > { %v2401_v15 = vpop.eup %2400 }
 0x896   : > { %v1271_v16 = vsel %vm914_vm5, %v2401_v15, 0.0 }
 0x897   : > { %v2403_v17 = vpop.eup %2402  ;;  %1272 = vadd.xlane.f32.xlu1 %v1271_v16 }
 0x898   : > { %v1274_v18 = vsel %vm914_vm5, %v2403_v17, 0.0 }
 0x89b   : > { %1275 = vadd.xlane.f32.xlu1 %v1274_v18 }
 0x8ac   : > { %1383 = vrot.lane.b32.xlu1 %v2978_v19, %s2607_s25 }
 0x8b0   : > { %1381 = vrot.lane.b32.xlu1 %v2980_v20, %s2608_s29  ;;  %v2057_v20 = vld [vmem:[%s2882_s16 + $0x8] sm:$0xf] }
 0x8b1   : > { %v1336_v31 = vsel %vm1116_vm6, %v2057_v20, 0 }
 0x8b2   : > { %2207 = vmatpush3.bf16.msra.mxu1 %v1336_v31 }
 0x8b3   : > { %2218 = vmatprep.subr.bf16.mxu1 %v2596_v61 }
 0x924   : > { %v1273_v21 = vpop.xlane.xlu1 %1272 }
 0x925   : > { %2404 = vrcp.f32 %v1273_v21 }
 0x928   : > { %v1276_v22 = vpop.xlane.xlu1 %1275 }
 0x929   : > { %2406 = vrcp.f32 %v1276_v22 }
 0x92c   : > { %v1384_v28 = vpop.permute.xlu1 %1383 }
 0x92d   : > { %v1389_v30 = vsel %vm866_vm4, %v1384_v28, 0 }
 0x92f   : > { %v2405_v23 = vpop.eup %2404 }
 0x930   : > { %v1279_v25 = vmul.f32 %v2405_v23, %v2401_v15  ;;  %v1382_v19 = vpop.permute.xlu1 %1381 }
 0x933   : > { %v2407_v24 = vpop.eup %2406 }
 0x934   : > { %v1280_v27 = vmul.f32 %v2407_v24, %v2403_v17  ;;  %v1556_v17 = vsub.s32 3, %v2950_v1 }
 0x936   : > { %v1281_v29 = vpack.c.bf16 %v1280_v27, %v1279_v25  ;;  %v1557_v18 = vrot.slane %v2954_v2, %v1556_v17 }
 0x938   : > { %2203 = vmatmul.mubr.msk.bf16.vlgmr.msra.gmra.mrb[12].mxu0 %vm914_vm5, %v1281_v29 }
 0x939   : > { %2213 = vmatpush3.bf16.xpose.msra.mxu0 %v1389_v30  ;;  %2214 = vmatprep.mubr.msk.bf16.mxu0 %vm2597_vm2, %v2596_v61 }
 0x93a   : > { %2224 = vmatprep.subr.bf16.mxu0 %v2596_v61 }
 0x940   : > { %2215 = vmatmul.mubr.msk.bf16.vlgmr.msra.gmra.mrb[16].mxu0 %vm866_vm4, %v1382_v19 }
 0x941   : > { %2226 = vmatprep.mubr.msk.bf16.mxu0 %vm2597_vm2, %v2596_v61  ;;  %2225 = vmatpush3.bf16.msra.mxu0 %v1509_v58 }
 0x942   : > { %2238 = vmatprep.subr.bf16.mxu0 %v2596_v61 }
 0xa0b   : > { %v1322_v32 = vpop.f32.mrb[12].mxu0 }
 0xa0c   : > { %v2204_v33 = vpop.f32.mrb[13].mxu0 }
 0xa0d   : > { %v1325_v34 = vpop.f32.mrb[14].mxu0 }
 0xa0e   : > { %v1329_v35 = vpack.c.bf16 %v1325_v34, %v1322_v32  ;;  %v2205_v36 = vpop.f32.mrb[15].mxu0 }
 0xa10   : > { %2209 = vmatmul.mubr.msk.bf16.vlgmr.msra.gmra.mrb[20].mxu1 %vm866_vm4, %v1329_v35 }
 0xa11   : > { %2220 = vmatprep.mubr.msk.bf16.mxu1 %vm2597_vm2, %v2596_v61 }
 0xa13   : > { %v1425_v37 = vpop.f32.mrb[16].mxu0 }
 0xa14   : > { %v1426_v38 = vadd.f32 %v3001_v26, %v1425_v37  ;;  %v2216_v39 = vpop.f32.mrb[17].mxu0 }
 0xa15   : > { %v1428_v40 = vpop.f32.mrb[18].mxu0 }
 0xa16   : > { %v1429_v41 = vadd.f32 %v3001_v26, %v1428_v40  ;;  %v2217_v42 = vpop.f32.mrb[19].mxu0  ;;  %v1432_v43 = vsel %vm914_vm5, %v1426_v38, -inf }
 0xa17   : > { %1433 = vmax.xlane.f32.xlu0 %v1432_v43 }
 0xa18   : > { %v1435_v44 = vsel %vm914_vm5, %v1429_v41, -inf }
 0xa19   : > { %1436 = vmax.xlane.f32.xlu1 %v1435_v44 }
 0xa2a   : > { %1455 = vrot.lane.b32.xlu1 %v3015_v55, %s2609_s1 }
 0xaa4   : > { %v1434_v45 = vpop.xlane.xlu0 %1433 }
 0xaa5   : > { %v1438_v46 = vsub.f32 %v1426_v38, %v1434_v45 }
 0xaa6   : > { %v1437_v47 = vpop.xlane.xlu1 %1436 }
 0xaa7   : > { %v1440_v48 = vmul.f32 1.442695, %v1438_v46  ;;  %v1439_v49 = vsub.f32 %v1429_v41, %v1437_v47  ;;  %v2379_v41 = vld [vmem:[%s2887_s28 + $0x8] sm:$0xff]  }
 0xaa9   : > { %2408 = vpow2.f32 %v1440_v48  ;;  %v1442_v50 = vmul.f32 1.442695, %v1439_v49  ;;  %v1591_v48 = vsub.s32 4, %v2950_v1 }
 0xaaa   : > { %v1456_v51 = vpop.permute.xlu1 %1455 }
 0xaab   : > { %2410 = vpow2.f32 %v1442_v50  ;;  %2219 = vmatpush3.bf16.msra.mxu1 %v1456_v51  ;;  %v1592_v50 = vrot.slane %v2954_v2, %v1591_v48 }
 0xaac   : > { %2230 = vmatprep.subr.bf16.mxu1 %v2596_v61 }
 0xab3   : > { %v2409_v26 = vpop.eup %2408 }
 0xab4   : > { %v1444_v53 = vsel %vm914_vm5, %v2409_v26, 0.0 }
 0xab5   : > { %v2411_v54 = vpop.eup %2410  ;;  %1445 = vadd.xlane.f32.xlu0 %v1444_v53 }
 0xab6   : > { %v1447_v55 = vsel %vm914_vm5, %v2411_v54, 0.0 }
 0xab9   : > { %1448 = vadd.xlane.f32.xlu0 %v1447_v55 }
 0xae3   : > { %v1372_v59 = vpop.f32.mrb[20].mxu1 }
 0xae4   : > { %v1379_v60 = vadd.f32 %v1372_v59, %v3050_v52  ;;  %v2210_v62 = vpop.f32.mrb[21].mxu1 }
 0xae5   : > { %v1375_v3 = vpop.f32.mrb[22].mxu1 }
 0xae6   : > { %v1380_v4 = vadd.f32 %v1375_v3, %v3052_v56  ;;  %v2211_v5 = vpop.f32.mrb[23].mxu1  ;;  %v2380_v3 = vld [vmem:[%s2893_s13] sm:$0xff]  }
 0xae7   : > { %v2382_v5 = vld [vmem:[%s2893_s13 + $0x10] sm:$0xff]  }
 0xb42   : > { %v1446_v7 = vpop.xlane.xlu0 %1445 }
 0xb43   : > { %2412 = vrcp.f32 %v1446_v7  ;;  %v2383_v7 = vld [vmem:[%s2893_s13 + $0x18] sm:$0xff]  }
 0xb46   : > { %v1449_v8 = vpop.xlane.xlu0 %1448 }
 0xb47   : > { %2414 = vrcp.f32 %v1449_v8  ;;  %v2063_v8 = vld [vmem:[%s577_s23] ss:$0 sm:$0xff] }
 0xb4d   : > { %v2413_v9 = vpop.eup %2412 }
 0xb4e   : > { %v1452_v11 = vmul.f32 %v2413_v9, %v2409_v26  ;;  %v1597_v26 = vsub.s32 5, %v2950_v1 }
 0xb50   : > { %v1598_v57 = vrot.slane %v2954_v2, %v1597_v26 }
 0xb51   : > { %v2415_v10 = vpop.eup %2414 }
 0xb52   : > { %v1453_v12 = vmul.f32 %v2415_v10, %v2411_v54 }
 0xb54   : > { %v1454_v13 = vpack.c.bf16 %v1453_v12, %v1452_v11 }
 0xb56   : > { %2221 = vmatmul.mubr.msk.bf16.vlgmr.msra.gmra.mrb[24].mxu1 %vm914_vm5, %v1454_v13 }
 0xb57   : > { %2234 = vmatprep.mubr.msk.bf16.mxu1 %vm2597_vm2, %v2596_v61 }
 0xc29   : > { %v1495_v52 = vpop.f32.mrb[24].mxu1 }
 0xc2a   : > { %v2222_v14 = vpop.f32.mrb[25].mxu1 }
 0xc2b   : > { %v1498_v15 = vpop.f32.mrb[26].mxu1 }
 0xc2c   : > { %v1502_v16 = vpack.c.bf16 %v1498_v15, %v1495_v52  ;;  %v2223_v56 = vpop.f32.mrb[27].mxu1 }
 0xc2e   : > { %2227 = vmatmul.mubr.msk.bf16.vlgmr.msra.gmra.mrb[20].mxu0 %vm866_vm4, %v1502_v16 }
 0xc2f   : > { %2246 = vmatprep.mubr.msk.bf16.mxu0 %vm2597_vm2, %v2596_v61  ;;  %2239 = vmatpush3.bf16.msra.mxu0 %v2380_v3 }
 0xc30   : > { %2240 = vmatprep.subr.bf16.mxu0 %v2596_v61 }
 0xd01   : > { %v1545_v21 = vpop.f32.mrb[20].mxu0 }
 0xd02   : > { %v1552_v22 = vadd.f32 %v1545_v21, %v1379_v60  ;;  %v2228_v23 = vpop.f32.mrb[21].mxu0 }
 0xd03   : > { %v1548_v24 = vpop.f32.mrb[22].mxu0 }
 0xd04   : > { %v1558_v25 = vadd.f32 %v1557_v18, %v1552_v22  ;;  %v1553_v27 = vadd.f32 %v1548_v24, %v1380_v4  ;;  %v2229_v28 = vpop.f32.mrb[23].mxu0  ;;  %v2381_v4 = vld [vmem:[%s2893_s13 + $0x8] sm:$0xff]  }
 0xd05   : > { %2241 = vmatpush3.bf16.msra.mxu0 %v2381_v4 }
 0xd06   : > { %v1559_v29 = vadd.f32 %v1557_v18, %v1553_v27  ;;  %v1560_v30 = vadd.f32 %v1558_v25, %v2946_v63  ;;  %2242 = vmatprep.subr.bf16.mxu0 %v2596_v61  ;;  %v1690_v25 = vsub.s32 6, %v2950_v1 }
 0xd08   : > { %v1562_v19 = vsel %vm781_vm3, %v1560_v30, 0.0  ;;  %v1561_v20 = vadd.f32 %v1559_v29, %v2948_v0  ;;  %v2378_v0 = vld [vmem:[%s2887_s28] sm:$0xff]   ;;  %v1691_v27 = vrot.slane %v2954_v2, %v1690_v25 }
 0xd09   : > { %1563 = vadd.xlane.f32.xlu0 %v1562_v19  ;;  %2231 = vmatpush3.bf16.msra.mxu1 %v2378_v0 }
 0xd0a   : > { %v1565_v31 = vsel %vm781_vm3, %v1561_v20, 0.0  ;;  %2232 = vmatprep.subr.bf16.mxu1 %v2596_v61  ;;  %2243 = vmatpush3.bf16.msra.mxu0 %v2382_v5 }
 0xd0b   : > { %2244 = vmatprep.subr.bf16.mxu0 %v2596_v61 }
 0xd0d   : > { %1566 = vadd.xlane.f32.xlu0 %v1565_v31  ;;  %2233 = vmatpush3.bf16.msra.mxu1 %v2379_v41 }
 0xd0e   : > { %2245 = vmatpush3.bf16.msra.mxu0 %v2383_v7 }
 0xd96   : > { %v1564_v32 = vpop.xlane.xlu0 %1563 }
 0xd97   : > { %v1569_v33 = vmul.f32 0.03125, %v1564_v32 }
 0xd99   : > { %v1571_v34 = vsub.f32 %v1560_v30, %v1569_v33 }
 0xd9a   : > { %v1567_v35 = vpop.xlane.xlu0 %1566 }
 0xd9b   : > { %v1570_v36 = vmul.f32 0.03125, %v1567_v35  ;;  %v1573_v37 = vmul.f32 %v1571_v34, %v1571_v34 }
 0xd9d   : > { %v1572_v38 = vsub.f32 %v1561_v20, %v1570_v36  ;;  %v1575_v39 = vsel %vm781_vm3, %v1573_v37, 0.0 }
 0xd9e   : > { %1576 = vadd.xlane.f32.xlu0 %v1575_v39 }
 0xd9f   : > { %v1574_v63 = vmul.f32 %v1572_v38, %v1572_v38 }
 0xda1   : > { %v1578_v40 = vsel %vm781_vm3, %v1574_v63, 0.0 }
 0xda2   : > { %1579 = vadd.xlane.f32.xlu0 %v1578_v40 }
 0xe2b   : > { %v1577_v42 = vpop.xlane.xlu0 %1576 }
 0xe2c   : > { %v1581_v43 = vmul.f32 0.03125, %v1577_v42 }
 0xe2e   : > { %v1583_v44 = vadd.f32 1e-05, %v1581_v43 }
 0xe2f   : > { %v1580_v45 = vpop.xlane.xlu0 %1579 }
 0xe30   : > { %2416 = vrsqrt.f32 %v1583_v44  ;;  %v1582_v46 = vmul.f32 0.03125, %v1580_v45 }
 0xe32   : > { %v1584_v47 = vadd.f32 1e-05, %v1582_v46 }
 0xe34   : > { %2418 = vrsqrt.f32 %v1584_v47 }
 0xe3a   : > { %v2417_v49 = vpop.eup %2416 }
 0xe3b   : > { %v1587_v51 = vmul.f32 %v2417_v49, %v1571_v34 }
 0xe3d   : > { %v1593_v54 = vmul.f32 %v1592_v50, %v1587_v51  ;;  %v763_v51 = vld [vmem:[%s2898_s3 + $0x8] sm:$0xff] }
 0xe3e   : > { %v2419_v53 = vpop.eup %2418 }
 0xe3f   : > { %v1588_v55 = vmul.f32 %v2419_v53, %v1572_v38  ;;  %v1599_v59 = vadd.f32 %v1598_v57, %v1593_v54  ;;  %v1798_v54 = vrot.slane %v763_v51, %v828_v6 }
 0xe41   : > { %v1594_v58 = vmul.f32 %v1592_v50, %v1588_v55  ;;  %v1791_v50 = vsub.s32 7, %v2950_v1 }
 0xe43   : > { %v1600_v60 = vadd.f32 %v1598_v57, %v1594_v58  ;;  %v1792_v26 = vrot.slane %v2954_v2, %v1791_v50 }
 0xe45   : > { %v1601_v62 = vpack.c.bf16 %v1600_v60, %v1599_v59 }
 0xe47   : > { %2235 = vmatmul.mubr.msk.bf16.vlgmr.msra.gmra.mrb[28].mxu1 %vm781_vm3, %v1601_v62 }
 0xf1a   : > { %v1662_v9 = vpop.f32.mrb[28].mxu1 }
 0xf1b   : > { %v1663_v10 = vadd.f32 %v2063_v8, %v1662_v9  ;;  %v2236_v11 = vpop.f32.mrb[29].mxu1 }
 0xf1c   : > { %v1665_v12 = vpop.f32.mrb[30].mxu1 }
 0xf1d   : > { %v1671_v13 = vmul.f32 0.70710677, %v1663_v10  ;;  %v1666_v52 = vadd.f32 %v2063_v8, %v1665_v12  ;;  %v2237_v14 = vpop.f32.mrb[31].mxu1  ;;  %v1669_v17 = vmul.f32 0.5, %v1663_v10 }
 0xf1f   : > { %2420 = verf.f32 %v1671_v13  ;;  %v1672_v15 = vmul.f32 0.70710677, %v1666_v52  ;;  %v1670_v18 = vmul.f32 0.5, %v1666_v52 }
 0xf21   : > { %2422 = verf.f32 %v1672_v15 }
 0xf29   : > { %v2421_v16 = vpop.eup %2420 }
 0xf2a   : > { %v1675_v56 = vadd.f32 1.0, %v2421_v16 }
 0xf2b   : > { %v2423_v61 = vpop.eup %2422 }
 0xf2c   : > { %v1676_v21 = vadd.f32 1.0, %v2423_v61  ;;  %v1677_v22 = vmul.f32 %v1675_v56, %v1669_v17 }
 0xf2e   : > { %v1678_v23 = vmul.f32 %v1676_v21, %v1670_v18 }
 0xf30   : > { %v1679_v24 = vpack.c.bf16 %v1678_v23, %v1677_v22 }
 0xf32   : > { %2247 = vmatmul.mubr.msk.bf16.vlgmr.msra.gmra.mrb[24].mxu0 %vm1716_vm7, %v1679_v24 }
0x1005   : > { %v1754_v28 = vpop.f32.mrb[24].mxu0 }
0x1006   : > { %v1755_v29 = vadd.f32 %v1754_v28, %v1691_v27  ;;  %v2248_v30 = vpop.f32.mrb[25].mxu0 }
0x1007   : > { %v1757_v19 = vpop.f32.mrb[26].mxu0 }
0x1008   : > { %v1758_v20 = vadd.f32 %v1757_v19, %v1691_v27  ;;  %v2249_v31 = vpop.f32.mrb[27].mxu0  ;;  %v1761_v32 = vadd.f32 %v1755_v29, %v1599_v59 }
0x100a   : > { %v1763_v33 = vsel %vm781_vm3, %v1761_v32, 0.0  ;;  %v1762_v34 = vadd.f32 %v1758_v20, %v1600_v60 }
0x100b   : > { %1764 = vadd.xlane.f32.xlu1 %v1763_v33 }
0x100c   : > { %v1766_v35 = vsel %vm781_vm3, %v1762_v34, 0.0 }
0x100d   : > { %1767 = vadd.xlane.f32.xlu0 %v1766_v35 }
0x1098   : > { %v1765_v36 = vpop.xlane.xlu1 %1764 }
0x1099   : > { %v1769_v37 = vmul.f32 0.03125, %v1765_v36 }
0x109a   : > { %v1768_v38 = vpop.xlane.xlu0 %1767 }
0x109b   : > { %v1771_v39 = vsub.f32 %v1761_v32, %v1769_v37  ;;  %v1770_v63 = vmul.f32 0.03125, %v1768_v38 }
0x109d   : > { %v1772_v40 = vsub.f32 %v1762_v34, %v1770_v63  ;;  %v1773_v0 = vmul.f32 %v1771_v39, %v1771_v39 }
0x109f   : > { %v1775_v41 = vsel %vm781_vm3, %v1773_v0, 0.0  ;;  %v1774_v42 = vmul.f32 %v1772_v40, %v1772_v40 }
0x10a0   : > { %1776 = vadd.xlane.f32.xlu0 %v1775_v41 }
0x10a1   : > { %v1778_v43 = vsel %vm781_vm3, %v1774_v42, 0.0 }
0x10a4   : > { %1779 = vadd.xlane.f32.xlu0 %v1778_v43 }
0x112d   : > { %v1777_v44 = vpop.xlane.xlu0 %1776 }
0x112e   : > { %v1781_v45 = vmul.f32 0.03125, %v1777_v44 }
0x1130   : > { %v1783_v46 = vadd.f32 1e-05, %v1781_v45 }
0x1131   : > { %v1780_v47 = vpop.xlane.xlu0 %1779 }
0x1132   : > { %2424 = vrsqrt.f32 %v1783_v46  ;;  %v1782_v48 = vmul.f32 0.03125, %v1780_v47 }
0x1134   : > { %v1784_v49 = vadd.f32 1e-05, %v1782_v48 }
0x1136   : > { %2426 = vrsqrt.f32 %v1784_v49 }
0x113c   : > { %v2425_v53 = vpop.eup %2424 }
0x113d   : > { %v1787_v55 = vmul.f32 %v2425_v53, %v1771_v39 }
0x113f   : > { %v1793_v57 = vmul.f32 %v1792_v26, %v1787_v55 }
0x1140   : > { %v2427_v58 = vpop.eup %2426 }
0x1141   : > { %v1799_v59 = vadd.f32 %v1798_v54, %v1793_v57  ;;  %v1788_v60 = vmul.f32 %v2427_v58, %v1772_v40  ;;  %1806 = sbr.rel (%p2072_p0) target bundleno = 4424 (0x1148), region = 80 }
0x1143   : > { %1801 = vst.msk [vmem:[#allocation2] sm:$0xff] %vm781_vm3, %v1799_v59  ;;  %v1794_v62 = vmul.f32 %v1792_v26, %v1788_v60  ;;  %1807 = vst.msk [vmem:[%s2904_s5] sm:$0xff] (!%p2072_p0), %vm781_vm3, %v1799_v59 }
0x1145   : > { %v1800_v3 = vadd.f32 %v1798_v54, %v1794_v62 }
0x1147   : > { %1802 = vst.msk [vmem:[#allocation2 + $0x8] sm:$0xff] %vm781_vm3, %v1800_v3  ;;  %1808 = vst.msk [vmem:[%s2904_s5 + $0x8] sm:$0xff] (!%p2072_p0), %vm781_vm3, %v1800_v3 }
0x1148 PF: > { %s3274_s30 = sld [smem:[#allocation18_spill]]  ;;  %s2085_s13 = sshll.u32 %s2576_s21, 8 }
0x1149   : > { %s3275_s0 = sld [smem:[#allocation29_spill]]  ;;  %s1823_s26 = sshll.u32 %s2904_s5, 4  ;;  %s3150_s26 = int_to_ptr.vmem [resolvable:$true] %s1823_s26 }
0x114a   : > { %s1810_s20 = scalar_lea.sflag [#allocation5], %s2840_s12  ;;  %s2486_s4 = scalar_lea.vmem %s3150_s26, 256 }
0x114b   : > { %p2487_p4 = scmp.ne.s32.totalorder %s3150_s26, %s2486_s4  ;;  %s2610_s15 = smov [#allocation8]  }
0x114c   : > { %s2490_s11 = sshll.u32 %s2610_s15, 4  ;;  %s2491_s11 = int_to_ptr.vmem [resolvable:$false] %s2490_s11 }
0x114d   : > { %s2492_s21 = scalar_lea.vmem %s2491_s11, 512  ;;  %p2493_p5 = scmp.lt.s32.totalorder %s3150_s26, %s2491_s11 }
0x114e   : > { %p3276_p3 = scmp.ne.s32.totalorder %s3274_s30, 0  ;;  %p2494_p6 = scmp.lt.s32.totalorder %s2492_s21, %s2486_s4 }
0x114f   : > { %s3147_s24 = scalar_lea.hbm %s3275_s0, %s2085_s13 }
0x1150   : > { %p2488_p8 = pnand %p2487_p4, %p3276_p3  ;;  %p2495_p10 = por %p2494_p6, %p2493_p5 }
0x1152   : > { %p2489_p1 = pneg %p2488_p8 }
0x1154   : > { %p2496_p12 = pnand %p2495_p10, %p2489_p1 }
0x1156   : > { %2499 = shalt.err (!%p2496_p12)
}
0x1157   : > { %s2500_s5 = scalar_lea.hbm %s3147_s24, 256  ;;  %s2504_s17 = scalar_lea.hbm %s3275_s0, 512 }
0x1158   : > { %p2501_p2 = scmp.ne.s32.totalorder %s3147_s24, %s2500_s5  ;;  %p2505_p11 = scmp.lt.u32.totalorder %s3147_s24, %s3275_s0 }
0x1159   : > { %p2506_p13 = scmp.lt.u32.totalorder %s2504_s17, %s2500_s5  ;;  %p2508_p4 = scmp.lt.u32.totalorder %s2500_s5, %s3147_s24 }
0x115a   : > { %p2502_p7 = pnand %p2501_p2, %p3276_p3 }
0x115b   : > { %p2507_p0 = por %p2506_p13, %p2505_p11 }
0x115c   : > { %p2503_p9 = pneg %p2502_p7 }
0x115d   : > { %p2509_p8 = por %p2508_p4, %p2507_p0 }
0x115f   : > { %p2510_p1 = pnand %p2509_p8, %p2503_p9 }
0x1161   : > { %2513 = shalt.err (!%p2510_p1)
}
0x1162   : > { %s2611_s19 = smov 128   ;;  %s2612_s25 = smov 8  }
0x1163   : > { %2256 = dma.vmem_to_hbm [thread:$0]  (%p3276_p3), %s3150_s26, 256, %s3147_s24, %s1810_s20, %s2611_s19, %s2611_s19, %s2612_s25  }
0x1164 PF: > { %s3277_s29 = sld [smem:[#allocation17_spill]]  ;;  %s3278_s1 = sld [smem:[#allocation12_spill]] }
0x1165   : > { %s3279_s16 = sld [smem:[#allocation19_spill]] }
0x116a   : > { %p2273_p5 = scmp.ge.s32.totalorder %s3277_s29, 2  ;;  %s1838_s28 = sand.u32 1, %s3278_s1  }
0x116b   : > { %p3280_p6 = scmp.ne.s32.totalorder %s3279_s16, 0  ;;  %s1839_s13 = scalar_lea.sflag [#allocation5], %s1838_s28 }
0x116d   : > { %p2267_p10 = pnand %p2273_p5, %p3280_p6 }
0x116f   : > { %2555 = dma.done.wait (!%p2267_p10), %s1839_s13, 256  }
0x1170   : > { %2557 = vsyncadd (!%p2267_p10), %s1839_s13, 4294967040  ;;  %s28_s24 = sadd.s32 1, %s3277_s29   ;;  %s3281_s17 = sld [smem:[#allocation13_spill]] }
0x1171   : > { %p25_p12 = scmp.ge.s32.totalorder %s28_s24, 6   ;;  %s3282_s18 = sld [smem:[#allocation14_spill]] }
0x1172   : > { %s3283_s19 = sld [smem:[#allocation22_spill]]  ;;  %s3284_s20 = sld [smem:[#allocation15_spill]] }
0x1173   : > { %s3285_s21 = sld [smem:[#allocation16_spill]]  ;;  %s3286_s22 = sld [smem:[#allocation20_spill]] }
0x1174   : > { %s3287_s23 = sld [smem:[#allocation21_spill]]  ;;  %27 = sbr.rel (!%p25_p12) target bundleno = 16 (0x10), region = 148 }
0x117b   :  { %1844 = vsyncpa [#allocation4], 1 }
0x117c   :  { %1846 = vsyncpa [#allocation4 + $0x1], 1 }
0x117d   :  { %1847 = vsyncpa [#allocation7], 1 }
0x117e   :  { %1848 = vsyncpa [#allocation5], 1 }
0x117f   :  { %1850 = vsyncpa [#allocation5 + $0x1], 1 }

// kernel: tpu_custom_call.1
= control target key start
LH: loop header
LB: loop body
LE: loop exit
PB: predicated region body
PF: predicated region fallthrough
CT: control target
= control target key end

     0   :  { %s3220_s0 = inlined_call_operand.hbm [shape: bf16[2,16,128], index: 0, kind: input, shape index: {}]   ;;  %s3221_s1 = inlined_call_operand.vmem [shape: f32[2,16,32], index: 1, kind: input, shape index: {}]   ;;  %s3222_s2 = inlined_call_operand.vmem [shape: f32[2,1,16], index: 2, kind: input, shape index: {}]   ;;  %s3223_s3 = inlined_call_operand.vmem [shape: bf16[128,32], index: 3, kind: input, shape index: {}]   ;;  %s3224_s4 = inlined_call_operand.hbm [shape: f32[8,32], index: 4, kind: input, shape index: {}]   ;;  %s3225_s5 = inlined_call_operand.vmem [shape: bf16[2,32,96], index: 5, kind: input, shape index: {}]   ;;  %s3226_s6 = inlined_call_operand.vmem [shape: bf16[2,4,8,32], index: 6, kind: input, shape index: {}]   ;;  %s3227_s7 = inlined_call_operand.vmem [shape: bf16[2,32,64], index: 7, kind: input, shape index: {}]   ;;  %s3228_s8 = inlined_call_operand.vmem [shape: bf16[2,64,32], index: 8, kind: input, shape index: {}]   ;;  %s3229_s9 = inlined_call_operand.vmem [shape: f32[2,16,32], index: 9, kind: input, shape index: {}]   ;;  %s3230_s10 = inlined_call_operand.vmem [shape: f32[2,1,64], index: 10, kind: input, shape index: {}]   ;;  %s3231_s11 = inlined_call_operand.hbm [shape: f32[2,16,32], index: 11, kind: output, shape index: {}]  }
   0x1   :  { %3251 = sst [smem:[#allocation23_spill]] %s3220_s0 }
   0x2   :  { %3252 = sst [smem:[#allocation24_spill]] %s3221_s1 }
   0x3   :  { %3253 = sst [smem:[#allocation25_spill]] %s3223_s3 }
   0x4   :  { %3254 = sst [smem:[#allocation26_spill]] %s3224_s4 }
   0x5   :  { %3255 = sst [smem:[#allocation27_spill]] %s3225_s5 }
   0x6   :  { %3256 = sst [smem:[#allocation28_spill]] %s3226_s6 }
   0x7   :  { %3257 = sst [smem:[#allocation29_spill]] %s3231_s11 }
   0x8   :  { %16 = vsyncpa [#allocation4], 0 }
   0x9   :  { %18 = vsyncpa [#allocation4 + $0x1], 0 }
   0xa   :  { %19 = vsyncpa [#allocation7], 0 }
   0xb   :  { %20 = vsyncpa [#allocation5], 0 }
   0xc   :  { %22 = vsyncpa [#allocation5 + $0x1], 0  ;;  %s2689_s17 = smov 0   ;;  %s2691_s18 = smov 0  }
   0xd   :  { %s2693_s19 = smov 0   ;;  %s2695_s20 = smov 0  }
   0xe   :  { %s2697_s21 = smov 0   ;;  %s2699_s22 = smov 0  }
   0xf   :  { %s2701_s23 = smov 0   ;;  %s2703_s24 = smov 0  }
  0x10 LB: > { %3258 = sst [smem:[#allocation12_spill]] %s2576_s17  ;;  %s2023_s25 = sadd.s32 4294967295, %s2604_s24   ;;  %s2604_s24 = sphi %s2703_s24, %s28_s24   ;;  %s2600_s23 = sphi %s2701_s23, %s3303_s23   ;;  %s2596_s22 = sphi %s2699_s22, %s3302_s22   ;;  %s2592_s21 = sphi %s2697_s21, %s3301_s21   ;;  %s2588_s20 = sphi %s2695_s20, %s3300_s20   ;;  %s2584_s19 = sphi %s2693_s19, %s3299_s19   ;;  %s2580_s18 = sphi %s2691_s18, %s3298_s18   ;;  %s2576_s17 = sphi %s2689_s17, %s3297_s17  }
  0x11   : > { %3259 = sst [smem:[#allocation13_spill]] %s2580_s18  ;;  %s2024_s26 = sadd.s32 4294967294, %s2604_s24  }
  0x12   : > { %3260 = sst [smem:[#allocation14_spill]] %s2584_s19  ;;  %p54_p0 = scmp.ne.s32.totalorder %s2584_s19, %s2580_s18 }
  0x13   : > { %3261 = sst [smem:[#allocation15_spill]] %s2596_s22  ;;  %p55_p1 = scmp.eq.s32.totalorder %s2604_s24, 0 }
  0x14   : > { %3262 = sst [smem:[#allocation16_spill]] %s2600_s23  ;;  %p60_p2 = scmp.ne.s32.totalorder %s2580_s18, %s2576_s17 }
  0x15   : > { %3263 = sst [smem:[#allocation17_spill]] %s2604_s24  ;;  %p2737_p3 = scmp.eq.s32.totalorder %s2023_s25, 0 }
  0x16   : > { %p334_p4 = scmp.eq.s32.totalorder %s2023_s25, 3  ;;  %p2741_p5 = por %p55_p1, %p54_p0 }
  0x17   : > { %s3264_s28 = scalar_select %p2737_p3, 1, 0 }
  0x18   : > { %p340_p6 = scmp.eq.s32.totalorder %s2024_s26, 3  ;;  %p2747_p7 = por %p2737_p3, %p60_p2 }
  0x19   : > { %p2751_p8 = por %p334_p4, %p54_p0  ;;  %p2025_p10 = scmp.ge.s32.totalorder %s2604_s24, 1 }
  0x1a   : > { %s3266_s30 = scalar_select %p2747_p7, 1, 0 }
  0x1b   : > { %s3267_s12 = scalar_select %p2751_p8, 1, 0 }
  0x1c   : > { %p2755_p9 = por %p340_p6, %p60_p2  ;;  %p347_p11 = scmp.lt.s32.totalorder %s2604_s24, 5 }
  0x1d   : > { %3268 = sst [smem:[#allocation18_spill]] %s3267_s12  ;;  %s2606_s15 = smov [#allocation6]  }
  0x1e   : > { %s3269_s13 = scalar_select %p2755_p9, 1, 0 }
  0x1f   : > { %p2761_p12 = pnand %p2025_p10, %p347_p11  ;;  %s363_s16 = sshll.u32 %s2606_s15, 4  ;;  %s364_s16 = int_to_ptr.vmem [resolvable:$true] %s363_s16 }
  0x20   : > { %3270 = sst [smem:[#allocation19_spill]] %s3269_s13  ;;  %p2287_p13 = scmp.lt.s32.totalorder %s2604_s24, 4 }
  0x21   : > { %s3271_s14 = scalar_select %p2761_p12, 1, 0 }
  0x22   : > { %p2274_p0 = pneg %p2761_p12  ;;  %p2770_p1 = pnand %p2287_p13, %p2741_p5 }
  0x23   : > { %s37_s27 = sadd.s32 1, %s2596_s22  ;;  %s3274_s4 = sld [smem:[#allocation26_spill]] }
  0x24   : > { %s3272_s25 = scalar_select %p2770_p1, 1, 0 }
  0x25   : > { %p2776_p2 = pnand %p2274_p0, %p2737_p3 }
  0x27   : > { %p2446_p5 = pneg %p2776_p2 }
  0x29   : > { %s2444_s15 = scalar_lea.hbm %s3274_s4, 128 }
  0x2a   : > { %p2445_p4 = scmp.ne.s32.totalorder %s3274_s4, %s2444_s15  ;;  %p2451_p11 = scmp.lt.u32.totalorder %s2444_s15, %s3274_s4 }
  0x2c   : > { %p2447_p6 = pnand %p2446_p5, %p2445_p4 }
  0x2e   : > { %p2448_p10 = pneg %p2447_p6 }
  0x30   : > { %p2453_p13 = pnand %p2451_p11, %p2448_p10 }
  0x32   : > { %2456 = shalt.err (!%p2453_p13)
}
  0x33   : > { %s2457_s3 = scalar_lea.vmem %s364_s16, 128  ;;  %p2465_p3 = scmp.lt.s32.totalorder %s364_s16, %s364_s16 }
  0x34   : > { %p2458_p0 = scmp.ne.s32.totalorder %s364_s16, %s2457_s3  ;;  %p2466_p7 = scmp.lt.s32.totalorder %s2457_s3, %s2457_s3 }
  0x36   : > { %p2460_p9 = pnand %p2458_p0, %p2446_p5  ;;  %p2467_p12 = por %p2466_p7, %p2465_p3 }
  0x38   : > { %p2461_p8 = pneg %p2460_p9 }
  0x3a   : > { %p2468_p1 = pnand %p2467_p12, %p2461_p8 }
  0x3c   : > { %2471 = shalt.err (!%p2468_p1)
}
  0x3d   : > { %2277 = dma.hbm_to_vmem [thread:$0]  (!%p2776_p2), %s3274_s4, 128, %s364_s16, [#allocation7]  }
  0x3e   : > { %p38_p4 = scmp.ge.s32.totalorder %s37_s27, 2  ;;  %s40_s24 = sadd.s32 1, %s2600_s23 }
  0x3f   : > { %s374_s12 = sand.u32 1, %s2584_s19   ;;  %s2094_s13 = sshll.u32 %s2600_s23, 7 }
  0x40   : > { %s3305_s27 = smov (%p38_p4, %s37_s27), 0  ;;  %s3307_s24 = smov (!%p38_p4, %s40_s24), %s2600_s23 }
  0x41   : > { %3275 = sst [smem:[#allocation20_spill]] %s3305_s27  ;;  %s2028_s3 = sshll.u32 %s374_s12, 3 }
  0x42   : > { %p42_p3 = scmp.ge.s32.totalorder %s3307_s24, 2  ;;  %s3276_s0 = sld [smem:[#allocation23_spill]] }
  0x43   : > { %s378_s16 = scalar_lea.vmem [#allocation3], %s2028_s3  ;;  %s2818_s27 = scalar_lea.sflag [#allocation4], %s374_s12 }
  0x44   : > { %s385_s11 = sshll.u32 %s378_s16, 4  ;;  %s3309_s24 = smov (%p42_p3, %s3307_s24), 0  ;;  %s2810_s11 = int_to_ptr.vmem [resolvable:$true] %s385_s11 }
  0x45   : > { %3277 = sst [smem:[#allocation21_spill]] %s3309_s24  ;;  %s44_s17 = ssub.s32 %s2600_s23, %s3309_s24 }
  0x46   : > { %p2814_p7 = scmp.eq.s32.totalorder %s44_s17, 0  ;;  %p3279_p9 = scmp.ne.s32.totalorder %s3272_s25, 0 }
  0x48   : > { %s2806_s29 = scalar_lea.hbm %s3276_s0, %s2094_s13  ;;  %p2474_p12 = pneg %p3279_p9 }
  0x49   : > { %s2472_s13 = scalar_lea.hbm %s2806_s29, 128  ;;  %s2477_s15 = scalar_lea.hbm %s3276_s0, 256 }
  0x4a   : > { %p2473_p8 = scmp.ne.s32.totalorder %s2806_s29, %s2472_s13  ;;  %p2478_p5 = scmp.lt.u32.totalorder %s2806_s29, %s3276_s0 }
  0x4b   : > { %p2479_p6 = scmp.lt.u32.totalorder %s2477_s15, %s2472_s13  ;;  %p2481_p11 = scmp.lt.u32.totalorder %s2472_s13, %s2806_s29 }
  0x4c   : > { %p2475_p1 = pnand %p2474_p12, %p2473_p8 }
  0x4d   : > { %p2480_p10 = por %p2479_p6, %p2478_p5 }
  0x4e   : > { %p2476_p2 = pneg %p2475_p1 }
  0x4f   : > { %p2482_p13 = por %p2481_p11, %p2480_p10 }
  0x51   : > { %p2483_p0 = pnand %p2482_p13, %p2476_p2 }
  0x53   : > { %2486 = shalt.err (!%p2483_p0)
}
  0x54   : > { %s2487_s12 = scalar_lea.vmem %s2810_s11, 128  ;;  %s2607_s17 = smov [#allocation3]  }
  0x55   : > { %p2488_p4 = scmp.ne.s32.totalorder %s2810_s11, %s2487_s12  ;;  %s2492_s3 = sshll.u32 %s2607_s17, 4  ;;  %s2493_s3 = int_to_ptr.vmem [resolvable:$false] %s2492_s3 }
  0x56   : > { %s2494_s24 = scalar_lea.vmem %s2493_s3, 256  ;;  %p2495_p1 = scmp.lt.s32.totalorder %s2810_s11, %s2493_s3 }
  0x57   : > { %p2490_p3 = pnand %p2488_p4, %p2474_p12  ;;  %p2496_p5 = scmp.lt.s32.totalorder %s2494_s24, %s2487_s12 }
  0x59   : > { %p2491_p8 = pneg %p2490_p3  ;;  %p2497_p6 = por %p2496_p5, %p2495_p1 }
  0x5b   : > { %p2498_p10 = pnand %p2497_p6, %p2491_p8 }
  0x5d   : > { %2501 = shalt.err (!%p2498_p10)
}
  0x5e   : > { %s2608_s13 = smov 64   ;;  %s2609_s26 = smov 4  }
  0x5f   : > { %2281 = dma.hbm_to_vmem [thread:$0]  (!%p3279_p9), %s2806_s29, 128, %s2810_s11, %s2818_s27, %s2608_s13, %s2608_s13, %s2609_s26  }
  0x60   : > { %s3280_s15 = sadd.s32 1, %s2584_s19  ;;  %p3282_p12 = scmp.ne.s32.totalorder %s3271_s14, 0 }
  0x61   : > { %s2851_s16 = scalar_select %p2814_p7, %s2584_s19, %s3280_s15  }
  0x62   : > { %457 = sbr.rel (%p3282_p12) target bundleno = 4472 (0x1178), region = 64  ;;  %s2856_s12 = sand.u32 (!%p3282_p12), 1, %s2580_s18  }
  0x63   : > { %3281 = sst [smem:[#allocation22_spill]] %s2851_s16  ;;  %s2032_s17 = sshll.u32 (!%p3282_p12), %s2856_s12, 3 }
  0x64   : > { %s460_s3 = scalar_lea.sflag (!%p3282_p12), [#allocation4], %s2856_s12  ;;  %s2860_s24 = scalar_lea.vmem (!%p3282_p12), [#allocation3], %s2032_s17 }
  0x65   : > { %p3283_p2 = scmp.ne.s32.totalorder (!%p3282_p12), %s3266_s30, 0 }
  0x69   : > { %2563 = dma.done.wait (%p3283_p2), %s460_s3, 128  }
  0x6a   : > { %2565 = vsyncadd (%p3283_p2), %s460_s3, 4294967168  ;;  %p3284_p7 = scmp.ne.s32.totalorder %s3264_s28, 0 }
  0x6c   : > { %2567 = dma.done.wait (%p3284_p7), [#allocation7], 128  }
  0x6d   : > { %2569 = vsyncadd (%p3284_p7), [#allocation7], 4294967168  ;;  %s2034_s4 = sshll.u32 %s2856_s12, 4  ;;  %p542_p9 = scmp.lt.s32.totalorder %s2592_s21, 1 }
  0x6e   : > { %p550_p11 = scmp.lt.s32.totalorder %s2588_s20, 1  ;;  %s3285_s1 = sld [smem:[#allocation24_spill]] }
  0x6f   : > { %s2874_s27 = scalar_select %p542_p9, %s2592_s21, 1 }
  0x70   : > { %s2877_s30 = scalar_select %p550_p11, %s2588_s20, 1 }
  0x71   : > { %s2095_s14 = sshll.u32 %s2874_s27, 4  ;;  %s3286_s5 = sld [smem:[#allocation27_spill]] }
  0x72   : > { %s2096_s15 = sshll.u32 %s2877_s30, 4  ;;  %s3287_s6 = sld [smem:[#allocation28_spill]] }
  0x73   : > { %s2903_s28 = scalar_lea.vmem %s3227_s7, %s2096_s15  ;;  %s2099_s25 = sshll.u32 %s2877_s30, 5 }
  0x74   : > { %s2887_s26 = scalar_lea.vmem %s3285_s1, %s2095_s14  ;;  %s2909_s13 = scalar_lea.vmem %s3228_s8, %s2099_s25 }
  0x75   : > { %s2914_s3 = scalar_lea.vmem %s3229_s9, %s2096_s15  ;;  %s577_s23 = scalar_lea.vmem %s3230_s10, %s2877_s30 }
  0x76   : > { %p2047_p13 = scmp.ne.s32.totalorder %s2588_s20, 0 }
  0x77   : > { %s2893_s0 = scalar_lea.vmem %s3286_s5, %s2096_s15  ;;  %s2920_s5 = scalar_lea.vmem [#allocation8], %s2034_s4  ;;  %v2610_v1 = vmov (!%p2047_p13), 0.0   ;;  %vm2611_vm0 = vmmov (!%p2047_p13), 0   ;;  %v2383_v9 = vld [vmem:[%s2860_s24] sm:$0xff] (!%p2047_p13)   ;;  %v2048_v10 = vld [vmem:[#allocation6] ss:$0 sm:$0xff] (!%p2047_p13) }
  0x78   : > { %s2898_s16 = scalar_lea.vmem %s3287_s6, %s2096_s15  ;;  %582 = sbr.rel (%p2047_p13) target bundleno = 720 (0x2d0), region = 76  ;;  %2146 = vmatprep.subr.bf16.mxu0 (!%p2047_p13), %v2610_v1  ;;  %2162 = vmatprep.mubr.msk.bf16.mxu0 (!%p2047_p13), %vm2611_vm0, %v2610_v1  ;;  %v719_v32 = vld [vmem:[%s2887_s26] sm:$0xff] (!%p2047_p13)  ;;  %vm725_vm1 = vcmask (!%p2047_p13), 261120   ;;  %v720_v35 = vld [vmem:[%s2887_s26 + $0x8] sm:$0xff] (!%p2047_p13) }
  0x79   : > { %s3288_s6 = sld [smem:[#allocation25_spill]] (!%p2047_p13)  ;;  %v2058_v58 = vld [vmem:[#allocation6 + $0x1] ss:$0 sm:$0xff] (!%p2047_p13)  ;;  %v2059_v60 = vld [vmem:[#allocation6 + $0x2] ss:$0 sm:$0xff] (!%p2047_p13) }
  0x7f   : > { %v2375_v0 = vld [vmem:[%s3288_s6] sm:$0xff]   ;;  %v2376_v2 = vld [vmem:[%s3288_s6 + $0x8] sm:$0xff]   ;;  %v2377_v3 = vld [vmem:[%s3288_s6 + $0x10] sm:$0xff]  }
  0x80   : > { %2147 = vmatpush3.bf16.msra.mxu0 %v2375_v0  ;;  %v2378_v4 = vld [vmem:[%s3288_s6 + $0x18] sm:$0xff]   ;;  %v2379_v5 = vld [vmem:[%s3288_s6 + $0x20] sm:$0xff]   ;;  %v2380_v6 = vld [vmem:[%s3288_s6 + $0x28] sm:$0xff]  }
  0x81   : > { %2148 = vmatprep.subr.bf16.mxu0 %v2610_v1  ;;  %v2381_v7 = vld [vmem:[%s3288_s6 + $0x30] sm:$0xff]   ;;  %v2382_v8 = vld [vmem:[%s3288_s6 + $0x38] sm:$0xff]  }
  0x84   : > { %2149 = vmatpush3.bf16.msra.mxu0 %v2376_v2 }
  0x85   : > { %2150 = vmatprep.subr.bf16.mxu0 %v2610_v1 }
  0x88   : > { %2151 = vmatpush3.bf16.msra.mxu0 %v2377_v3 }
  0x89   : > { %2152 = vmatprep.subr.bf16.mxu0 %v2610_v1 }
  0x8c   : > { %2153 = vmatpush3.bf16.msra.mxu0 %v2378_v4 }
  0x8d   : > { %2154 = vmatprep.subr.bf16.mxu0 %v2610_v1 }
  0x90   : > { %2155 = vmatpush3.bf16.msra.mxu0 %v2379_v5 }
  0x91   : > { %2156 = vmatprep.subr.bf16.mxu0 %v2610_v1 }
  0x94   : > { %2157 = vmatpush3.bf16.msra.mxu0 %v2380_v6 }
  0x95   : > { %2158 = vmatprep.subr.bf16.mxu0 %v2610_v1 }
  0x98   : > { %2159 = vmatpush3.bf16.msra.mxu0 %v2381_v7 }
  0x99   : > { %2160 = vmatprep.subr.bf16.mxu0 %v2610_v1 }
  0x9c   : > { %2161 = vmatpush3.bf16.msra.mxu0 %v2382_v8 }
  0x9f   : > { %2163 = vmatmul.mubr.bf16.vlgmr.msra.gmra.mrb[0].mxu0 %v2383_v9 }
 0x172   : > { %v694_v11 = vpop.f32.mrb[0].mxu0 }
 0x173   : > { %v695_v12 = vadd.f32 %v2048_v10, %v694_v11  ;;  %v2164_v13 = vpop.f32.mrb[1].mxu0 }
 0x174   : > { %v697_v14 = vpop.f32.mrb[2].mxu0 }
 0x175   : > { %v701_v15 = vmul.f32 %v695_v12, %v695_v12  ;;  %v698_v16 = vadd.f32 %v2048_v10, %v697_v14  ;;  %v2165_v17 = vpop.f32.mrb[3].mxu0 }
 0x177   : > { %v703_v18 = vmul.f32 %v701_v15, %v695_v12  ;;  %v702_v19 = vmul.f32 %v698_v16, %v698_v16 }
 0x179   : > { %v705_v20 = vmul.f32 0.044715, %v703_v18  ;;  %v704_v21 = vmul.f32 %v702_v19, %v698_v16 }
 0x17b   : > { %v707_v22 = vadd.f32 %v705_v20, %v695_v12  ;;  %v706_v23 = vmul.f32 0.044715, %v704_v21 }
 0x17d   : > { %v709_v24 = vmul.f32 0.7978846, %v707_v22  ;;  %v708_v25 = vadd.f32 %v706_v23, %v698_v16 }
 0x17f   : > { %v710_v26 = vmul.f32 0.7978846, %v708_v25  ;;  %2384 = vtanh.f32 %v709_v24 }
 0x181   : > { %2386 = vtanh.f32 %v710_v26 }
 0x189   : > { %v2385_v27 = vpop.eup %2384 }
 0x18a   : > { %v713_v28 = vadd.f32 1.0, %v2385_v27 }
 0x18b   : > { %v2387_v29 = vpop.eup %2386 }
 0x18c   : > { %v715_v30 = vmul.f32 0.5, %v713_v28  ;;  %v714_v31 = vadd.f32 1.0, %v2387_v29 }
 0x18e   : > { %v717_v33 = vmul.f32 %v715_v30, %v695_v12  ;;  %v716_v34 = vmul.f32 0.5, %v714_v31 }
 0x190   : > { %v721_v36 = vadd.f32 %v719_v32, %v717_v33  ;;  %v718_v37 = vmul.f32 %v716_v34, %v698_v16 }
 0x192   : > { %v726_v38 = vsel %vm725_vm1, %v721_v36, 0.0  ;;  %v722_v39 = vadd.f32 %v720_v35, %v718_v37 }
 0x193   : > { %727 = vadd.xlane.f32.xlu0 %v726_v38 }
 0x194   : > { %v729_v40 = vsel %vm725_vm1, %v722_v39, 0.0 }
 0x197   : > { %730 = vadd.xlane.f32.xlu0 %v729_v40 }
 0x220   : > { %v728_v41 = vpop.xlane.xlu0 %727 }
 0x221   : > { %v733_v42 = vmul.f32 0.03125, %v728_v41 }
 0x223   : > { %v735_v43 = vsub.f32 %v721_v36, %v733_v42 }
 0x224   : > { %v731_v44 = vpop.xlane.xlu0 %730 }
 0x225   : > { %v734_v45 = vmul.f32 0.03125, %v731_v44  ;;  %v737_v46 = vmul.f32 %v735_v43, %v735_v43 }
 0x227   : > { %v736_v47 = vsub.f32 %v722_v39, %v734_v45  ;;  %v739_v48 = vsel %vm725_vm1, %v737_v46, 0.0 }
 0x228   : > { %740 = vadd.xlane.f32.xlu1 %v739_v48 }
 0x229   : > { %v738_v49 = vmul.f32 %v736_v47, %v736_v47 }
 0x22b   : > { %v742_v50 = vsel %vm725_vm1, %v738_v49, 0.0 }
 0x22c   : > { %743 = vadd.xlane.f32.xlu1 %v742_v50 }
 0x2b5   : > { %v741_v51 = vpop.xlane.xlu1 %740 }
 0x2b6   : > { %v745_v52 = vmul.f32 0.03125, %v741_v51 }
 0x2b8   : > { %v747_v53 = vadd.f32 1e-05, %v745_v52 }
 0x2b9   : > { %v744_v54 = vpop.xlane.xlu1 %743 }
 0x2ba   : > { %2388 = vrsqrt.f32 %v747_v53  ;;  %v746_v55 = vmul.f32 0.03125, %v744_v54 }
 0x2bc   : > { %v748_v56 = vadd.f32 1e-05, %v746_v55 }
 0x2be   : > { %2390 = vrsqrt.f32 %v748_v56 }
 0x2c4   : > { %v2389_v57 = vpop.eup %2388 }
 0x2c5   : > { %v751_v59 = vmul.f32 %v2389_v57, %v735_v43 }
 0x2c7   : > { %v757_v61 = vmul.f32 %v2058_v58, %v751_v59 }
 0x2c8   : > { %v2391_v62 = vpop.eup %2390 }
 0x2c9   : > { %v763_v63 = vadd.f32 %v2059_v60, %v757_v61  ;;  %v752_v0 = vmul.f32 %v2391_v62, %v736_v47 }
 0x2cb   : > { %765 = vst.msk [vmem:[#allocation2] sm:$0xff] %vm725_vm1, %v763_v63  ;;  %v758_v1 = vmul.f32 %v2058_v58, %v752_v0 }
 0x2cd   : > { %v764_v2 = vadd.f32 %v2059_v60, %v758_v1 }
 0x2cf   : > { %766 = vst.msk [vmem:[#allocation2 + $0x8] sm:$0xff] %vm725_vm1, %v764_v2 }
 0x2d0 PF: > { %v2392_v3 = vld [vmem:[%s2893_s0] sm:$0xff]   ;;  %v834_v4 = vlaneseq  ;;  %v2612_v5 = vmov 0.0   ;;  %v2393_v6 = vld [vmem:[%s2893_s0 + $0x8] sm:$0xff]   ;;  %vm2613_vm2 = vmmov 0   ;;  %vm789_vm3 = vcmask 261120   ;;  %s2614_s0 = smov 32   ;;  %s3289_s14 = scalar_lea.vmem %s3222_s2, %s2874_s27 }
 0x2d1   : > { %2166 = vmatprep.subr.bf16.mxu1 %v2612_v5  ;;  %2180 = vmatprep.subr.bf16.mxu0 %v2612_v5  ;;  %v2970_v10 = vld [vmem:[%s2914_s3] sm:$0xff]  ;;  %s2615_s24 = smov 88   ;;  %s2616_s26 = smov 96   ;;  %vm874_vm4 = vcmask 64512   ;;  %vm922_vm5 = vcmask 130048   ;;  %vm1124_vm6 = vcmask 1043456  }
 0x2d2   : > { %2167 = vmatpush3.bf16.msra.mxu1 %v2392_v3  ;;  %2170 = vmatprep.mubr.msk.bf16.mxu1 %vm2613_vm2, %v2612_v5  ;;  %v2962_v7 = vld [vmem:[#allocation2] sm:$0xff]  ;;  %v2966_v9 = vshrl.u32 %v834_v4, 7  ;;  %s2617_s4 = smov 120   ;;  %s2618_s27 = smov 64   ;;  %vm1732_vm7 = vcmask 523264  }
 0x2d3   : > { %2168 = vmatprep.subr.bf16.mxu1 %v2612_v5  ;;  %2182 = vmatprep.mubr.msk.bf16.mxu0 %vm2613_vm2, %v2612_v5  ;;  %v3017_v34 = vld [vmem:[%s3289_s14] ss:$0 sm:$0xff]  ;;  %s2619_s17 = smov 80   ;;  %s2620_s22 = smov 112  }
 0x2d4   : > { %v845_v11 = vsub.s32 1, %v2966_v9  ;;  %v836_v14 = vsub.s32 0, %v2966_v9  ;;  %v856_v51 = vsub.s32 2, %v2966_v9  ;;  %s2621_s18 = smov 56   ;;  %s2622_s19 = smov 48  }
 0x2d5   : > { %s2623_s25 = smov 72   ;;  %s2624_s29 = smov 104  }
 0x2d6   : > { %v2964_v8 = vld [vmem:[#allocation2 + $0x8] sm:$0xff]  ;;  %2169 = vmatpush3.bf16.msra.mxu1 %v2393_v6  ;;  %v846_v13 = vrot.slane %v2970_v10, %v845_v11  ;;  %v837_v15 = vrot.slane %v2970_v10, %v836_v14  ;;  %v857_v52 = vrot.slane %v2970_v10, %v856_v51  ;;  %s2625_s1 = smov 40   ;;  %p2088_p0 = scmp.ne.s32.totalorder %s2588_s20, 1 }
 0x2d7   : > { %v772_v12 = vpack.c.bf16 %v2964_v8, %v2962_v7  ;;  %2174 = vmatprep.subr.bf16.mxu1 %v2612_v5 }
 0x2d8   : > { %848 = vrot.lane.b32.xlu0 %v846_v13, %s2614_s0 }
 0x2d9   : > { %2171 = vmatmul.mubr.msk.bf16.vlgmr.msra.gmra.mrb[0].mxu1 %vm789_vm3, %v772_v12 }
 0x2da   : > { %2176 = vmatprep.mubr.msk.bf16.mxu1 %vm2613_vm2, %v2612_v5 }
 0x34a   : > { %v849_v16 = vpop.permute.xlu0 %848 }
 0x3ac   : > { %v2986_v17 = vpop.f32.mrb[0].mxu1 }
 0x3ad   : > { %v838_v18 = vadd.f32 %v837_v15, %v2986_v17  ;;  %v2172_v19 = vpop.f32.mrb[1].mxu1  ;;  %v851_v21 = vadd.f32 %v849_v16, %v2986_v17 }
 0x3ae   : > { %v2989_v20 = vpop.f32.mrb[2].mxu1 }
 0x3af   : > { %v839_v22 = vadd.f32 %v837_v15, %v2989_v20  ;;  %v852_v23 = vadd.f32 %v849_v16, %v2989_v20  ;;  %v2173_v24 = vpop.f32.mrb[3].mxu1  ;;  %v840_v25 = vmul.f32 0.35355338, %v838_v18 }
 0x3b1   : > { %v841_v26 = vmul.f32 0.35355338, %v839_v22  ;;  %v2994_v27 = vpack.c.bf16 %v852_v23, %v851_v21 }
 0x3b3   : > { %v2996_v28 = vpack.c.bf16 %v841_v26, %v840_v25  ;;  %999 = vrot.lane.b32.xlu1 %v2994_v27, %s2615_s24  ;;  %872 = vrot.lane.b32.xlu0 %v2994_v27, %s2616_s26 }
 0x3b7   : > { %997 = vrot.lane.b32.xlu1 %v2996_v28, %s2617_s4 }
 0x425   : > { %v873_v29 = vpop.permute.xlu0 %872  ;;  %v1000_v31 = vpop.permute.xlu1 %999 }
 0x426   : > { %v879_v30 = vsel %vm874_vm4, %v873_v29, 0  ;;  %v1005_v32 = vsel %vm874_vm4, %v1000_v31, 0 }
 0x427   : > { %2175 = vmatpush3.bf16.xpose.msra.mxu1 %v879_v30 }
 0x428   : > { %2186 = vmatprep.subr.bf16.mxu1 %v2612_v5 }
 0x429   : > { %v998_v33 = vpop.permute.xlu1 %997 }
 0x42e   : > { %2177 = vmatmul.mubr.msk.bf16.vlgmr.msra.gmra.mrb[4].mxu1 %vm874_vm4, %v2996_v28 }
 0x42f   : > { %2187 = vmatpush3.bf16.xpose.msra.mxu1 %v1005_v32  ;;  %2188 = vmatprep.mubr.msk.bf16.mxu1 %vm2613_vm2, %v2612_v5 }
 0x430   : > { %2198 = vmatprep.subr.bf16.mxu1 %v2612_v5 }
 0x436   : > { %2189 = vmatmul.mubr.msk.bf16.vlgmr.msra.gmra.mrb[8].mxu1 %vm874_vm4, %v998_v33 }
 0x437   : > { %2200 = vmatprep.mubr.msk.bf16.mxu1 %vm2613_vm2, %v2612_v5 }
 0x501   : > { %v915_v35 = vpop.f32.mrb[4].mxu1 }
 0x502   : > { %v916_v36 = vadd.f32 %v3017_v34, %v915_v35  ;;  %v2178_v37 = vpop.f32.mrb[5].mxu1 }
 0x503   : > { %v918_v38 = vpop.f32.mrb[6].mxu1 }
 0x504   : > { %v919_v39 = vadd.f32 %v3017_v34, %v918_v38  ;;  %v2179_v40 = vpop.f32.mrb[7].mxu1  ;;  %v923_v41 = vsel %vm922_vm5, %v916_v36, -inf  ;;  %v995_v38 = vld [vmem:[%s2898_s16] sm:$0xf] }
 0x505   : > { %924 = vmax.xlane.f32.xlu0 %v923_v41  ;;  %v2068_v40 = vld [vmem:[%s2898_s16 + $0x4] sm:$0xf] }
 0x506   : > { %v926_v42 = vsel %vm922_vm5, %v919_v39, -inf  ;;  %v1126_v41 = vsel %vm1124_vm6, %v2068_v40, 0 }
 0x507   : > { %927 = vmax.xlane.f32.xlu1 %v926_v42  ;;  %2199 = vmatpush3.bf16.msra.mxu1 %v1126_v41 }
 0x508   : > { %2210 = vmatprep.subr.bf16.mxu1 %v2612_v5 }
 0x509   : > { %v1041_v43 = vpop.f32.mrb[8].mxu1 }
 0x50a   : > { %v1042_v44 = vadd.f32 %v3017_v34, %v1041_v43  ;;  %v2190_v45 = vpop.f32.mrb[9].mxu1 }
 0x50b   : > { %v1044_v46 = vpop.f32.mrb[10].mxu1 }
 0x50c   : > { %v1045_v47 = vadd.f32 %v3017_v34, %v1044_v46  ;;  %v2191_v48 = vpop.f32.mrb[11].mxu1  ;;  %v1048_v49 = vsel %vm922_vm5, %v1042_v44, -inf }
 0x50d   : > { %1049 = vmax.xlane.f32.xlu0 %v1048_v49 }
 0x50e   : > { %v1051_v50 = vsel %vm922_vm5, %v1045_v47, -inf }
 0x511   : > { %1052 = vmax.xlane.f32.xlu0 %v1051_v50 }
 0x518   : > { %859 = vrot.lane.b32.xlu1 %v857_v52, %s2618_s27 }
 0x592   : > { %v925_v53 = vpop.xlane.xlu0 %924 }
 0x593   : > { %v929_v54 = vsub.f32 %v916_v36, %v925_v53 }
 0x594   : > { %v928_v55 = vpop.xlane.xlu1 %927 }
 0x595   : > { %v931_v56 = vmul.f32 1.442695, %v929_v54  ;;  %v930_v57 = vsub.f32 %v919_v39, %v928_v55  ;;  %v1173_v39 = vsel %vm1124_vm6, %v995_v38, 0 }
 0x597   : > { %2400 = vpow2.f32 %v931_v56  ;;  %v933_v58 = vmul.f32 1.442695, %v930_v57 }
 0x598   : > { %v860_v59 = vpop.permute.xlu1 %859 }
 0x599   : > { %2402 = vpow2.f32 %v933_v58  ;;  %v862_v60 = vadd.f32 %v860_v59, %v2986_v17  ;;  %v863_v61 = vadd.f32 %v860_v59, %v2989_v20 }
 0x59a   : > { %v1050_v62 = vpop.xlane.xlu0 %1049 }
 0x59b   : > { %v3031_v63 = vpack.c.bf16 %v863_v61, %v862_v60  ;;  %v1054_v0 = vsub.f32 %v1042_v44, %v1050_v62 }
 0x59d   : > { %v1056_v1 = vmul.f32 1.442695, %v1054_v0  ;;  %947 = vrot.lane.b32.xlu1 %v3031_v63, %s2618_s27 }
 0x59e   : > { %v1053_v2 = vpop.xlane.xlu0 %1052 }
 0x59f   : > { %2404 = vpow2.f32 %v1056_v1  ;;  %v1055_v3 = vsub.f32 %v1045_v47, %v1053_v2 }
 0x5a1   : > { %v2401_v4 = vpop.eup %2400  ;;  %v1058_v6 = vmul.f32 1.442695, %v1055_v3  ;;  %1218 = vrot.lane.b32.xlu1 %v2994_v27, %s2619_s17 }
 0x5a2   : > { %v935_v11 = vsel %vm922_vm5, %v2401_v4, 0.0 }
 0x5a3   : > { %v2403_v12 = vpop.eup %2402  ;;  %2406 = vpow2.f32 %v1058_v6  ;;  %936 = vadd.xlane.f32.xlu0 %v935_v11 }
 0x5a4   : > { %v938_v13 = vsel %vm922_vm5, %v2403_v12, 0.0 }
 0x5a5   : > { %1216 = vrot.lane.b32.xlu1 %v2996_v28, %s2620_s22 }
 0x5a7   : > { %939 = vadd.xlane.f32.xlu0 %v938_v13 }
 0x5a9   : > { %v2405_v15 = vpop.eup %2404 }
 0x5aa   : > { %v1060_v16 = vsel %vm922_vm5, %v2405_v15, 0.0 }
 0x5ab   : > { %1061 = vadd.xlane.f32.xlu0 %v1060_v16 }
 0x5ad   : > { %v2407_v17 = vpop.eup %2406 }
 0x5ae   : > { %v1063_v18 = vsel %vm922_vm5, %v2407_v17, 0.0 }
 0x5af   : > { %1064 = vadd.xlane.f32.xlu0 %v1063_v18 }
 0x5c5   : > { %1071 = vrot.lane.b32.xlu0 %v3031_v63, %s2621_s18 }
 0x60f   : > { %v948_v19 = vpop.permute.xlu1 %947 }
 0x610   : > { %2181 = vmatpush3.bf16.msra.mxu0 %v948_v19 }
 0x611   : > { %2192 = vmatprep.subr.bf16.mxu0 %v2612_v5 }
 0x613   : > { %v1219_v49 = vpop.permute.xlu1 %1218 }
 0x614   : > { %v1224_v53 = vsel %vm874_vm4, %v1219_v49, 0 }
 0x617   : > { %v1217_v54 = vpop.permute.xlu1 %1216 }
 0x630   : > { %v937_v20 = vpop.xlane.xlu0 %936 }
 0x631   : > { %2408 = vrcp.f32 %v937_v20 }
 0x634   : > { %v940_v21 = vpop.xlane.xlu0 %939 }
 0x635   : > { %2410 = vrcp.f32 %v940_v21 }
 0x638   : > { %v1062_v22 = vpop.xlane.xlu0 %1061 }
 0x639   : > { %2412 = vrcp.f32 %v1062_v22 }
 0x63b   : > { %v2409_v24 = vpop.eup %2408 }
 0x63c   : > { %v1065_v23 = vpop.xlane.xlu0 %1064  ;;  %v943_v26 = vmul.f32 %v2409_v24, %v2401_v4 }
 0x63d   : > { %2414 = vrcp.f32 %v1065_v23 }
 0x63f   : > { %v2411_v25 = vpop.eup %2410 }
 0x640   : > { %v944_v29 = vmul.f32 %v2411_v25, %v2403_v12  ;;  %v1072_v31 = vpop.permute.xlu0 %1071 }
 0x642   : > { %v945_v30 = vpack.c.bf16 %v944_v29, %v943_v26 }
 0x643   : > { %v2413_v32 = vpop.eup %2412 }
 0x644   : > { %2183 = vmatmul.mubr.msk.bf16.vlgmr.msra.gmra.mrb[0].mxu0 %vm922_vm5, %v945_v30  ;;  %v1068_v35 = vmul.f32 %v2413_v32, %v2405_v15 }
 0x645   : > { %2193 = vmatpush3.bf16.msra.mxu0 %v1072_v31  ;;  %2194 = vmatprep.mubr.msk.bf16.mxu0 %vm2613_vm2, %v2612_v5 }
 0x646   : > { %2204 = vmatprep.subr.bf16.mxu0 %v2612_v5 }
 0x647   : > { %v2415_v33 = vpop.eup %2414 }
 0x648   : > { %v1069_v36 = vmul.f32 %v2415_v33, %v2407_v17 }
 0x64a   : > { %v1070_v37 = vpack.c.bf16 %v1069_v36, %v1068_v35 }
 0x64c   : > { %2195 = vmatmul.mubr.msk.bf16.vlgmr.msra.gmra.mrb[4].mxu0 %vm922_vm5, %v1070_v37 }
 0x64d   : > { %2206 = vmatprep.mubr.msk.bf16.mxu0 %vm2613_vm2, %v2612_v5  ;;  %2205 = vmatpush3.bf16.msra.mxu0 %v1173_v39 }
 0x64e   : > { %2216 = vmatprep.subr.bf16.mxu0 %v2612_v5 }
 0x717   : > { %v987_v42 = vpop.f32.mrb[0].mxu0 }
 0x718   : > { %v2184_v43 = vpop.f32.mrb[1].mxu0 }
 0x719   : > { %v990_v44 = vpop.f32.mrb[2].mxu0 }
 0x71a   : > { %v994_v45 = vpack.c.bf16 %v990_v44, %v987_v42  ;;  %v2185_v46 = vpop.f32.mrb[3].mxu0 }
 0x71c   : > { %2207 = vmatmul.mubr.msk.bf16.vlgmr.msra.gmra.mrb[8].mxu0 %vm874_vm4, %v994_v45 }
 0x71d   : > { %2218 = vmatprep.mubr.msk.bf16.mxu0 %vm2613_vm2, %v2612_v5 }
 0x71f   : > { %v1111_v47 = vpop.f32.mrb[4].mxu0 }
 0x720   : > { %v2196_v48 = vpop.f32.mrb[5].mxu0 }
 0x721   : > { %v1114_v50 = vpop.f32.mrb[6].mxu0 }
 0x722   : > { %v1118_v51 = vpack.c.bf16 %v1114_v50, %v1111_v47  ;;  %v2197_v52 = vpop.f32.mrb[7].mxu0 }
 0x724   : > { %2201 = vmatmul.mubr.msk.bf16.vlgmr.msra.gmra.mrb[12].mxu1 %vm874_vm4, %v1118_v51 }
 0x725   : > { %2211 = vmatpush3.bf16.xpose.msra.mxu1 %v1224_v53  ;;  %2212 = vmatprep.mubr.msk.bf16.mxu1 %vm2613_vm2, %v2612_v5 }
 0x726   : > { %2222 = vmatprep.subr.bf16.mxu1 %v2612_v5 }
 0x72c   : > { %2213 = vmatmul.mubr.msk.bf16.vlgmr.msra.gmra.mrb[16].mxu1 %vm874_vm4, %v1217_v54 }
 0x72d   : > { %2224 = vmatprep.mubr.msk.bf16.mxu1 %vm2613_vm2, %v2612_v5 }
 0x7ef   : > { %v1209_v55 = vpop.f32.mrb[8].mxu0 }
 0x7f0   : > { %v2208_v56 = vpop.f32.mrb[9].mxu0 }
 0x7f1   : > { %v1212_v57 = vpop.f32.mrb[10].mxu0 }
 0x7f2   : > { %v2209_v58 = vpop.f32.mrb[11].mxu0 }
 0x7f7   : > { %v1162_v59 = vpop.f32.mrb[12].mxu1 }
 0x7f8   : > { %v3066_v60 = vadd.f32 %v1209_v55, %v1162_v59  ;;  %v2202_v61 = vpop.f32.mrb[13].mxu1 }
 0x7f9   : > { %v1165_v62 = vpop.f32.mrb[14].mxu1 }
 0x7fa   : > { %v3068_v0 = vadd.f32 %v1212_v57, %v1165_v62  ;;  %v2203_v1 = vpop.f32.mrb[15].mxu1 }
 0x7fb   : > { %v2077_v1 = vld [vmem:[%s2898_s16 + $0xc] sm:$0xf] }
 0x7ff   : > { %v1260_v2 = vpop.f32.mrb[16].mxu1 }
 0x800   : > { %v1261_v3 = vadd.f32 %v3017_v34, %v1260_v2  ;;  %v2214_v4 = vpop.f32.mrb[17].mxu1  ;;  %v1517_v2 = vsel %vm1124_vm6, %v2077_v1, 0 }
 0x801   : > { %v1263_v6 = vpop.f32.mrb[18].mxu1 }
 0x802   : > { %v1264_v11 = vadd.f32 %v3017_v34, %v1263_v6  ;;  %v2215_v12 = vpop.f32.mrb[19].mxu1  ;;  %v1267_v13 = vsel %vm922_vm5, %v1261_v3, -inf }
 0x803   : > { %1268 = vmax.xlane.f32.xlu1 %v1267_v13 }
 0x804   : > { %v1270_v15 = vsel %vm922_vm5, %v1264_v11, -inf }
 0x805   : > { %1271 = vmax.xlane.f32.xlu0 %v1270_v15 }
 0x81b   : > { %1290 = vrot.lane.b32.xlu0 %v3031_v63, %s2622_s19 }
 0x890   : > { %v1269_v16 = vpop.xlane.xlu1 %1268 }
 0x891   : > { %v1273_v17 = vsub.f32 %v1261_v3, %v1269_v16 }
 0x892   : > { %v1272_v18 = vpop.xlane.xlu0 %1271 }
 0x893   : > { %v1275_v19 = vmul.f32 1.442695, %v1273_v17  ;;  %v1274_v20 = vsub.f32 %v1264_v11, %v1272_v18 }
 0x895   : > { %2416 = vpow2.f32 %v1275_v19  ;;  %v1277_v21 = vmul.f32 1.442695, %v1274_v20 }
 0x896   : > { %v1291_v22 = vpop.permute.xlu0 %1290 }
 0x897   : > { %2418 = vpow2.f32 %v1277_v21  ;;  %2217 = vmatpush3.bf16.msra.mxu0 %v1291_v22 }
 0x898   : > { %2228 = vmatprep.subr.bf16.mxu0 %v2612_v5 }
 0x89f   : > { %v2417_v23 = vpop.eup %2416 }
 0x8a0   : > { %v1279_v24 = vsel %vm922_vm5, %v2417_v23, 0.0 }
 0x8a1   : > { %v2419_v25 = vpop.eup %2418  ;;  %1280 = vadd.xlane.f32.xlu1 %v1279_v24 }
 0x8a2   : > { %v1282_v26 = vsel %vm922_vm5, %v2419_v25, 0.0 }
 0x8a5   : > { %1283 = vadd.xlane.f32.xlu1 %v1282_v26 }
 0x8b6   : > { %1391 = vrot.lane.b32.xlu1 %v2994_v27, %s2623_s25 }
 0x8ba   : > { %1389 = vrot.lane.b32.xlu1 %v2996_v28, %s2624_s29  ;;  %v2073_v28 = vld [vmem:[%s2898_s16 + $0x8] sm:$0xf] }
 0x8bb   : > { %v1344_v39 = vsel %vm1124_vm6, %v2073_v28, 0 }
 0x8bc   : > { %2223 = vmatpush3.bf16.msra.mxu1 %v1344_v39 }
 0x8bd   : > { %2234 = vmatprep.subr.bf16.mxu1 %v2612_v5 }
 0x92e   : > { %v1281_v29 = vpop.xlane.xlu1 %1280 }
 0x92f   : > { %2420 = vrcp.f32 %v1281_v29 }
 0x932   : > { %v1284_v30 = vpop.xlane.xlu1 %1283 }
 0x933   : > { %2422 = vrcp.f32 %v1284_v30 }
 0x936   : > { %v1392_v36 = vpop.permute.xlu1 %1391 }
 0x937   : > { %v1397_v38 = vsel %vm874_vm4, %v1392_v36, 0 }
 0x939   : > { %v2421_v31 = vpop.eup %2420 }
 0x93a   : > { %v1287_v33 = vmul.f32 %v2421_v31, %v2417_v23  ;;  %v1390_v27 = vpop.permute.xlu1 %1389 }
 0x93d   : > { %v2423_v32 = vpop.eup %2422 }
 0x93e   : > { %v1288_v35 = vmul.f32 %v2423_v32, %v2419_v25  ;;  %v1564_v25 = vsub.s32 3, %v2966_v9 }
 0x940   : > { %v1289_v37 = vpack.c.bf16 %v1288_v35, %v1287_v33  ;;  %v1565_v26 = vrot.slane %v2970_v10, %v1564_v25 }
 0x942   : > { %2219 = vmatmul.mubr.msk.bf16.vlgmr.msra.gmra.mrb[12].mxu0 %vm922_vm5, %v1289_v37 }
 0x943   : > { %2229 = vmatpush3.bf16.xpose.msra.mxu0 %v1397_v38  ;;  %2230 = vmatprep.mubr.msk.bf16.mxu0 %vm2613_vm2, %v2612_v5 }
 0x944   : > { %2240 = vmatprep.subr.bf16.mxu0 %v2612_v5 }
 0x94a   : > { %2231 = vmatmul.mubr.msk.bf16.vlgmr.msra.gmra.mrb[16].mxu0 %vm874_vm4, %v1390_v27 }
 0x94b   : > { %2242 = vmatprep.mubr.msk.bf16.mxu0 %vm2613_vm2, %v2612_v5  ;;  %2241 = vmatpush3.bf16.msra.mxu0 %v1517_v2 }
 0x94c   : > { %2254 = vmatprep.subr.bf16.mxu0 %v2612_v5 }
 0xa15   : > { %v1330_v40 = vpop.f32.mrb[12].mxu0 }
 0xa16   : > { %v2220_v41 = vpop.f32.mrb[13].mxu0 }
 0xa17   : > { %v1333_v42 = vpop.f32.mrb[14].mxu0 }
 0xa18   : > { %v1337_v43 = vpack.c.bf16 %v1333_v42, %v1330_v40  ;;  %v2221_v44 = vpop.f32.mrb[15].mxu0 }
 0xa1a   : > { %2225 = vmatmul.mubr.msk.bf16.vlgmr.msra.gmra.mrb[20].mxu1 %vm874_vm4, %v1337_v43 }
 0xa1b   : > { %2236 = vmatprep.mubr.msk.bf16.mxu1 %vm2613_vm2, %v2612_v5 }
 0xa1d   : > { %v1433_v45 = vpop.f32.mrb[16].mxu0 }
 0xa1e   : > { %v1434_v46 = vadd.f32 %v3017_v34, %v1433_v45  ;;  %v2232_v47 = vpop.f32.mrb[17].mxu0 }
 0xa1f   : > { %v1436_v48 = vpop.f32.mrb[18].mxu0 }
 0xa20   : > { %v1437_v49 = vadd.f32 %v3017_v34, %v1436_v48  ;;  %v2233_v50 = vpop.f32.mrb[19].mxu0  ;;  %v1440_v51 = vsel %vm922_vm5, %v1434_v46, -inf }
 0xa21   : > { %1441 = vmax.xlane.f32.xlu0 %v1440_v51 }
 0xa22   : > { %v1443_v52 = vsel %vm922_vm5, %v1437_v49, -inf }
 0xa23   : > { %1444 = vmax.xlane.f32.xlu1 %v1443_v52 }
 0xa34   : > { %1463 = vrot.lane.b32.xlu1 %v3031_v63, %s2625_s1 }
 0xaae   : > { %v1442_v53 = vpop.xlane.xlu0 %1441 }
 0xaaf   : > { %v1446_v54 = vsub.f32 %v1434_v46, %v1442_v53 }
 0xab0   : > { %v1445_v55 = vpop.xlane.xlu1 %1444 }
 0xab1   : > { %v1448_v56 = vmul.f32 1.442695, %v1446_v54  ;;  %v1447_v57 = vsub.f32 %v1437_v49, %v1445_v55  ;;  %v2395_v49 = vld [vmem:[%s2903_s28 + $0x8] sm:$0xff]  }
 0xab3   : > { %2424 = vpow2.f32 %v1448_v56  ;;  %v1450_v58 = vmul.f32 1.442695, %v1447_v57  ;;  %v1599_v56 = vsub.s32 4, %v2966_v9 }
 0xab4   : > { %v1464_v59 = vpop.permute.xlu1 %1463 }
 0xab5   : > { %2426 = vpow2.f32 %v1450_v58  ;;  %2235 = vmatpush3.bf16.msra.mxu1 %v1464_v59  ;;  %v1600_v58 = vrot.slane %v2970_v10, %v1599_v56 }
 0xab6   : > { %2246 = vmatprep.subr.bf16.mxu1 %v2612_v5 }
 0xabd   : > { %v2425_v34 = vpop.eup %2424 }
 0xabe   : > { %v1452_v61 = vsel %vm922_vm5, %v2425_v34, 0.0 }
 0xabf   : > { %v2427_v62 = vpop.eup %2426  ;;  %1453 = vadd.xlane.f32.xlu0 %v1452_v61 }
 0xac0   : > { %v1455_v63 = vsel %vm922_vm5, %v2427_v62, 0.0 }
 0xac3   : > { %1456 = vadd.xlane.f32.xlu0 %v1455_v63 }
 0xaed   : > { %v1380_v3 = vpop.f32.mrb[20].mxu1 }
 0xaee   : > { %v1387_v4 = vadd.f32 %v1380_v3, %v3066_v60  ;;  %v2226_v6 = vpop.f32.mrb[21].mxu1 }
 0xaef   : > { %v1383_v11 = vpop.f32.mrb[22].mxu1 }
 0xaf0   : > { %v1388_v12 = vadd.f32 %v1383_v11, %v3068_v0  ;;  %v2227_v13 = vpop.f32.mrb[23].mxu1  ;;  %v2396_v11 = vld [vmem:[%s2909_s13] sm:$0xff]  }
 0xaf1   : > { %v2398_v13 = vld [vmem:[%s2909_s13 + $0x10] sm:$0xff]  }
 0xb4c   : > { %v1454_v15 = vpop.xlane.xlu0 %1453 }
 0xb4d   : > { %2428 = vrcp.f32 %v1454_v15  ;;  %v2399_v15 = vld [vmem:[%s2909_s13 + $0x18] sm:$0xff]  }
 0xb50   : > { %v1457_v16 = vpop.xlane.xlu0 %1456 }
 0xb51   : > { %2430 = vrcp.f32 %v1457_v16  ;;  %v2079_v16 = vld [vmem:[%s577_s23] ss:$0 sm:$0xff] }
 0xb57   : > { %v2429_v17 = vpop.eup %2428 }
 0xb58   : > { %v1460_v19 = vmul.f32 %v2429_v17, %v2425_v34  ;;  %v1605_v34 = vsub.s32 5, %v2966_v9 }
 0xb5a   : > { %v1606_v1 = vrot.slane %v2970_v10, %v1605_v34 }
 0xb5b   : > { %v2431_v18 = vpop.eup %2430 }
 0xb5c   : > { %v1461_v20 = vmul.f32 %v2431_v18, %v2427_v62 }
 0xb5e   : > { %v1462_v21 = vpack.c.bf16 %v1461_v20, %v1460_v19 }
 0xb60   : > { %2237 = vmatmul.mubr.msk.bf16.vlgmr.msra.gmra.mrb[24].mxu1 %vm922_vm5, %v1462_v21 }
 0xb61   : > { %2250 = vmatprep.mubr.msk.bf16.mxu1 %vm2613_vm2, %v2612_v5 }
 0xc33   : > { %v1503_v60 = vpop.f32.mrb[24].mxu1 }
 0xc34   : > { %v2238_v22 = vpop.f32.mrb[25].mxu1 }
 0xc35   : > { %v1506_v23 = vpop.f32.mrb[26].mxu1 }
 0xc36   : > { %v1510_v24 = vpack.c.bf16 %v1506_v23, %v1503_v60  ;;  %v2239_v0 = vpop.f32.mrb[27].mxu1 }
 0xc38   : > { %2243 = vmatmul.mubr.msk.bf16.vlgmr.msra.gmra.mrb[20].mxu0 %vm874_vm4, %v1510_v24 }
 0xc39   : > { %2262 = vmatprep.mubr.msk.bf16.mxu0 %vm2613_vm2, %v2612_v5  ;;  %2255 = vmatpush3.bf16.msra.mxu0 %v2396_v11 }
 0xc3a   : > { %2256 = vmatprep.subr.bf16.mxu0 %v2612_v5 }
 0xd0b   : > { %v1553_v29 = vpop.f32.mrb[20].mxu0 }
 0xd0c   : > { %v1560_v30 = vadd.f32 %v1553_v29, %v1387_v4  ;;  %v2244_v31 = vpop.f32.mrb[21].mxu0 }
 0xd0d   : > { %v1556_v32 = vpop.f32.mrb[22].mxu0 }
 0xd0e   : > { %v1566_v33 = vadd.f32 %v1565_v26, %v1560_v30  ;;  %v1561_v35 = vadd.f32 %v1556_v32, %v1388_v12  ;;  %v2245_v36 = vpop.f32.mrb[23].mxu0  ;;  %v2397_v12 = vld [vmem:[%s2909_s13 + $0x8] sm:$0xff]  }
 0xd0f   : > { %2257 = vmatpush3.bf16.msra.mxu0 %v2397_v12 }
 0xd10   : > { %v1567_v37 = vadd.f32 %v1565_v26, %v1561_v35  ;;  %v1568_v38 = vadd.f32 %v1566_v33, %v2962_v7  ;;  %2258 = vmatprep.subr.bf16.mxu0 %v2612_v5 }
 0xd12   : > { %v1570_v27 = vsel %vm789_vm3, %v1568_v38, 0.0  ;;  %v1569_v28 = vadd.f32 %v1567_v37, %v2964_v8  ;;  %v2394_v8 = vld [vmem:[%s2903_s28] sm:$0xff]  }
 0xd13   : > { %1571 = vadd.xlane.f32.xlu0 %v1570_v27  ;;  %2247 = vmatpush3.bf16.msra.mxu1 %v2394_v8 }
 0xd14   : > { %v1573_v39 = vsel %vm789_vm3, %v1569_v28, 0.0  ;;  %2248 = vmatprep.subr.bf16.mxu1 %v2612_v5  ;;  %2259 = vmatpush3.bf16.msra.mxu0 %v2398_v13 }
 0xd15   : > { %2260 = vmatprep.subr.bf16.mxu0 %v2612_v5 }
 0xd17   : > { %1574 = vadd.xlane.f32.xlu0 %v1573_v39  ;;  %2249 = vmatpush3.bf16.msra.mxu1 %v2395_v49 }
 0xd18   : > { %2261 = vmatpush3.bf16.msra.mxu0 %v2399_v15 }
 0xda0   : > { %v1572_v40 = vpop.xlane.xlu0 %1571 }
 0xda1   : > { %v1577_v41 = vmul.f32 0.03125, %v1572_v40  ;;  %v1706_v40 = vsub.s32 6, %v2966_v9 }
 0xda3   : > { %v1579_v42 = vsub.f32 %v1568_v38, %v1577_v41  ;;  %v1707_v41 = vrot.slane %v2970_v10, %v1706_v40 }
 0xda4   : > { %v1575_v43 = vpop.xlane.xlu0 %1574 }
 0xda5   : > { %v1578_v44 = vmul.f32 0.03125, %v1575_v43  ;;  %v1581_v45 = vmul.f32 %v1579_v42, %v1579_v42 }
 0xda7   : > { %v1580_v46 = vsub.f32 %v1569_v28, %v1578_v44  ;;  %v1583_v47 = vsel %vm789_vm3, %v1581_v45, 0.0 }
 0xda8   : > { %1584 = vadd.xlane.f32.xlu0 %v1583_v47 }
 0xda9   : > { %v1582_v7 = vmul.f32 %v1580_v46, %v1580_v46 }
 0xdab   : > { %v1586_v48 = vsel %vm789_vm3, %v1582_v7, 0.0 }
 0xdac   : > { %1587 = vadd.xlane.f32.xlu0 %v1586_v48 }
 0xe35   : > { %v1585_v50 = vpop.xlane.xlu0 %1584 }
 0xe36   : > { %v1589_v51 = vmul.f32 0.03125, %v1585_v50 }
 0xe38   : > { %v1591_v52 = vadd.f32 1e-05, %v1589_v51 }
 0xe39   : > { %v1588_v53 = vpop.xlane.xlu0 %1587 }
 0xe3a   : > { %2432 = vrsqrt.f32 %v1591_v52  ;;  %v1590_v54 = vmul.f32 0.03125, %v1588_v53 }
 0xe3c   : > { %v1592_v55 = vadd.f32 1e-05, %v1590_v54 }
 0xe3e   : > { %2434 = vrsqrt.f32 %v1592_v55 }
 0xe44   : > { %v2433_v57 = vpop.eup %2432 }
 0xe45   : > { %v1595_v59 = vmul.f32 %v2433_v57, %v1579_v42 }
 0xe47   : > { %v1601_v62 = vmul.f32 %v1600_v58, %v1595_v59 }
 0xe48   : > { %v2435_v61 = vpop.eup %2434 }
 0xe49   : > { %v1596_v63 = vmul.f32 %v2435_v61, %v1580_v46  ;;  %v1607_v3 = vadd.f32 %v1606_v1, %v1601_v62 }
 0xe4b   : > { %v1602_v2 = vmul.f32 %v1600_v58, %v1596_v63 }
 0xe4d   : > { %v1608_v4 = vadd.f32 %v1606_v1, %v1602_v2 }
 0xe4f   : > { %v1609_v6 = vpack.c.bf16 %v1608_v4, %v1607_v3 }
 0xe51   : > { %2251 = vmatmul.mubr.msk.bf16.vlgmr.msra.gmra.mrb[28].mxu1 %vm789_vm3, %v1609_v6 }
 0xf24   : > { %v1670_v17 = vpop.f32.mrb[28].mxu1 }
 0xf25   : > { %v1671_v18 = vadd.f32 %v2079_v16, %v1670_v17  ;;  %v2252_v19 = vpop.f32.mrb[29].mxu1 }
 0xf26   : > { %v1673_v20 = vpop.f32.mrb[30].mxu1 }
 0xf27   : > { %v1677_v21 = vmul.f32 %v1671_v18, %v1671_v18  ;;  %v1674_v60 = vadd.f32 %v2079_v16, %v1673_v20  ;;  %v2253_v22 = vpop.f32.mrb[31].mxu1 }
 0xf29   : > { %v1679_v23 = vmul.f32 %v1677_v21, %v1671_v18  ;;  %v1678_v24 = vmul.f32 %v1674_v60, %v1674_v60 }
 0xf2b   : > { %v1681_v0 = vmul.f32 0.044715, %v1679_v23  ;;  %v1680_v25 = vmul.f32 %v1678_v24, %v1674_v60 }
 0xf2d   : > { %v1683_v26 = vadd.f32 %v1681_v0, %v1671_v18  ;;  %v1682_v5 = vmul.f32 0.044715, %v1680_v25 }
 0xf2f   : > { %v1685_v29 = vmul.f32 0.7978846, %v1683_v26  ;;  %v1684_v30 = vadd.f32 %v1682_v5, %v1674_v60 }
 0xf31   : > { %2436 = vtanh.f32 %v1685_v29  ;;  %v1686_v31 = vmul.f32 0.7978846, %v1684_v30 }
 0xf33   : > { %2438 = vtanh.f32 %v1686_v31 }
 0xf3b   : > { %v2437_v32 = vpop.eup %2436 }
 0xf3c   : > { %v1689_v33 = vadd.f32 1.0, %v2437_v32 }
 0xf3d   : > { %v2439_v35 = vpop.eup %2438 }
 0xf3e   : > { %v1691_v36 = vmul.f32 0.5, %v1689_v33  ;;  %v1690_v37 = vadd.f32 1.0, %v2439_v35 }
 0xf40   : > { %v1692_v38 = vmul.f32 0.5, %v1690_v37  ;;  %v1693_v27 = vmul.f32 %v1691_v36, %v1671_v18 }
 0xf42   : > { %v1694_v28 = vmul.f32 %v1692_v38, %v1674_v60 }
 0xf44   : > { %v1695_v39 = vpack.c.bf16 %v1694_v28, %v1693_v27 }
 0xf46   : > { %2263 = vmatmul.mubr.msk.bf16.vlgmr.msra.gmra.mrb[24].mxu0 %vm1732_vm7, %v1695_v39 }
0x1019   : > { %v1770_v42 = vpop.f32.mrb[24].mxu0 }
0x101a   : > { %v1771_v43 = vadd.f32 %v1770_v42, %v1707_v41  ;;  %v2264_v44 = vpop.f32.mrb[25].mxu0 }
0x101b   : > { %v1773_v45 = vpop.f32.mrb[26].mxu0 }
0x101c   : > { %v1774_v46 = vadd.f32 %v1773_v45, %v1707_v41  ;;  %v2265_v47 = vpop.f32.mrb[27].mxu0  ;;  %v1777_v7 = vadd.f32 %v1771_v43, %v1607_v3  ;;  %v1807_v3 = vsub.s32 7, %v2966_v9 }
0x101e   : > { %v1779_v48 = vsel %vm789_vm3, %v1777_v7, 0.0  ;;  %v1778_v8 = vadd.f32 %v1774_v46, %v1608_v4  ;;  %v771_v4 = vld [vmem:[%s2914_s3 + $0x8] sm:$0xff]  ;;  %v1808_v6 = vrot.slane %v2970_v10, %v1807_v3 }
0x101f   : > { %1780 = vadd.xlane.f32.xlu1 %v1779_v48  ;;  %v1814_v12 = vrot.slane %v771_v4, %v836_v14 }
0x1020   : > { %v1782_v49 = vsel %vm789_vm3, %v1778_v8, 0.0 }
0x1021   : > { %1783 = vadd.xlane.f32.xlu0 %v1782_v49 }
0x10ac   : > { %v1781_v50 = vpop.xlane.xlu1 %1780 }
0x10ad   : > { %v1785_v51 = vmul.f32 0.03125, %v1781_v50 }
0x10ae   : > { %v1784_v52 = vpop.xlane.xlu0 %1783 }
0x10af   : > { %v1787_v53 = vsub.f32 %v1777_v7, %v1785_v51  ;;  %v1786_v54 = vmul.f32 0.03125, %v1784_v52 }
0x10b1   : > { %v1788_v55 = vsub.f32 %v1778_v8, %v1786_v54  ;;  %v1789_v56 = vmul.f32 %v1787_v53, %v1787_v53 }
0x10b3   : > { %v1791_v57 = vsel %vm789_vm3, %v1789_v56, 0.0  ;;  %v1790_v58 = vmul.f32 %v1788_v55, %v1788_v55 }
0x10b4   : > { %1792 = vadd.xlane.f32.xlu0 %v1791_v57 }
0x10b5   : > { %v1794_v59 = vsel %vm789_vm3, %v1790_v58, 0.0 }
0x10b8   : > { %1795 = vadd.xlane.f32.xlu0 %v1794_v59 }
0x1141   : > { %v1793_v34 = vpop.xlane.xlu0 %1792 }
0x1142   : > { %v1797_v61 = vmul.f32 0.03125, %v1793_v34 }
0x1144   : > { %v1799_v62 = vadd.f32 1e-05, %v1797_v61 }
0x1145   : > { %v1796_v63 = vpop.xlane.xlu0 %1795 }
0x1146   : > { %2440 = vrsqrt.f32 %v1799_v62  ;;  %v1798_v1 = vmul.f32 0.03125, %v1796_v63 }
0x1148   : > { %v1800_v2 = vadd.f32 1e-05, %v1798_v1 }
0x114a   : > { %2442 = vrsqrt.f32 %v1800_v2 }
0x1150   : > { %v2441_v11 = vpop.eup %2440 }
0x1151   : > { %v1803_v13 = vmul.f32 %v2441_v11, %v1787_v53 }
0x1153   : > { %v1809_v15 = vmul.f32 %v1808_v6, %v1803_v13 }
0x1154   : > { %v2443_v16 = vpop.eup %2442 }
0x1155   : > { %v1815_v17 = vadd.f32 %v1814_v12, %v1809_v15  ;;  %v1804_v18 = vmul.f32 %v2443_v16, %v1788_v55  ;;  %1822 = sbr.rel (%p2088_p0) target bundleno = 4444 (0x115c), region = 80 }
0x1157   : > { %1817 = vst.msk [vmem:[#allocation2] sm:$0xff] %vm789_vm3, %v1815_v17  ;;  %v1810_v19 = vmul.f32 %v1808_v6, %v1804_v18  ;;  %1823 = vst.msk [vmem:[%s2920_s5] sm:$0xff] (!%p2088_p0), %vm789_vm3, %v1815_v17 }
0x1159   : > { %v1816_v20 = vadd.f32 %v1814_v12, %v1810_v19 }
0x115b   : > { %1818 = vst.msk [vmem:[#allocation2 + $0x8] sm:$0xff] %vm789_vm3, %v1816_v20  ;;  %1824 = vst.msk [vmem:[%s2920_s5 + $0x8] sm:$0xff] (!%p2088_p0), %vm789_vm3, %v1816_v20 }
0x115c PF: > { %s3290_s30 = sld [smem:[#allocation18_spill]]  ;;  %s2101_s13 = sshll.u32 %s2592_s21, 8 }
0x115d   : > { %s3291_s0 = sld [smem:[#allocation29_spill]]  ;;  %s1839_s26 = sshll.u32 %s2920_s5, 4  ;;  %s3166_s26 = int_to_ptr.vmem [resolvable:$true] %s1839_s26 }
0x115e   : > { %s1826_s20 = scalar_lea.sflag [#allocation5], %s2856_s12  ;;  %s2502_s4 = scalar_lea.vmem %s3166_s26, 256 }
0x115f   : > { %p2503_p4 = scmp.ne.s32.totalorder %s3166_s26, %s2502_s4  ;;  %s2626_s15 = smov [#allocation8]  }
0x1160   : > { %s2506_s11 = sshll.u32 %s2626_s15, 4  ;;  %s2507_s11 = int_to_ptr.vmem [resolvable:$false] %s2506_s11 }
0x1161   : > { %s2508_s21 = scalar_lea.vmem %s2507_s11, 512  ;;  %p2509_p5 = scmp.lt.s32.totalorder %s3166_s26, %s2507_s11 }
0x1162   : > { %p3292_p3 = scmp.ne.s32.totalorder %s3290_s30, 0  ;;  %p2510_p6 = scmp.lt.s32.totalorder %s2508_s21, %s2502_s4 }
0x1163   : > { %s3163_s24 = scalar_lea.hbm %s3291_s0, %s2101_s13 }
0x1164   : > { %p2504_p8 = pnand %p2503_p4, %p3292_p3  ;;  %p2511_p10 = por %p2510_p6, %p2509_p5 }
0x1166   : > { %p2505_p1 = pneg %p2504_p8 }
0x1168   : > { %p2512_p12 = pnand %p2511_p10, %p2505_p1 }
0x116a   : > { %2515 = shalt.err (!%p2512_p12)
}
0x116b   : > { %s2516_s5 = scalar_lea.hbm %s3163_s24, 256  ;;  %s2520_s17 = scalar_lea.hbm %s3291_s0, 512 }
0x116c   : > { %p2517_p2 = scmp.ne.s32.totalorder %s3163_s24, %s2516_s5  ;;  %p2521_p11 = scmp.lt.u32.totalorder %s3163_s24, %s3291_s0 }
0x116d   : > { %p2522_p13 = scmp.lt.u32.totalorder %s2520_s17, %s2516_s5  ;;  %p2524_p4 = scmp.lt.u32.totalorder %s2516_s5, %s3163_s24 }
0x116e   : > { %p2518_p7 = pnand %p2517_p2, %p3292_p3 }
0x116f   : > { %p2523_p0 = por %p2522_p13, %p2521_p11 }
0x1170   : > { %p2519_p9 = pneg %p2518_p7 }
0x1171   : > { %p2525_p8 = por %p2524_p4, %p2523_p0 }
0x1173   : > { %p2526_p1 = pnand %p2525_p8, %p2519_p9 }
0x1175   : > { %2529 = shalt.err (!%p2526_p1)
}
0x1176   : > { %s2627_s19 = smov 128   ;;  %s2628_s25 = smov 8  }
0x1177   : > { %2272 = dma.vmem_to_hbm [thread:$0]  (%p3292_p3), %s3166_s26, 256, %s3163_s24, %s1826_s20, %s2627_s19, %s2627_s19, %s2628_s25  }
0x1178 PF: > { %s3293_s29 = sld [smem:[#allocation17_spill]]  ;;  %s3294_s1 = sld [smem:[#allocation12_spill]] }
0x1179   : > { %s3295_s16 = sld [smem:[#allocation19_spill]] }
0x117e   : > { %p2289_p5 = scmp.ge.s32.totalorder %s3293_s29, 2  ;;  %s1854_s28 = sand.u32 1, %s3294_s1  }
0x117f   : > { %p3296_p6 = scmp.ne.s32.totalorder %s3295_s16, 0  ;;  %s1855_s13 = scalar_lea.sflag [#allocation5], %s1854_s28 }
0x1181   : > { %p2283_p10 = pnand %p2289_p5, %p3296_p6 }
0x1183   : > { %2571 = dma.done.wait (!%p2283_p10), %s1855_s13, 256  }
0x1184   : > { %2573 = vsyncadd (!%p2283_p10), %s1855_s13, 4294967040  ;;  %s28_s24 = sadd.s32 1, %s3293_s29   ;;  %s3297_s17 = sld [smem:[#allocation13_spill]] }
0x1185   : > { %p25_p12 = scmp.ge.s32.totalorder %s28_s24, 6   ;;  %s3298_s18 = sld [smem:[#allocation14_spill]] }
0x1186   : > { %s3299_s19 = sld [smem:[#allocation22_spill]]  ;;  %s3300_s20 = sld [smem:[#allocation15_spill]] }
0x1187   : > { %s3301_s21 = sld [smem:[#allocation16_spill]]  ;;  %s3302_s22 = sld [smem:[#allocation20_spill]] }
0x1188   : > { %s3303_s23 = sld [smem:[#allocation21_spill]]  ;;  %27 = sbr.rel (!%p25_p12) target bundleno = 16 (0x10), region = 148 }
0x118f   :  { %1860 = vsyncpa [#allocation4], 1 }
0x1190   :  { %1862 = vsyncpa [#allocation4 + $0x1], 1 }
0x1191   :  { %1863 = vsyncpa [#allocation7], 1 }
0x1192   :  { %1864 = vsyncpa [#allocation5], 1 }
0x1193   :  { %1866 = vsyncpa [#allocation5 + $0x1], 1 }

</bundles_post_ra>
